<compile_context>
chip_gen: v6e
topology: v6e:2x2x1
jax: 0.10.0
libtpu: 0.0.40
codegen_flags: <defaults>
</compile_context>

<pallas_src>
import functools

import jax
import jax.numpy as jnp
from jax.experimental import pallas as pl
from jax.experimental.pallas import tpu as pltpu

NEG_SLOPE = 0.2                      # GATv2Conv default negative_slope
A_COEF = 0.5 * (1.0 + NEG_SLOPE)     # leaky_relu(t) = A*t + B*|t|
B_COEF = 0.5 * (1.0 - NEG_SLOPE)
BN_EPS = 1e-5
LANE = 128                           # TPU lane width — padded dims are multiples of this
ROW_BLOCK = 128                      # target-row tile (grid axis, "parallel")
MASK_NEG = -1e30


def _round_up(v, m):
    return (v + m - 1) // m * m


def _pad_to(a, shape):
    return jnp.pad(a, [(0, s - d) for d, s in zip(a.shape, shape)])


# --------------------------------------------------------------------- fused layer kernel

def unify_layer_kernel(x_ref, w_ref, b_ref, att_ref, gbias_ref, mb_ref,
                       gamma_ref, beta_ref, mean_ref, var_ref, eca_ref,
                       out_ref, proj_scr, *, heads, channels, real_dim, concat, hidden):
    """Fused GATv2Conv (all heads, packed weights) + bias + ECA + BatchNorm(eval) [+ ELU].

    x:     (NP, Fp)   padded node features (padded rows/cols zero)
    w:     (Fp, Dp)   bf16 packed weights: cols [h*C,(h+1)*C) = lin_l head h (== concat
                      placement), cols [H*C + h*C, H*C+(h+1)*C) = lin_r head h
    b:     (1, Dp)    packed biases (same layout), f32
    att:   (H*C,)     SMEM per-head attention vectors
    gbias: (1, Dp)    GATv2Conv output bias
    mb:    (RB, NP)   bf16 additive mask rows for this target-row block (0 edge / -1e30)
    gamma/beta/mean/var: (1, Dp) BatchNorm1d eval params (gamma=0 on padded cols)
    eca:   (1,)       SMEM center tap of the ECA conv1d (only tap touching a len-1 signal)
    out:   (RB, Dp)   lane-dense layer output rows
    proj_scr: (NP, Dp) f32 VMEM scratch holding the packed projection
    """
    f32, bf16 = jnp.float32, jnp.bfloat16
    np_ = x_ref.shape[0]
    rb, dp = out_ref.shape
    hc = heads * channels
    row0 = pl.multiple_of(pl.program_id(0) * rb, rb)

    # ---- one packed projection matmul for all heads' xl / xr (bf16 in, f32 acc) --------
    xb = x_ref[...].astype(bf16)
    proj = jnp.dot(xb, w_ref[...], preferred_element_type=f32) + b_ref[...]   # (NP, Dp)
    proj_scr[...] = proj
    projT = proj.T                                   # (Dp, NP): source axis on lanes
    xr_blk = proj_scr[pl.ds(row0, rb), :]            # target-row block of the projection
    mb_b = mb_ref[...]                               # (RB, NP) bf16

    col_ids = jax.lax.broadcasted_iota(jnp.int32, (1, dp), 1)

    alphas = []
    xl_blocks = []
    for h in range(heads):
        # Linear part of sum_c att[c]*leaky_relu(xr_i + xl_j): the xr_i piece is constant
        # over the softmax (source) axis and cancels exactly, so only the xl_j row remains.
        lin = jnp.zeros((1, np_), f32)
        for c in range(channels):
            a_c = A_COEF * att_ref[h * channels + c]
            lin = lin + a_c * projT[h * channels + c:h * channels + c + 1, :]
        e = mb_b.astype(f32) + lin                                            # (RB, NP)

        # Nonlinear part: B*sum_c att[c]*|xr_i + xl_j|  — add + abs + mul + add / channel.
        for c in range(channels):
            b_c = B_COEF * att_ref[h * channels + c]
            t = (xr_blk[:, hc + h * channels + c:hc + h * channels + c + 1]
                 + projT[h * channels + c:h * channels + c + 1, :])
            e = e + b_c * jnp.abs(t)

        # Masked softmax over sources (masked entries underflow to exact 0).
        m = jnp.max(e, axis=-1, keepdims=True)
        p = jnp.exp(e - m)
        alpha = p * pl.reciprocal(jnp.sum(p, axis=-1, keepdims=True), approx=True)
        alphas.append(alpha.astype(bf16))

        # Head-h message block: keep only this head's (pre-placed) xl columns.
        head_mask = (col_ids >= h * channels) & (col_ids < (h + 1) * channels)
        xl_blocks.append(jnp.where(head_mask, proj, 0.0).astype(bf16))

    # ---- one stacked aggregation matmul, K = heads*NP --------------------------------
    a_stack = jnp.concatenate(alphas, axis=1)          # (RB, H*NP) bf16
    x_stack = jnp.concatenate(xl_blocks, axis=0)       # (H*NP, Dp) bf16
    agg = jnp.dot(a_stack, x_stack, preferred_element_type=f32)   # (RB, Dp)

    if not concat:
        # Mean over heads: fold each head's column block onto [0, C); junk lands only in
        # padded columns and is zeroed by BatchNorm's gamma=0 before the ECA row-mean.
        merged = agg
        for h in range(1, heads):
            merged = merged + pltpu.roll(agg, shift=dp - h * channels, axis=1)
        agg = merged * (1.0 / heads)

    y = agg + gbias_ref[...]                                                  # conv bias

    inv_std = jax.lax.rsqrt(var_ref[...] + BN_EPS)
    if hidden:
        # Hidden-layer epilogue: ECA gate -> BatchNorm1d (running stats) -> ELU.
        row_mean = jnp.sum(y, axis=-1, keepdims=True) * (1.0 / real_dim)      # padded cols = 0
        gate = jax.nn.sigmoid(eca_ref[0] * row_mean)
        y = y * (1.0 + gate)                                                  # x*gate + residual
        y = (y - mean_ref[...]) * inv_std * gamma_ref[...] + beta_ref[...]
        y = jnp.where(y > 0.0, y, jnp.exp(jnp.minimum(y, 0.0)) - 1.0)         # ELU
    else:
        # Output-layer epilogue: BatchNorm1d -> ECA gate (no ELU).
        y = (y - mean_ref[...]) * inv_std * gamma_ref[...] + beta_ref[...]
        row_mean = jnp.sum(y, axis=-1, keepdims=True) * (1.0 / real_dim)
        gate = jax.nn.sigmoid(eca_ref[0] * row_mean)
        y = y * (1.0 + gate)
    out_ref[...] = y


# ----------------------------------------------------------------------------- wrappers

def _vmem_limit_bytes(np_, fp, dp, rb):
    resident = (np_ * fp * 4 + fp * dp * 2 + rb * np_ * 2 + np_ * dp * 4
                + rb * dp * 4 + 16 * dp * 4)
    work = 12 * rb * np_ * 4 + 8 * np_ * dp * 4
    est = 2 * resident + work + (2 << 20)
    return int(min(max(est, 16 * 1024 * 1024), 48 * 1024 * 1024))


def _fused_layer_call(x, mask_bias, lp, *, concat, hidden):
    np_, fp = x.shape
    dp = lp["w"].shape[1]
    rb = min(ROW_BLOCK, np_)
    grid = (np_ // rb,)
    full2 = lambda i: (0, 0)

    kernel = functools.partial(
        unify_layer_kernel,
        heads=lp["heads"], channels=lp["channels"], real_dim=lp["real_dim"],
        concat=concat, hidden=hidden)

    return pl.pallas_call(
        kernel,
        out_shape=jax.ShapeDtypeStruct((np_, dp), jnp.float32),
        grid=grid,
        in_specs=[
            pl.BlockSpec((np_, fp), full2),                          # x (full, resident)
            pl.BlockSpec((fp, dp), full2),                           # packed weights (bf16)
            pl.BlockSpec((1, dp), full2),                            # packed biases
            pl.BlockSpec(memory_space=pltpu.MemorySpace.SMEM),       # att (H*C,)
            pl.BlockSpec((1, dp), full2),                            # conv bias
            pl.BlockSpec((rb, np_), lambda i: (i, 0)),               # mask rows (bf16)
            pl.BlockSpec((1, dp), full2),                            # gamma
            pl.BlockSpec((1, dp), full2),                            # beta
            pl.BlockSpec((1, dp), full2),                            # running mean
            pl.BlockSpec((1, dp), full2),                            # running var
            pl.BlockSpec(memory_space=pltpu.MemorySpace.SMEM),       # eca center tap (1,)
        ],
        out_specs=pl.BlockSpec((rb, dp), lambda i: (i, 0)),
        scratch_shapes=[pltpu.VMEM((np_, dp), jnp.float32)],
        compiler_params=pltpu.CompilerParams(
            dimension_semantics=("parallel",),
            vmem_limit_bytes=_vmem_limit_bytes(np_, fp, dp, rb)),
    )(x, lp["w"], lp["b"], lp["att"], lp["gbias"], mask_bias,
      lp["gamma"], lp["beta"], lp["mean"], lp["var"], lp["eca"])


def build_mask_bias(edge_index, padded_nodes):
    """bf16 additive softmax bias: 0 where edge j->i (self loops incl.), -1e30 elsewhere."""
    src, dst = edge_index[0], edge_index[1]
    adj = jnp.zeros((padded_nodes, padded_nodes), jnp.float32)
    adj = adj.at[dst, src].set(1.0)                                   # adj[i, j] = 1 iff j -> i
    adj = jnp.maximum(adj, jnp.eye(padded_nodes, dtype=jnp.float32))  # add_self_loops=True
    return jnp.where(adj > 0.0, 0.0, MASK_NEG).astype(jnp.bfloat16)


def unify_forward(x, edge_index, params):
    n = x.shape[0]
    np_ = _round_up(max(n, 8), LANE)
    fp0 = params["hidden"][0]["w"].shape[0]
    h = _pad_to(x.astype(jnp.float32), (np_, fp0))
    mb = build_mask_bias(edge_index, np_)
    for lp in params["hidden"]:
        # F.dropout(x) in eval mode is the identity.
        h = _fused_layer_call(h, mb, lp, concat=True, hidden=True)
    h = _fused_layer_call(h, mb, params["out"], concat=False, hidden=False)
    return h[:n, :params["nclass"]]


# ----------------------------------------------------------------------------- params

def _init_layer(key, fin, c, heads, concat, k_size=3):
    fp = _round_up(fin, LANE)
    d_real = heads * c if concat else c
    dp = _round_up(d_real, LANE)
    hc = heads * c
    assert 2 * hc <= dp, "packed projection needs 2*heads*channels <= padded width"
    ks = jax.random.split(key, 7)
    wl = 0.2 * jax.random.normal(ks[0], (heads, fin, c), jnp.float32)
    bl = 0.1 * jax.random.normal(ks[1], (heads, 1, c), jnp.float32)
    wr = 0.2 * jax.random.normal(ks[2], (heads, fin, c), jnp.float32)
    br = 0.1 * jax.random.normal(ks[3], (heads, 1, c), jnp.float32)
    att = 0.2 * jax.random.normal(ks[4], (heads * c,), jnp.float32)
    gbias = 0.1 * jax.random.normal(ks[5], (d_real,), jnp.float32)
    eca_taps = 0.5 * jax.random.normal(ks[6], (k_size,), jnp.float32)

    # Pack all heads into one projection: xl (lin_l) head h at the concat output columns
    # [h*c, (h+1)*c), xr (lin_r) head h at [hc + h*c, hc + (h+1)*c).
    w = jnp.zeros((fp, dp), jnp.float32)
    b = jnp.zeros((1, dp), jnp.float32)
    for hh in range(heads):
        w = w.at[:fin, hh * c:(hh + 1) * c].set(wl[hh])
        w = w.at[:fin, hc + hh * c:hc + (hh + 1) * c].set(wr[hh])
        b = b.at[:, hh * c:(hh + 1) * c].set(bl[hh])
        b = b.at[:, hc + hh * c:hc + (hh + 1) * c].set(br[hh])

    return dict(
        heads=heads, channels=c, real_dim=d_real,
        w=w.astype(jnp.bfloat16), b=b, att=att,
        gbias=_pad_to(gbias[None, :], (1, dp)),
        # BatchNorm1d (eval, init running stats); padded columns get gamma=0 so they stay 0.
        gamma=_pad_to(jnp.ones((1, d_real), jnp.float32), (1, dp)),
        beta=jnp.zeros((1, dp), jnp.float32),
        mean=jnp.zeros((1, dp), jnp.float32),
        var=jnp.ones((1, dp), jnp.float32),
        # ECA conv1d(k) on the length-1 pooled signal: only the center tap contributes.
        eca=eca_taps[(k_size - 1) // 2][None],
    )


def init_unify(key, nfeat, nhid, heads, nclass, layers, k_size=3):
    keys = jax.random.split(key, layers + 1)
    hidden = []
    fin = nfeat
    for i in range(layers):
        hidden.append(_init_layer(keys[i], fin, nhid, heads, concat=True, k_size=k_size))
        fin = nhid * heads
    out = _init_layer(keys[layers], fin, nclass, heads, concat=False, k_size=k_size)
    return dict(hidden=hidden, out=out, nclass=nclass)


# ----------------------------------------------------------------------------- main

if __name__ == "__main__":
    N, nfeat, nhid, heads, nclass, layers = 16, 8, 8, 2, 4, 2

    key = jax.random.PRNGKey(0)
    kx, ke1, ke2, kp = jax.random.split(key, 4)

    x = jax.random.normal(kx, (N, nfeat), jnp.float32)

    num_edges = 40
    src = jax.random.randint(ke1, (num_edges,), 0, N)
    dst = jax.random.randint(ke2, (num_edges,), 0, N)
    edge_index = jnp.stack([src, dst], axis=0)      # [2, E], PyG convention (src, dst)

    params = init_unify(kp, nfeat, nhid, heads, nclass, layers)

    out = unify_forward(x, edge_index, params)
    out = jax.block_until_ready(out)
    assert out.shape == (N, nclass), out.shape
    assert bool(jnp.all(jnp.isfinite(out)))
    print("KERNEL_OK")
</pallas_src>

<mosaic_0001>
module attributes {stable_mosaic.version = 11 : i64} {
  func.func @unify_layer_kernel(%arg0: i32, %arg1: memref<128x128xf32, #tpu.memory_space<vmem>>, %arg2: memref<128x128xbf16, #tpu.memory_space<vmem>>, %arg3: memref<1x128xf32, #tpu.memory_space<vmem>>, %arg4: memref<16xf32, #tpu.memory_space<smem>>, %arg5: memref<1x128xf32, #tpu.memory_space<vmem>>, %arg6: memref<128x128xbf16, #tpu.memory_space<vmem>>, %arg7: memref<1x128xf32, #tpu.memory_space<vmem>>, %arg8: memref<1x128xf32, #tpu.memory_space<vmem>>, %arg9: memref<1x128xf32, #tpu.memory_space<vmem>>, %arg10: memref<1x128xf32, #tpu.memory_space<vmem>>, %arg11: memref<1xf32, #tpu.memory_space<smem>>, %arg12: memref<128x128xf32, #tpu.memory_space<vmem>>, %arg13: memref<128x128xf32, #tpu.memory_space<vmem>>) attributes {dimension_semantics = [#tpu.dimension_semantics<parallel>], iteration_bounds = array<i64: 1>, scalar_prefetch = 0 : i64, scratch_operands = 1 : i64, tpu.core_type = #tpu.core_type<tc>, window_params = [{pipeline_mode = #tpu.pipeline_mode<synchronous>, transform_indices = @transform_0, window_bounds = array<i64: 128, 128>}, {pipeline_mode = #tpu.pipeline_mode<synchronous>, transform_indices = @transform_1, window_bounds = array<i64: 128, 128>}, {pipeline_mode = #tpu.pipeline_mode<synchronous>, transform_indices = @transform_2, window_bounds = array<i64: 1, 128>}, {transform_indices = @transform_3, window_bounds = array<i64: 16>}, {pipeline_mode = #tpu.pipeline_mode<synchronous>, transform_indices = @transform_4, window_bounds = array<i64: 1, 128>}, {transform_indices = @transform_5, window_bounds = array<i64: 128, 128>}, {pipeline_mode = #tpu.pipeline_mode<synchronous>, transform_indices = @transform_6, window_bounds = array<i64: 1, 128>}, {pipeline_mode = #tpu.pipeline_mode<synchronous>, transform_indices = @transform_7, window_bounds = array<i64: 1, 128>}, {pipeline_mode = #tpu.pipeline_mode<synchronous>, transform_indices = @transform_8, window_bounds = array<i64: 1, 128>}, {pipeline_mode = #tpu.pipeline_mode<synchronous>, transform_indices = @transform_9, window_bounds = array<i64: 1, 128>}, {transform_indices = @transform_10, window_bounds = array<i64: 1>}, {transform_indices = @transform_11, window_bounds = array<i64: 128, 128>}]} {
    %c128_i32 = arith.constant 128 : i32
    %0 = arith.muli %arg0, %c128_i32 : i32
    %1 = tpu.assume_multiple %0, 128 : i32
    %c0 = arith.constant 0 : index
    %c0_0 = arith.constant 0 : index
    %2 = vector.load %arg1[%c0, %c0_0] : memref<128x128xf32, #tpu.memory_space<vmem>>, vector<128x128xf32>
    %3 = arith.truncf %2 : vector<128x128xf32> to vector<128x128xbf16>
    %c0_1 = arith.constant 0 : index
    %c0_2 = arith.constant 0 : index
    %4 = vector.load %arg2[%c0_1, %c0_2] : memref<128x128xbf16, #tpu.memory_space<vmem>>, vector<128x128xbf16>
    %cst = arith.constant dense<0.000000e+00> : vector<128x128xf32>
    %5 = tpu.matmul %3, %4, %cst {dimension_numbers = #tpu.dot_dimension_numbers<[1], [0], [0], [1], [0, 0, 1, 1], [], []>} : vector<128x128xbf16>, vector<128x128xbf16>, vector<128x128xf32> -> vector<128x128xf32>
    %c0_3 = arith.constant 0 : index
    %c0_4 = arith.constant 0 : index
    %6 = vector.load %arg3[%c0_3, %c0_4] : memref<1x128xf32, #tpu.memory_space<vmem>>, vector<1x128xf32>
    %7 = vector.broadcast %6 : vector<1x128xf32> to vector<128x128xf32>
    %8 = arith.addf %5, %7 : vector<128x128xf32>
    %c0_5 = arith.constant 0 : index
    %c0_6 = arith.constant 0 : index
    %9 = vector.load %arg13[%c0_5, %c0_6] : memref<128x128xf32, #tpu.memory_space<vmem>>, vector<128x128xf32>
    tpu.vector_store %arg13[%c0_5, %c0_6], %8 {strides = array<i32>} : memref<128x128xf32, #tpu.memory_space<vmem>>, vector<128x128xf32>,
    %10 = tpu.transpose %8, [1, 0] : vector<128x128xf32> -> vector<128x128xf32>
    %11 = arith.index_cast %1 : i32 to index
    %c0_7 = arith.constant 0 : index
    %12 = vector.load %arg13[%11, %c0_7] : memref<128x128xf32, #tpu.memory_space<vmem>>, vector<128x128xf32>
    %c0_8 = arith.constant 0 : index
    %c0_9 = arith.constant 0 : index
    %13 = vector.load %arg6[%c0_8, %c0_9] : memref<128x128xbf16, #tpu.memory_space<vmem>>, vector<128x128xbf16>
    %14 = tpu.iota {dimensions = array<i32: 1>} : vector<1x128xi32>
    %cst_10 = arith.constant 0.000000e+00 : f32
    %15 = vector.broadcast %cst_10 : f32 to vector<1x128xf32>
    %c0_11 = arith.constant 0 : index
    %16 = memref.load %arg4[%c0_11] : memref<16xf32, #tpu.memory_space<smem>>
    %cst_12 = arith.constant 6.000000e-01 : f32
    %17 = arith.mulf %cst_12, %16 : f32
    %18 = vector.extract_strided_slice %10 {offsets = [0, 0], sizes = [1, 128], strides = [1, 1]} : vector<128x128xf32> to vector<1x128xf32>
    %19 = vector.broadcast %17 : f32 to vector<1x128xf32>
    %20 = arith.mulf %19, %18 : vector<1x128xf32>
    %21 = arith.addf %15, %20 : vector<1x128xf32>
    %c1 = arith.constant 1 : index
    %22 = memref.load %arg4[%c1] : memref<16xf32, #tpu.memory_space<smem>>
    %cst_13 = arith.constant 6.000000e-01 : f32
    %23 = arith.mulf %cst_13, %22 : f32
    %24 = vector.extract_strided_slice %10 {offsets = [1, 0], sizes = [1, 128], strides = [1, 1]} : vector<128x128xf32> to vector<1x128xf32>
    %25 = vector.broadcast %23 : f32 to vector<1x128xf32>
    %26 = arith.mulf %25, %24 : vector<1x128xf32>
    %27 = arith.addf %21, %26 : vector<1x128xf32>
    %c2 = arith.constant 2 : index
    %28 = memref.load %arg4[%c2] : memref<16xf32, #tpu.memory_space<smem>>
    %cst_14 = arith.constant 6.000000e-01 : f32
    %29 = arith.mulf %cst_14, %28 : f32
    %30 = vector.extract_strided_slice %10 {offsets = [2, 0], sizes = [1, 128], strides = [1, 1]} : vector<128x128xf32> to vector<1x128xf32>
    %31 = vector.broadcast %29 : f32 to vector<1x128xf32>
    %32 = arith.mulf %31, %30 : vector<1x128xf32>
    %33 = arith.addf %27, %32 : vector<1x128xf32>
    %c3 = arith.constant 3 : index
    %34 = memref.load %arg4[%c3] : memref<16xf32, #tpu.memory_space<smem>>
    %cst_15 = arith.constant 6.000000e-01 : f32
    %35 = arith.mulf %cst_15, %34 : f32
    %36 = vector.extract_strided_slice %10 {offsets = [3, 0], sizes = [1, 128], strides = [1, 1]} : vector<128x128xf32> to vector<1x128xf32>
    %37 = vector.broadcast %35 : f32 to vector<1x128xf32>
    %38 = arith.mulf %37, %36 : vector<1x128xf32>
    %39 = arith.addf %33, %38 : vector<1x128xf32>
    %c4 = arith.constant 4 : index
    %40 = memref.load %arg4[%c4] : memref<16xf32, #tpu.memory_space<smem>>
    %cst_16 = arith.constant 6.000000e-01 : f32
    %41 = arith.mulf %cst_16, %40 : f32
    %42 = vector.extract_strided_slice %10 {offsets = [4, 0], sizes = [1, 128], strides = [1, 1]} : vector<128x128xf32> to vector<1x128xf32>
    %43 = vector.broadcast %41 : f32 to vector<1x128xf32>
    %44 = arith.mulf %43, %42 : vector<1x128xf32>
    %45 = arith.addf %39, %44 : vector<1x128xf32>
    %c5 = arith.constant 5 : index
    %46 = memref.load %arg4[%c5] : memref<16xf32, #tpu.memory_space<smem>>
    %cst_17 = arith.constant 6.000000e-01 : f32
    %47 = arith.mulf %cst_17, %46 : f32
    %48 = vector.extract_strided_slice %10 {offsets = [5, 0], sizes = [1, 128], strides = [1, 1]} : vector<128x128xf32> to vector<1x128xf32>
    %49 = vector.broadcast %47 : f32 to vector<1x128xf32>
    %50 = arith.mulf %49, %48 : vector<1x128xf32>
    %51 = arith.addf %45, %50 : vector<1x128xf32>
    %c6 = arith.constant 6 : index
    %52 = memref.load %arg4[%c6] : memref<16xf32, #tpu.memory_space<smem>>
    %cst_18 = arith.constant 6.000000e-01 : f32
    %53 = arith.mulf %cst_18, %52 : f32
    %54 = vector.extract_strided_slice %10 {offsets = [6, 0], sizes = [1, 128], strides = [1, 1]} : vector<128x128xf32> to vector<1x128xf32>
    %55 = vector.broadcast %53 : f32 to vector<1x128xf32>
    %56 = arith.mulf %55, %54 : vector<1x128xf32>
    %57 = arith.addf %51, %56 : vector<1x128xf32>
    %c7 = arith.constant 7 : index
    %58 = memref.load %arg4[%c7] : memref<16xf32, #tpu.memory_space<smem>>
    %cst_19 = arith.constant 6.000000e-01 : f32
    %59 = arith.mulf %cst_19, %58 : f32
    %60 = vector.extract_strided_slice %10 {offsets = [7, 0], sizes = [1, 128], strides = [1, 1]} : vector<128x128xf32> to vector<1x128xf32>
    %61 = vector.broadcast %59 : f32 to vector<1x128xf32>
    %62 = arith.mulf %61, %60 : vector<1x128xf32>
    %63 = arith.addf %57, %62 : vector<1x128xf32>
    %64 = arith.extf %13 : vector<128x128xbf16> to vector<128x128xf32>
    %65 = vector.broadcast %63 : vector<1x128xf32> to vector<128x128xf32>
    %66 = arith.addf %64, %65 : vector<128x128xf32>
    %c0_20 = arith.constant 0 : index
    %67 = memref.load %arg4[%c0_20] : memref<16xf32, #tpu.memory_space<smem>>
    %cst_21 = arith.constant 4.000000e-01 : f32
    %68 = arith.mulf %cst_21, %67 : f32
    %69 = vector.extract_strided_slice %12 {offsets = [0, 16], sizes = [128, 1], strides = [1, 1]} : vector<128x128xf32> to vector<128x1xf32>
    %70 = vector.extract_strided_slice %10 {offsets = [0, 0], sizes = [1, 128], strides = [1, 1]} : vector<128x128xf32> to vector<1x128xf32>
    %71 = vector.broadcast %69 : vector<128x1xf32> to vector<128x128xf32>
    %72 = vector.broadcast %70 : vector<1x128xf32> to vector<128x128xf32>
    %73 = arith.addf %71, %72 : vector<128x128xf32>
    %74 = math.absf %73 : vector<128x128xf32>
    %75 = vector.broadcast %68 : f32 to vector<128x128xf32>
    %76 = arith.mulf %75, %74 : vector<128x128xf32>
    %77 = arith.addf %66, %76 : vector<128x128xf32>
    %c1_22 = arith.constant 1 : index
    %78 = memref.load %arg4[%c1_22] : memref<16xf32, #tpu.memory_space<smem>>
    %cst_23 = arith.constant 4.000000e-01 : f32
    %79 = arith.mulf %cst_23, %78 : f32
    %80 = vector.extract_strided_slice %12 {offsets = [0, 17], sizes = [128, 1], strides = [1, 1]} : vector<128x128xf32> to vector<128x1xf32>
    %81 = vector.extract_strided_slice %10 {offsets = [1, 0], sizes = [1, 128], strides = [1, 1]} : vector<128x128xf32> to vector<1x128xf32>
    %82 = vector.broadcast %80 : vector<128x1xf32> to vector<128x128xf32>
    %83 = vector.broadcast %81 : vector<1x128xf32> to vector<128x128xf32>
    %84 = arith.addf %82, %83 : vector<128x128xf32>
    %85 = math.absf %84 : vector<128x128xf32>
    %86 = vector.broadcast %79 : f32 to vector<128x128xf32>
    %87 = arith.mulf %86, %85 : vector<128x128xf32>
    %88 = arith.addf %77, %87 : vector<128x128xf32>
    %c2_24 = arith.constant 2 : index
    %89 = memref.load %arg4[%c2_24] : memref<16xf32, #tpu.memory_space<smem>>
    %cst_25 = arith.constant 4.000000e-01 : f32
    %90 = arith.mulf %cst_25, %89 : f32
    %91 = vector.extract_strided_slice %12 {offsets = [0, 18], sizes = [128, 1], strides = [1, 1]} : vector<128x128xf32> to vector<128x1xf32>
    %92 = vector.extract_strided_slice %10 {offsets = [2, 0], sizes = [1, 128], strides = [1, 1]} : vector<128x128xf32> to vector<1x128xf32>
    %93 = vector.broadcast %91 : vector<128x1xf32> to vector<128x128xf32>
    %94 = vector.broadcast %92 : vector<1x128xf32> to vector<128x128xf32>
    %95 = arith.addf %93, %94 : vector<128x128xf32>
    %96 = math.absf %95 : vector<128x128xf32>
    %97 = vector.broadcast %90 : f32 to vector<128x128xf32>
    %98 = arith.mulf %97, %96 : vector<128x128xf32>
    %99 = arith.addf %88, %98 : vector<128x128xf32>
    %c3_26 = arith.constant 3 : index
    %100 = memref.load %arg4[%c3_26] : memref<16xf32, #tpu.memory_space<smem>>
    %cst_27 = arith.constant 4.000000e-01 : f32
    %101 = arith.mulf %cst_27, %100 : f32
    %102 = vector.extract_strided_slice %12 {offsets = [0, 19], sizes = [128, 1], strides = [1, 1]} : vector<128x128xf32> to vector<128x1xf32>
    %103 = vector.extract_strided_slice %10 {offsets = [3, 0], sizes = [1, 128], strides = [1, 1]} : vector<128x128xf32> to vector<1x128xf32>
    %104 = vector.broadcast %102 : vector<128x1xf32> to vector<128x128xf32>
    %105 = vector.broadcast %103 : vector<1x128xf32> to vector<128x128xf32>
    %106 = arith.addf %104, %105 : vector<128x128xf32>
    %107 = math.absf %106 : vector<128x128xf32>
    %108 = vector.broadcast %101 : f32 to vector<128x128xf32>
    %109 = arith.mulf %108, %107 : vector<128x128xf32>
    %110 = arith.addf %99, %109 : vector<128x128xf32>
    %c4_28 = arith.constant 4 : index
    %111 = memref.load %arg4[%c4_28] : memref<16xf32, #tpu.memory_space<smem>>
    %cst_29 = arith.constant 4.000000e-01 : f32
    %112 = arith.mulf %cst_29, %111 : f32
    %113 = vector.extract_strided_slice %12 {offsets = [0, 20], sizes = [128, 1], strides = [1, 1]} : vector<128x128xf32> to vector<128x1xf32>
    %114 = vector.extract_strided_slice %10 {offsets = [4, 0], sizes = [1, 128], strides = [1, 1]} : vector<128x128xf32> to vector<1x128xf32>
    %115 = vector.broadcast %113 : vector<128x1xf32> to vector<128x128xf32>
    %116 = vector.broadcast %114 : vector<1x128xf32> to vector<128x128xf32>
    %117 = arith.addf %115, %116 : vector<128x128xf32>
    %118 = math.absf %117 : vector<128x128xf32>
    %119 = vector.broadcast %112 : f32 to vector<128x128xf32>
    %120 = arith.mulf %119, %118 : vector<128x128xf32>
    %121 = arith.addf %110, %120 : vector<128x128xf32>
    %c5_30 = arith.constant 5 : index
    %122 = memref.load %arg4[%c5_30] : memref<16xf32, #tpu.memory_space<smem>>
    %cst_31 = arith.constant 4.000000e-01 : f32
    %123 = arith.mulf %cst_31, %122 : f32
    %124 = vector.extract_strided_slice %12 {offsets = [0, 21], sizes = [128, 1], strides = [1, 1]} : vector<128x128xf32> to vector<128x1xf32>
    %125 = vector.extract_strided_slice %10 {offsets = [5, 0], sizes = [1, 128], strides = [1, 1]} : vector<128x128xf32> to vector<1x128xf32>
    %126 = vector.broadcast %124 : vector<128x1xf32> to vector<128x128xf32>
    %127 = vector.broadcast %125 : vector<1x128xf32> to vector<128x128xf32>
    %128 = arith.addf %126, %127 : vector<128x128xf32>
    %129 = math.absf %128 : vector<128x128xf32>
    %130 = vector.broadcast %123 : f32 to vector<128x128xf32>
    %131 = arith.mulf %130, %129 : vector<128x128xf32>
    %132 = arith.addf %121, %131 : vector<128x128xf32>
    %c6_32 = arith.constant 6 : index
    %133 = memref.load %arg4[%c6_32] : memref<16xf32, #tpu.memory_space<smem>>
    %cst_33 = arith.constant 4.000000e-01 : f32
    %134 = arith.mulf %cst_33, %133 : f32
    %135 = vector.extract_strided_slice %12 {offsets = [0, 22], sizes = [128, 1], strides = [1, 1]} : vector<128x128xf32> to vector<128x1xf32>
    %136 = vector.extract_strided_slice %10 {offsets = [6, 0], sizes = [1, 128], strides = [1, 1]} : vector<128x128xf32> to vector<1x128xf32>
    %137 = vector.broadcast %135 : vector<128x1xf32> to vector<128x128xf32>
    %138 = vector.broadcast %136 : vector<1x128xf32> to vector<128x128xf32>
    %139 = arith.addf %137, %138 : vector<128x128xf32>
    %140 = math.absf %139 : vector<128x128xf32>
    %141 = vector.broadcast %134 : f32 to vector<128x128xf32>
    %142 = arith.mulf %141, %140 : vector<128x128xf32>
    %143 = arith.addf %132, %142 : vector<128x128xf32>
    %c7_34 = arith.constant 7 : index
    %144 = memref.load %arg4[%c7_34] : memref<16xf32, #tpu.memory_space<smem>>
    %cst_35 = arith.constant 4.000000e-01 : f32
    %145 = arith.mulf %cst_35, %144 : f32
    %146 = vector.extract_strided_slice %12 {offsets = [0, 23], sizes = [128, 1], strides = [1, 1]} : vector<128x128xf32> to vector<128x1xf32>
    %147 = vector.extract_strided_slice %10 {offsets = [7, 0], sizes = [1, 128], strides = [1, 1]} : vector<128x128xf32> to vector<1x128xf32>
    %148 = vector.broadcast %146 : vector<128x1xf32> to vector<128x128xf32>
    %149 = vector.broadcast %147 : vector<1x128xf32> to vector<128x128xf32>
    %150 = arith.addf %148, %149 : vector<128x128xf32>
    %151 = math.absf %150 : vector<128x128xf32>
    %152 = vector.broadcast %145 : f32 to vector<128x128xf32>
    %153 = arith.mulf %152, %151 : vector<128x128xf32>
    %154 = arith.addf %143, %153 : vector<128x128xf32>
    %cst_36 = arith.constant dense<0xFF800000> : vector<128xf32>
    %155 = vector.multi_reduction <maximumf>, %154, %cst_36 [1] : vector<128x128xf32> to vector<128xf32>
    %156 = vector.shape_cast %155 : vector<128xf32> to vector<128x1xf32>
    %157 = vector.broadcast %156 : vector<128x1xf32> to vector<128x128xf32>
    %158 = arith.subf %154, %157 : vector<128x128xf32>
    %159 = math.exp %158 : vector<128x128xf32>
    %cst_37 = arith.constant dense<0.000000e+00> : vector<128xf32>
    %160 = vector.multi_reduction <add>, %159, %cst_37 [1] : vector<128x128xf32> to vector<128xf32>
    %161 = vector.shape_cast %160 : vector<128xf32> to vector<128x1xf32>
    %162 = tpu.reciprocal %161 {approx = true} : vector<128x1xf32> -> vector<128x1xf32>
    %163 = vector.broadcast %162 : vector<128x1xf32> to vector<128x128xf32>
    %164 = arith.mulf %159, %163 : vector<128x128xf32>
    %165 = arith.truncf %164 : vector<128x128xf32> to vector<128x128xbf16>
    %c0_i32 = arith.constant 0 : i32
    %166 = vector.broadcast %c0_i32 : i32 to vector<1x128xi32>
    %167 = arith.cmpi sge, %14, %166 : vector<1x128xi32>
    %c8_i32 = arith.constant 8 : i32
    %168 = vector.broadcast %c8_i32 : i32 to vector<1x128xi32>
    %169 = arith.cmpi slt, %14, %168 : vector<1x128xi32>
    %170 = arith.andi %167, %169 : vector<1x128xi1>
    %cst_38 = arith.constant 0.000000e+00 : f32
    %171 = vector.shape_cast %170 : vector<1x128xi1> to vector<1x128xi1>
    %172 = vector.broadcast %171 : vector<1x128xi1> to vector<128x128xi1>
    %173 = vector.broadcast %cst_38 : f32 to vector<128x128xf32>
    %174 = arith.select %172, %8, %173 : vector<128x128xi1>, vector<128x128xf32>
    %175 = arith.truncf %174 : vector<128x128xf32> to vector<128x128xbf16>
    %cst_39 = arith.constant 0.000000e+00 : f32
    %176 = vector.broadcast %cst_39 : f32 to vector<1x128xf32>
    %c8 = arith.constant 8 : index
    %177 = memref.load %arg4[%c8] : memref<16xf32, #tpu.memory_space<smem>>
    %cst_40 = arith.constant 6.000000e-01 : f32
    %178 = arith.mulf %cst_40, %177 : f32
    %179 = vector.extract_strided_slice %10 {offsets = [8, 0], sizes = [1, 128], strides = [1, 1]} : vector<128x128xf32> to vector<1x128xf32>
    %180 = vector.broadcast %178 : f32 to vector<1x128xf32>
    %181 = arith.mulf %180, %179 : vector<1x128xf32>
    %182 = arith.addf %176, %181 : vector<1x128xf32>
    %c9 = arith.constant 9 : index
    %183 = memref.load %arg4[%c9] : memref<16xf32, #tpu.memory_space<smem>>
    %cst_41 = arith.constant 6.000000e-01 : f32
    %184 = arith.mulf %cst_41, %183 : f32
    %185 = vector.extract_strided_slice %10 {offsets = [9, 0], sizes = [1, 128], strides = [1, 1]} : vector<128x128xf32> to vector<1x128xf32>
    %186 = vector.broadcast %184 : f32 to vector<1x128xf32>
    %187 = arith.mulf %186, %185 : vector<1x128xf32>
    %188 = arith.addf %182, %187 : vector<1x128xf32>
    %c10 = arith.constant 10 : index
    %189 = memref.load %arg4[%c10] : memref<16xf32, #tpu.memory_space<smem>>
    %cst_42 = arith.constant 6.000000e-01 : f32
    %190 = arith.mulf %cst_42, %189 : f32
    %191 = vector.extract_strided_slice %10 {offsets = [10, 0], sizes = [1, 128], strides = [1, 1]} : vector<128x128xf32> to vector<1x128xf32>
    %192 = vector.broadcast %190 : f32 to vector<1x128xf32>
    %193 = arith.mulf %192, %191 : vector<1x128xf32>
    %194 = arith.addf %188, %193 : vector<1x128xf32>
    %c11 = arith.constant 11 : index
    %195 = memref.load %arg4[%c11] : memref<16xf32, #tpu.memory_space<smem>>
    %cst_43 = arith.constant 6.000000e-01 : f32
    %196 = arith.mulf %cst_43, %195 : f32
    %197 = vector.extract_strided_slice %10 {offsets = [11, 0], sizes = [1, 128], strides = [1, 1]} : vector<128x128xf32> to vector<1x128xf32>
    %198 = vector.broadcast %196 : f32 to vector<1x128xf32>
    %199 = arith.mulf %198, %197 : vector<1x128xf32>
    %200 = arith.addf %194, %199 : vector<1x128xf32>
    %c12 = arith.constant 12 : index
    %201 = memref.load %arg4[%c12] : memref<16xf32, #tpu.memory_space<smem>>
    %cst_44 = arith.constant 6.000000e-01 : f32
    %202 = arith.mulf %cst_44, %201 : f32
    %203 = vector.extract_strided_slice %10 {offsets = [12, 0], sizes = [1, 128], strides = [1, 1]} : vector<128x128xf32> to vector<1x128xf32>
    %204 = vector.broadcast %202 : f32 to vector<1x128xf32>
    %205 = arith.mulf %204, %203 : vector<1x128xf32>
    %206 = arith.addf %200, %205 : vector<1x128xf32>
    %c13 = arith.constant 13 : index
    %207 = memref.load %arg4[%c13] : memref<16xf32, #tpu.memory_space<smem>>
    %cst_45 = arith.constant 6.000000e-01 : f32
    %208 = arith.mulf %cst_45, %207 : f32
    %209 = vector.extract_strided_slice %10 {offsets = [13, 0], sizes = [1, 128], strides = [1, 1]} : vector<128x128xf32> to vector<1x128xf32>
    %210 = vector.broadcast %208 : f32 to vector<1x128xf32>
    %211 = arith.mulf %210, %209 : vector<1x128xf32>
    %212 = arith.addf %206, %211 : vector<1x128xf32>
    %c14 = arith.constant 14 : index
    %213 = memref.load %arg4[%c14] : memref<16xf32, #tpu.memory_space<smem>>
    %cst_46 = arith.constant 6.000000e-01 : f32
    %214 = arith.mulf %cst_46, %213 : f32
    %215 = vector.extract_strided_slice %10 {offsets = [14, 0], sizes = [1, 128], strides = [1, 1]} : vector<128x128xf32> to vector<1x128xf32>
    %216 = vector.broadcast %214 : f32 to vector<1x128xf32>
    %217 = arith.mulf %216, %215 : vector<1x128xf32>
    %218 = arith.addf %212, %217 : vector<1x128xf32>
    %c15 = arith.constant 15 : index
    %219 = memref.load %arg4[%c15] : memref<16xf32, #tpu.memory_space<smem>>
    %cst_47 = arith.constant 6.000000e-01 : f32
    %220 = arith.mulf %cst_47, %219 : f32
    %221 = vector.extract_strided_slice %10 {offsets = [15, 0], sizes = [1, 128], strides = [1, 1]} : vector<128x128xf32> to vector<1x128xf32>
    %222 = vector.broadcast %220 : f32 to vector<1x128xf32>
    %223 = arith.mulf %222, %221 : vector<1x128xf32>
    %224 = arith.addf %218, %223 : vector<1x128xf32>
    %225 = arith.extf %13 : vector<128x128xbf16> to vector<128x128xf32>
    %226 = vector.broadcast %224 : vector<1x128xf32> to vector<128x128xf32>
    %227 = arith.addf %225, %226 : vector<128x128xf32>
    %c8_48 = arith.constant 8 : index
    %228 = memref.load %arg4[%c8_48] : memref<16xf32, #tpu.memory_space<smem>>
    %cst_49 = arith.constant 4.000000e-01 : f32
    %229 = arith.mulf %cst_49, %228 : f32
    %230 = vector.extract_strided_slice %12 {offsets = [0, 24], sizes = [128, 1], strides = [1, 1]} : vector<128x128xf32> to vector<128x1xf32>
    %231 = vector.extract_strided_slice %10 {offsets = [8, 0], sizes = [1, 128], strides = [1, 1]} : vector<128x128xf32> to vector<1x128xf32>
    %232 = vector.broadcast %230 : vector<128x1xf32> to vector<128x128xf32>
    %233 = vector.broadcast %231 : vector<1x128xf32> to vector<128x128xf32>
    %234 = arith.addf %232, %233 : vector<128x128xf32>
    %235 = math.absf %234 : vector<128x128xf32>
    %236 = vector.broadcast %229 : f32 to vector<128x128xf32>
    %237 = arith.mulf %236, %235 : vector<128x128xf32>
    %238 = arith.addf %227, %237 : vector<128x128xf32>
    %c9_50 = arith.constant 9 : index
    %239 = memref.load %arg4[%c9_50] : memref<16xf32, #tpu.memory_space<smem>>
    %cst_51 = arith.constant 4.000000e-01 : f32
    %240 = arith.mulf %cst_51, %239 : f32
    %241 = vector.extract_strided_slice %12 {offsets = [0, 25], sizes = [128, 1], strides = [1, 1]} : vector<128x128xf32> to vector<128x1xf32>
    %242 = vector.extract_strided_slice %10 {offsets = [9, 0], sizes = [1, 128], strides = [1, 1]} : vector<128x128xf32> to vector<1x128xf32>
    %243 = vector.broadcast %241 : vector<128x1xf32> to vector<128x128xf32>
    %244 = vector.broadcast %242 : vector<1x128xf32> to vector<128x128xf32>
    %245 = arith.addf %243, %244 : vector<128x128xf32>
    %246 = math.absf %245 : vector<128x128xf32>
    %247 = vector.broadcast %240 : f32 to vector<128x128xf32>
    %248 = arith.mulf %247, %246 : vector<128x128xf32>
    %249 = arith.addf %238, %248 : vector<128x128xf32>
    %c10_52 = arith.constant 10 : index
    %250 = memref.load %arg4[%c10_52] : memref<16xf32, #tpu.memory_space<smem>>
    %cst_53 = arith.constant 4.000000e-01 : f32
    %251 = arith.mulf %cst_53, %250 : f32
    %252 = vector.extract_strided_slice %12 {offsets = [0, 26], sizes = [128, 1], strides = [1, 1]} : vector<128x128xf32> to vector<128x1xf32>
    %253 = vector.extract_strided_slice %10 {offsets = [10, 0], sizes = [1, 128], strides = [1, 1]} : vector<128x128xf32> to vector<1x128xf32>
    %254 = vector.broadcast %252 : vector<128x1xf32> to vector<128x128xf32>
    %255 = vector.broadcast %253 : vector<1x128xf32> to vector<128x128xf32>
    %256 = arith.addf %254, %255 : vector<128x128xf32>
    %257 = math.absf %256 : vector<128x128xf32>
    %258 = vector.broadcast %251 : f32 to vector<128x128xf32>
    %259 = arith.mulf %258, %257 : vector<128x128xf32>
    %260 = arith.addf %249, %259 : vector<128x128xf32>
    %c11_54 = arith.constant 11 : index
    %261 = memref.load %arg4[%c11_54] : memref<16xf32, #tpu.memory_space<smem>>
    %cst_55 = arith.constant 4.000000e-01 : f32
    %262 = arith.mulf %cst_55, %261 : f32
    %263 = vector.extract_strided_slice %12 {offsets = [0, 27], sizes = [128, 1], strides = [1, 1]} : vector<128x128xf32> to vector<128x1xf32>
    %264 = vector.extract_strided_slice %10 {offsets = [11, 0], sizes = [1, 128], strides = [1, 1]} : vector<128x128xf32> to vector<1x128xf32>
    %265 = vector.broadcast %263 : vector<128x1xf32> to vector<128x128xf32>
    %266 = vector.broadcast %264 : vector<1x128xf32> to vector<128x128xf32>
    %267 = arith.addf %265, %266 : vector<128x128xf32>
    %268 = math.absf %267 : vector<128x128xf32>
    %269 = vector.broadcast %262 : f32 to vector<128x128xf32>
    %270 = arith.mulf %269, %268 : vector<128x128xf32>
    %271 = arith.addf %260, %270 : vector<128x128xf32>
    %c12_56 = arith.constant 12 : index
    %272 = memref.load %arg4[%c12_56] : memref<16xf32, #tpu.memory_space<smem>>
    %cst_57 = arith.constant 4.000000e-01 : f32
    %273 = arith.mulf %cst_57, %272 : f32
    %274 = vector.extract_strided_slice %12 {offsets = [0, 28], sizes = [128, 1], strides = [1, 1]} : vector<128x128xf32> to vector<128x1xf32>
    %275 = vector.extract_strided_slice %10 {offsets = [12, 0], sizes = [1, 128], strides = [1, 1]} : vector<128x128xf32> to vector<1x128xf32>
    %276 = vector.broadcast %274 : vector<128x1xf32> to vector<128x128xf32>
    %277 = vector.broadcast %275 : vector<1x128xf32> to vector<128x128xf32>
    %278 = arith.addf %276, %277 : vector<128x128xf32>
    %279 = math.absf %278 : vector<128x128xf32>
    %280 = vector.broadcast %273 : f32 to vector<128x128xf32>
    %281 = arith.mulf %280, %279 : vector<128x128xf32>
    %282 = arith.addf %271, %281 : vector<128x128xf32>
    %c13_58 = arith.constant 13 : index
    %283 = memref.load %arg4[%c13_58] : memref<16xf32, #tpu.memory_space<smem>>
    %cst_59 = arith.constant 4.000000e-01 : f32
    %284 = arith.mulf %cst_59, %283 : f32
    %285 = vector.extract_strided_slice %12 {offsets = [0, 29], sizes = [128, 1], strides = [1, 1]} : vector<128x128xf32> to vector<128x1xf32>
    %286 = vector.extract_strided_slice %10 {offsets = [13, 0], sizes = [1, 128], strides = [1, 1]} : vector<128x128xf32> to vector<1x128xf32>
    %287 = vector.broadcast %285 : vector<128x1xf32> to vector<128x128xf32>
    %288 = vector.broadcast %286 : vector<1x128xf32> to vector<128x128xf32>
    %289 = arith.addf %287, %288 : vector<128x128xf32>
    %290 = math.absf %289 : vector<128x128xf32>
    %291 = vector.broadcast %284 : f32 to vector<128x128xf32>
    %292 = arith.mulf %291, %290 : vector<128x128xf32>
    %293 = arith.addf %282, %292 : vector<128x128xf32>
    %c14_60 = arith.constant 14 : index
    %294 = memref.load %arg4[%c14_60] : memref<16xf32, #tpu.memory_space<smem>>
    %cst_61 = arith.constant 4.000000e-01 : f32
    %295 = arith.mulf %cst_61, %294 : f32
    %296 = vector.extract_strided_slice %12 {offsets = [0, 30], sizes = [128, 1], strides = [1, 1]} : vector<128x128xf32> to vector<128x1xf32>
    %297 = vector.extract_strided_slice %10 {offsets = [14, 0], sizes = [1, 128], strides = [1, 1]} : vector<128x128xf32> to vector<1x128xf32>
    %298 = vector.broadcast %296 : vector<128x1xf32> to vector<128x128xf32>
    %299 = vector.broadcast %297 : vector<1x128xf32> to vector<128x128xf32>
    %300 = arith.addf %298, %299 : vector<128x128xf32>
    %301 = math.absf %300 : vector<128x128xf32>
    %302 = vector.broadcast %295 : f32 to vector<128x128xf32>
    %303 = arith.mulf %302, %301 : vector<128x128xf32>
    %304 = arith.addf %293, %303 : vector<128x128xf32>
    %c15_62 = arith.constant 15 : index
    %305 = memref.load %arg4[%c15_62] : memref<16xf32, #tpu.memory_space<smem>>
    %cst_63 = arith.constant 4.000000e-01 : f32
    %306 = arith.mulf %cst_63, %305 : f32
    %307 = vector.extract_strided_slice %12 {offsets = [0, 31], sizes = [128, 1], strides = [1, 1]} : vector<128x128xf32> to vector<128x1xf32>
    %308 = vector.extract_strided_slice %10 {offsets = [15, 0], sizes = [1, 128], strides = [1, 1]} : vector<128x128xf32> to vector<1x128xf32>
    %309 = vector.broadcast %307 : vector<128x1xf32> to vector<128x128xf32>
    %310 = vector.broadcast %308 : vector<1x128xf32> to vector<128x128xf32>
    %311 = arith.addf %309, %310 : vector<128x128xf32>
    %312 = math.absf %311 : vector<128x128xf32>
    %313 = vector.broadcast %306 : f32 to vector<128x128xf32>
    %314 = arith.mulf %313, %312 : vector<128x128xf32>
    %315 = arith.addf %304, %314 : vector<128x128xf32>
    %cst_64 = arith.constant dense<0xFF800000> : vector<128xf32>
    %316 = vector.multi_reduction <maximumf>, %315, %cst_64 [1] : vector<128x128xf32> to vector<128xf32>
    %317 = vector.shape_cast %316 : vector<128xf32> to vector<128x1xf32>
    %318 = vector.broadcast %317 : vector<128x1xf32> to vector<128x128xf32>
    %319 = arith.subf %315, %318 : vector<128x128xf32>
    %320 = math.exp %319 : vector<128x128xf32>
    %cst_65 = arith.constant dense<0.000000e+00> : vector<128xf32>
    %321 = vector.multi_reduction <add>, %320, %cst_65 [1] : vector<128x128xf32> to vector<128xf32>
    %322 = vector.shape_cast %321 : vector<128xf32> to vector<128x1xf32>
    %323 = tpu.reciprocal %322 {approx = true} : vector<128x1xf32> -> vector<128x1xf32>
    %324 = vector.broadcast %323 : vector<128x1xf32> to vector<128x128xf32>
    %325 = arith.mulf %320, %324 : vector<128x128xf32>
    %326 = arith.truncf %325 : vector<128x128xf32> to vector<128x128xbf16>
    %c8_i32_66 = arith.constant 8 : i32
    %327 = vector.broadcast %c8_i32_66 : i32 to vector<1x128xi32>
    %328 = arith.cmpi sge, %14, %327 : vector<1x128xi32>
    %c16_i32 = arith.constant 16 : i32
    %329 = vector.broadcast %c16_i32 : i32 to vector<1x128xi32>
    %330 = arith.cmpi slt, %14, %329 : vector<1x128xi32>
    %331 = arith.andi %328, %330 : vector<1x128xi1>
    %cst_67 = arith.constant 0.000000e+00 : f32
    %332 = vector.shape_cast %331 : vector<1x128xi1> to vector<1x128xi1>
    %333 = vector.broadcast %332 : vector<1x128xi1> to vector<128x128xi1>
    %334 = vector.broadcast %cst_67 : f32 to vector<128x128xf32>
    %335 = arith.select %333, %8, %334 : vector<128x128xi1>, vector<128x128xf32>
    %336 = arith.truncf %335 : vector<128x128xf32> to vector<128x128xbf16>
    %337 = tpu.concatenate %165, %326 in 1 : vector<128x128xbf16>, vector<128x128xbf16> -> vector<128x256xbf16>
    %338 = tpu.concatenate %175, %336 in 0 : vector<128x128xbf16>, vector<128x128xbf16> -> vector<256x128xbf16>
    %cst_68 = arith.constant dense<0.000000e+00> : vector<128x128xf32>
    %339 = tpu.matmul %337, %338, %cst_68 {dimension_numbers = #tpu.dot_dimension_numbers<[1], [0], [0], [1], [0, 0, 1, 1], [], []>} : vector<128x256xbf16>, vector<256x128xbf16>, vector<128x128xf32> -> vector<128x128xf32>
    %c0_69 = arith.constant 0 : index
    %c0_70 = arith.constant 0 : index
    %340 = vector.load %arg5[%c0_69, %c0_70] : memref<1x128xf32, #tpu.memory_space<vmem>>, vector<1x128xf32>
    %341 = vector.broadcast %340 : vector<1x128xf32> to vector<128x128xf32>
    %342 = arith.addf %339, %341 : vector<128x128xf32>
    %c0_71 = arith.constant 0 : index
    %c0_72 = arith.constant 0 : index
    %343 = vector.load %arg10[%c0_71, %c0_72] : memref<1x128xf32, #tpu.memory_space<vmem>>, vector<1x128xf32>
    %cst_73 = arith.constant 9.99999974E-6 : f32
    %344 = vector.broadcast %cst_73 : f32 to vector<1x128xf32>
    %345 = arith.addf %343, %344 : vector<1x128xf32>
    %346 = math.rsqrt %345 : vector<1x128xf32>
    %cst_74 = arith.constant dense<0.000000e+00> : vector<128xf32>
    %347 = vector.multi_reduction <add>, %342, %cst_74 [1] : vector<128x128xf32> to vector<128xf32>
    %348 = vector.shape_cast %347 : vector<128xf32> to vector<128x1xf32>
    %cst_75 = arith.constant 6.250000e-02 : f32
    %349 = vector.broadcast %cst_75 : f32 to vector<128x1xf32>
    %350 = arith.mulf %348, %349 : vector<128x1xf32>
    %c0_76 = arith.constant 0 : index
    %351 = memref.load %arg11[%c0_76] : memref<1xf32, #tpu.memory_space<smem>>
    %352 = vector.broadcast %351 : f32 to vector<128x1xf32>
    %353 = arith.mulf %352, %350 : vector<128x1xf32>
    %354 = arith.negf %353 : vector<128x1xf32>
    %355 = math.exp %354 : vector<128x1xf32>
    %cst_77 = arith.constant 1.000000e+00 : f32
    %356 = vector.broadcast %cst_77 : f32 to vector<128x1xf32>
    %357 = arith.addf %356, %355 : vector<128x1xf32>
    %358 = arith.divf %356, %357 : vector<128x1xf32>
    %cst_78 = arith.constant 1.000000e+00 : f32
    %359 = vector.broadcast %cst_78 : f32 to vector<128x1xf32>
    %360 = arith.addf %359, %358 : vector<128x1xf32>
    %361 = vector.broadcast %360 : vector<128x1xf32> to vector<128x128xf32>
    %362 = arith.mulf %342, %361 : vector<128x128xf32>
    %c0_79 = arith.constant 0 : index
    %c0_80 = arith.constant 0 : index
    %363 = vector.load %arg9[%c0_79, %c0_80] : memref<1x128xf32, #tpu.memory_space<vmem>>, vector<1x128xf32>
    %364 = vector.broadcast %363 : vector<1x128xf32> to vector<128x128xf32>
    %365 = arith.subf %362, %364 : vector<128x128xf32>
    %366 = vector.broadcast %346 : vector<1x128xf32> to vector<128x128xf32>
    %367 = arith.mulf %365, %366 : vector<128x128xf32>
    %c0_81 = arith.constant 0 : index
    %c0_82 = arith.constant 0 : index
    %368 = vector.load %arg7[%c0_81, %c0_82] : memref<1x128xf32, #tpu.memory_space<vmem>>, vector<1x128xf32>
    %369 = vector.broadcast %368 : vector<1x128xf32> to vector<128x128xf32>
    %370 = arith.mulf %367, %369 : vector<128x128xf32>
    %c0_83 = arith.constant 0 : index
    %c0_84 = arith.constant 0 : index
    %371 = vector.load %arg8[%c0_83, %c0_84] : memref<1x128xf32, #tpu.memory_space<vmem>>, vector<1x128xf32>
    %372 = vector.broadcast %371 : vector<1x128xf32> to vector<128x128xf32>
    %373 = arith.addf %370, %372 : vector<128x128xf32>
    %cst_85 = arith.constant 0.000000e+00 : f32
    %374 = vector.broadcast %cst_85 : f32 to vector<128x128xf32>
    %375 = arith.cmpf ogt, %373, %374 : vector<128x128xf32>
    %cst_86 = arith.constant 0.000000e+00 : f32
    %376 = vector.broadcast %cst_86 : f32 to vector<128x128xf32>
    %377 = arith.minimumf %373, %376 : vector<128x128xf32>
    %378 = math.exp %377 : vector<128x128xf32>
    %cst_87 = arith.constant 1.000000e+00 : f32
    %379 = vector.broadcast %cst_87 : f32 to vector<128x128xf32>
    %380 = arith.subf %378, %379 : vector<128x128xf32>
    %381 = arith.select %375, %373, %380 : vector<128x128xi1>, vector<128x128xf32>
    %c0_88 = arith.constant 0 : index
    %c0_89 = arith.constant 0 : index
    %382 = vector.load %arg12[%c0_88, %c0_89] : memref<128x128xf32, #tpu.memory_space<vmem>>, vector<128x128xf32>
    tpu.vector_store %arg12[%c0_88, %c0_89], %381 {strides = array<i32>} : memref<128x128xf32, #tpu.memory_space<vmem>>, vector<128x128xf32>,
    return
  }
  func.func @transform_0(%arg0: i32) -> (i32, i32) {
    %c0_i32 = arith.constant 0 : i32
    %c0_i32_0 = arith.constant 0 : i32
    %c0_i32_1 = arith.constant 0 : i32
    return %c0_i32, %c0_i32_0 : i32, i32
  }
  func.func @transform_1(%arg0: i32) -> (i32, i32) {
    %c0_i32 = arith.constant 0 : i32
    %c0_i32_0 = arith.constant 0 : i32
    %c0_i32_1 = arith.constant 0 : i32
    return %c0_i32, %c0_i32_0 : i32, i32
  }
  func.func @transform_2(%arg0: i32) -> (i32, i32) {
    %c0_i32 = arith.constant 0 : i32
    %c0_i32_0 = arith.constant 0 : i32
    %c0_i32_1 = arith.constant 0 : i32
    return %c0_i32, %c0_i32_0 : i32, i32
  }
  func.func @transform_3(%arg0: i32) -> i32 {
    %c0_i32 = arith.constant 0 : i32
    %c0_i32_0 = arith.constant 0 : i32
    return %c0_i32 : i32
  }
  func.func @transform_4(%arg0: i32) -> (i32, i32) {
    %c0_i32 = arith.constant 0 : i32
    %c0_i32_0 = arith.constant 0 : i32
    %c0_i32_1 = arith.constant 0 : i32
    return %c0_i32, %c0_i32_0 : i32, i32
  }
  func.func @transform_5(%arg0: i32) -> (i32, i32) {
    %c0_i32 = arith.constant 0 : i32
    %c0_i32_0 = arith.constant 0 : i32
    return %arg0, %c0_i32 : i32, i32
  }
  func.func @transform_6(%arg0: i32) -> (i32, i32) {
    %c0_i32 = arith.constant 0 : i32
    %c0_i32_0 = arith.constant 0 : i32
    %c0_i32_1 = arith.constant 0 : i32
    return %c0_i32, %c0_i32_0 : i32, i32
  }
  func.func @transform_7(%arg0: i32) -> (i32, i32) {
    %c0_i32 = arith.constant 0 : i32
    %c0_i32_0 = arith.constant 0 : i32
    %c0_i32_1 = arith.constant 0 : i32
    return %c0_i32, %c0_i32_0 : i32, i32
  }
  func.func @transform_8(%arg0: i32) -> (i32, i32) {
    %c0_i32 = arith.constant 0 : i32
    %c0_i32_0 = arith.constant 0 : i32
    %c0_i32_1 = arith.constant 0 : i32
    return %c0_i32, %c0_i32_0 : i32, i32
  }
  func.func @transform_9(%arg0: i32) -> (i32, i32) {
    %c0_i32 = arith.constant 0 : i32
    %c0_i32_0 = arith.constant 0 : i32
    %c0_i32_1 = arith.constant 0 : i32
    return %c0_i32, %c0_i32_0 : i32, i32
  }
  func.func @transform_10(%arg0: i32) -> i32 {
    %c0_i32 = arith.constant 0 : i32
    %c0_i32_0 = arith.constant 0 : i32
    return %c0_i32 : i32
  }
  func.func @transform_11(%arg0: i32) -> (i32, i32) {
    %c0_i32 = arith.constant 0 : i32
    %c0_i32_0 = arith.constant 0 : i32
    return %arg0, %c0_i32 : i32, i32
  }
}

</mosaic_0001>

<bundles_post_ra>
// kernel: tpu_custom_call.1
= control target key start
LH: loop header
LB: loop body
LE: loop exit
PB: predicated region body
PF: predicated region fallthrough
CT: control target
= control target key end

     0   :  { %17 = vsyncpa [#allocation5], 0  ;;  %s7200_s0 = inlined_call_operand.hbm [shape: f32[128,128], index: 0, kind: input, shape index: {}]   ;;  %s7201_s1 = inlined_call_operand.hbm [shape: bf16[128,128], index: 1, kind: input, shape index: {}]   ;;  %s7202_s2 = inlined_call_operand.vmem [shape: f32[1,128], index: 2, kind: input, shape index: {}]   ;;  %s7203_s3 = inlined_call_operand.vmem [shape: f32[16], index: 3, kind: input, shape index: {}]   ;;  %s7204_s4 = inlined_call_operand.vmem [shape: f32[1,128], index: 4, kind: input, shape index: {}]   ;;  %s7205_s5 = inlined_call_operand.hbm [shape: bf16[128,128], index: 5, kind: input, shape index: {}]   ;;  %s7206_s6 = inlined_call_operand.vmem [shape: f32[1,128], index: 6, kind: input, shape index: {}]   ;;  %s7207_s7 = inlined_call_operand.vmem [shape: f32[1,128], index: 7, kind: input, shape index: {}]   ;;  %s7208_s8 = inlined_call_operand.vmem [shape: f32[1,128], index: 8, kind: input, shape index: {}]   ;;  %s7209_s9 = inlined_call_operand.vmem [shape: f32[1,128], index: 9, kind: input, shape index: {}]   ;;  %s7210_s10 = inlined_call_operand.<no memory space> [shape: f32[1], index: 10, kind: input, shape index: {}]   ;;  %s7211_s11 = inlined_call_operand.hbm [shape: f32[128,128], index: 11, kind: output, shape index: {}]  }
   0x1   :  { %18 = vsyncpa [#allocation9], 0 }
   0x2   :  { %19 = vsyncpa [#allocation7], 0 }
   0x3   :  { %20 = vsyncpa [#allocation6], 0  ;;  %s4391_s17 = smov [#allocation8]  }
   0x4   :  { %s38_s18 = sshll.u32 %s4391_s17, 4  ;;  %s39_s18 = int_to_ptr.vmem [resolvable:$true] %s38_s18 }
   0x5   :  { %s4297_s19 = scalar_lea.vmem %s39_s18, 1024  ;;  %p4302_p1 = scmp.lt.s32.totalorder %s39_s18, %s39_s18 }
   0x6   :  { %p4298_p0 = scmp.ne.s32.totalorder %s39_s18, %s4297_s19  ;;  %p4303_p2 = scmp.lt.s32.totalorder %s4297_s19, %s4297_s19 }
   0x8   :  { %p4304_p3 = por %p4303_p2, %p4302_p1 }
   0xa   :  { %p4305_p4 = pnand %p4304_p3, %p4298_p0 }
   0xc   :  { %4308 = shalt.err (!%p4305_p4)
}
   0xd   :  { %s4392_s20 = smov 64   ;;  %s4393_s21 = smov 4  }
   0xe   :  { %44 = dma.hbm_to_vmem [thread:$0]  %s7201_s1, 1024, %s39_s18, [#allocation9], %s4392_s20, %s4392_s20, %s4393_s21  }
   0xf   :  { %s4394_s24 = smov [#allocation4]  }
  0x10   :  { %s26_s25 = sshll.u32 %s4394_s24, 4  ;;  %s27_s25 = int_to_ptr.vmem [resolvable:$true] %s26_s25 }
  0x11   :  { %s4317_s26 = scalar_lea.vmem %s27_s25, 2048  ;;  %p4322_p6 = scmp.lt.s32.totalorder %s27_s25, %s27_s25 }
  0x12   :  { %p4318_p5 = scmp.ne.s32.totalorder %s27_s25, %s4317_s26  ;;  %p4323_p7 = scmp.lt.s32.totalorder %s4317_s26, %s4317_s26 }
  0x14   :  { %p4324_p8 = por %p4323_p7, %p4322_p6 }
  0x16   :  { %p4325_p9 = pnand %p4324_p8, %p4318_p5 }
  0x18   :  { %4328 = shalt.err (!%p4325_p9)
}
  0x19   :  { %s4395_s27 = smov 128   ;;  %s4396_s28 = smov 8  }
  0x1a   :  { %32 = dma.hbm_to_vmem [thread:$0]  %s7200_s0, 2048, %s27_s25, [#allocation5], %s4395_s27, %s4395_s27, %s4396_s28  }
  0x1b   :  { %s53_s13 = sshll.u32 %s7203_s3, 4  ;;  %s54_s13 = int_to_ptr.vmem [resolvable:$true] %s53_s13 }
  0x1c   :  { %s4329_s14 = scalar_lea.vmem %s54_s13, 16  ;;  %p4334_p11 = scmp.lt.s32.totalorder %s54_s13, %s54_s13 }
  0x1d   :  { %p4330_p10 = scmp.ne.s32.totalorder %s54_s13, %s4329_s14  ;;  %p4335_p12 = scmp.lt.s32.totalorder %s4329_s14, %s4329_s14 }
  0x1f   :  { %p4336_p13 = por %p4335_p12, %p4334_p11 }
  0x21   :  { %p4337_p0 = pnand %p4336_p13, %p4330_p10 }
  0x23   :  { %4340 = shalt.err (!%p4337_p0)
}
  0x24   :  { %s4397_s15 = smov [#allocation10]   ;;  %s4398_s16 = smov [#allocation11]  }
  0x25   :  { %56 = dma.vmem_to_smem %s54_s13, 16, %s4397_s15, [#allocation7]  }
  0x26   :  { %s64_s17 = sshll.u32 %s4398_s16, 4  ;;  %s65_s17 = int_to_ptr.vmem [resolvable:$true] %s64_s17 }
  0x27   :  { %s4349_s18 = scalar_lea.vmem %s65_s17, 1024  ;;  %p4354_p2 = scmp.lt.s32.totalorder %s65_s17, %s65_s17 }
  0x28   :  { %p4350_p1 = scmp.ne.s32.totalorder %s65_s17, %s4349_s18  ;;  %p4355_p3 = scmp.lt.s32.totalorder %s4349_s18, %s4349_s18 }
  0x2a   :  { %p4356_p4 = por %p4355_p3, %p4354_p2 }
  0x2c   :  { %p4357_p5 = pnand %p4356_p4, %p4350_p1 }
  0x2e   :  { %4360 = shalt.err (!%p4357_p5)
}
  0x2f   :  { %70 = dma.hbm_to_vmem [thread:$0]  %s7205_s5, 1024, %s65_s17, [#allocation9], %s4392_s20, %s4392_s20, %s4393_s21  }
  0x30   :  { %4381 = dma.done.wait [#allocation5], 2048  }
  0x31   :  { %4382 = vsyncadd [#allocation5], 4294965248 }
  0x32   :  { %4383 = dma.done.wait [#allocation9], 1024  }
  0x33   :  { %4384 = vsyncadd [#allocation9], 4294966272 }
  0x34   :  { %4385 = dma.done.wait [#allocation7], 16  }
  0x35   :  { %4386 = vsyncadd [#allocation7], 4294967280 }
  0x36   :  { %4387 = dma.done.wait [#allocation9], 1024  }
  0x37   :  { %4388 = vsyncadd [#allocation9], 4294966272 }
  0x38   :  { %93 = sfence }
  0x39   :  { %v4055_v0 = vld [vmem:[#allocation8 + $0x38] sm:$0xff]   ;;  %v4056_v1 = vld [vmem:[#allocation8 + $0x30] sm:$0xff]   ;;  %v4057_v2 = vld [vmem:[#allocation8 + $0x28] sm:$0xff]   ;;  %v7220_v32 = vmov 16   ;;  %v7222_v33 = vmov 17   ;;  %v7218_v42 = vmov 18   ;;  %v7212_v48 = vlaneseq }
  0x3a   :  { %3821 = vmatprep.subr.bf16.mxu0 %v4055_v0  ;;  %v4058_v3 = vld [vmem:[#allocation8 + $0x20] sm:$0xff]   ;;  %v97_v5 = vld [vmem:[#allocation4 + $0x8] sm:$0xff]  ;;  %v4059_v7 = vld [vmem:[#allocation8 + $0x18] sm:$0xff]   ;;  %3894 = vset.pattern.permute.xlu1 %v7220_v32  ;;  %v7216_v46 = vmov 20   ;;  %v7224_v49 = vmov 19   ;;  %v7226_v58 = vmov 21  }
  0x3b   :  { %3822 = vmatpush3.bf16.msra.mxu0 %v4055_v0  ;;  %v96_v4 = vld [vmem:[#allocation4] sm:$0xff]  ;;  %v4060_v8 = vld [vmem:[#allocation8 + $0x10] sm:$0xff]   ;;  %v4061_v9 = vld [vmem:[#allocation8 + $0x8] sm:$0xff]   ;;  %3902 = vset.pattern.permute.xlu0 %v7222_v33  ;;  %v370_v53 = vand.u32 127, %v7212_v48  ;;  %s5054_s20 = sld [smem:[#allocation10]] }
  0x3c   :  { %3823 = vmatprep.subr.bf16.mxu0 %v4056_v1  ;;  %v112_v6 = vpack.c.bf16 %v97_v5, %v96_v4  ;;  %v4062_v10 = vld [vmem:[#allocation8] sm:$0xff]   ;;  %v98_v11 = vld [vmem:[#allocation4 + $0x10] sm:$0xff]  ;;  %v99_v12 = vld [vmem:[#allocation4 + $0x18] sm:$0xff]  ;;  %s5057_s21 = sld [smem:[#allocation10 + $0x2]] }
  0x3d   :  { %v100_v13 = vld [vmem:[#allocation4 + $0x20] sm:$0xff]  ;;  %v101_v14 = vld [vmem:[#allocation4 + $0x28] sm:$0xff]  ;;  %v113_v15 = vpack.c.bf16 %v99_v12, %v98_v11  ;;  %v102_v17 = vld [vmem:[#allocation4 + $0x30] sm:$0xff]  ;;  %vm3042_vm0 = vcmp.ge.s32.totalorder %v370_v53, 8  ;;  %vm3043_vm1 = vcmp.lt.s32.totalorder %v370_v53, 16  ;;  %vm1709_vm3 = vcmp.lt.s32.totalorder %v370_v53, 8 }
  0x3e   :  { %3837 = vmatprep.mubr.bf16.mxu0 %v112_v6  ;;  %v114_v16 = vpack.c.bf16 %v101_v14, %v100_v13  ;;  %v103_v18 = vld [vmem:[#allocation4 + $0x38] sm:$0xff]  ;;  %v104_v19 = vld [vmem:[#allocation4 + $0x40] sm:$0xff]  ;;  %v105_v20 = vld [vmem:[#allocation4 + $0x48] sm:$0xff]  ;;  %v7215_v6 = vmov 22   ;;  %s5061_s22 = sld [smem:[#allocation10 + $0x3]] }
  0x3f   :  { %3824 = vmatpush3.bf16.msra.mxu0 %v4056_v1  ;;  %v115_v21 = vpack.c.bf16 %v103_v18, %v102_v17  ;;  %v116_v22 = vpack.c.bf16 %v105_v20, %v104_v19  ;;  %v106_v23 = vld [vmem:[#allocation4 + $0x50] sm:$0xff]  ;;  %v107_v24 = vld [vmem:[#allocation4 + $0x58] sm:$0xff]  ;;  %v108_v25 = vld [vmem:[#allocation4 + $0x60] sm:$0xff]  ;;  %s5066_s23 = sld [smem:[#allocation10 + $0x4]] }
  0x40   :  { %3825 = vmatprep.subr.bf16.mxu0 %v4057_v2  ;;  %v109_v26 = vld [vmem:[#allocation4 + $0x68] sm:$0xff]  ;;  %v117_v27 = vpack.c.bf16 %v107_v24, %v106_v23  ;;  %v110_v29 = vld [vmem:[#allocation4 + $0x70] sm:$0xff]  ;;  %v111_v30 = vld [vmem:[#allocation4 + $0x78] sm:$0xff]  ;;  %s5074_s26 = sld [smem:[#allocation10 + $0x5]] }
  0x41   :  { %v118_v28 = vpack.c.bf16 %v109_v26, %v108_v25  ;;  %v119_v31 = vpack.c.bf16 %v111_v30, %v110_v29  ;;  %v4502_v34 = vld [vmem:[%s7202_s2] ss:$0 sm:$0xff]  ;;  %vm3044_vm2 = vmand %vm3042_vm0, %vm3043_vm1  ;;  %s5049_s2 = sld [smem:[#allocation10 + $0x1]]  ;;  %s372_s25 = smul.f32 0.6, %s5054_s20 }
  0x42   :  { %vm4556_vm4 = vmpackc.low %vm3044_vm2, %vm3044_vm2  ;;  %s385_s29 = smul.f32 0.6, %s5057_s21  ;;  %s5082_s1 = sld [smem:[#allocation10 + $0x6]] }
  0x43   :  { %3826 = vmatpush3.bf16.msra.mxu0 %v4057_v2  ;;  %vm4571_vm5 = vmpackc.low %vm1709_vm3, %vm1709_vm3  ;;  %s5092_s14 = sld [smem:[#allocation10 + $0x7]]  ;;  %s468_s17 = smul.f32 0.4, %s5054_s20 }
  0x44   :  { %3827 = vmatprep.subr.bf16.mxu0 %v4058_v3  ;;  %s393_s30 = smul.f32 0.6, %s5061_s22  ;;  %s6086_s20 = sld [smem:[#allocation10 + $0x9]] }
  0x45   :  { %s401_s12 = smul.f32 0.6, %s5066_s23 }
  0x46   :  { %s409_s13 = smul.f32 0.6, %s5074_s26 }
  0x47   :  { %3828 = vmatpush3.bf16.msra.mxu0 %v4058_v3  ;;  %s377_s24 = smul.f32 0.6, %s5049_s2 }
  0x48   :  { %3829 = vmatprep.subr.bf16.mxu0 %v4059_v7  ;;  %s417_s15 = smul.f32 0.6, %s5082_s1 }
  0x49   :  { %s425_s16 = smul.f32 0.6, %s5092_s14 }
  0x4a   :  { %s618_s18 = smul.f32 0.4, %s5049_s2 }
  0x4b   :  { %3830 = vmatpush3.bf16.msra.mxu0 %v4059_v7  ;;  %s752_s0 = smul.f32 0.4, %s5057_s21 }
  0x4c   :  { %3831 = vmatprep.subr.bf16.mxu0 %v4060_v8  ;;  %s886_s3 = smul.f32 0.4, %s5061_s22  ;;  %s6094_s22 = sld [smem:[#allocation10 + $0x8]] }
  0x4d   :  { %s1020_s5 = smul.f32 0.4, %s5066_s23  ;;  %s6096_s23 = sld [smem:[#allocation10 + $0xa]] }
  0x4e   :  { %s1154_s19 = smul.f32 0.4, %s5074_s26 }
  0x4f   :  { %3832 = vmatpush3.bf16.msra.mxu0 %v4060_v8  ;;  %s1288_s2 = smul.f32 0.4, %s5082_s1 }
  0x50   :  { %3833 = vmatprep.subr.bf16.mxu0 %v4061_v9  ;;  %s1422_s21 = smul.f32 0.4, %s5092_s14  ;;  %s6132_s14 = sld [smem:[#allocation10 + $0xe]] }
  0x52   :  { %s1738_s26 = smul.f32 0.6, %s6094_s22 }
  0x53   :  { %3834 = vmatpush3.bf16.msra.mxu0 %v4061_v9 }
  0x54   :  { %3835 = vmatprep.subr.bf16.mxu0 %v4062_v10 }
  0x57   :  { %3836 = vmatpush3.bf16.msra.mxu0 %v4062_v10 }
  0x5a   :  { %3838 = vmatmul.mubr.bf16.vlgmr.msra.gmra.mxu0 %v113_v15 }
  0x5b   :  { %3841 = vmatprep.mubr.bf16.mxu0 %v114_v16 }
  0x62   :  { %3842 = vmatmul.mubr.bf16.gmra.mxu0 %v115_v21 }
  0x63   :  { %3845 = vmatprep.mubr.bf16.mxu0 %v116_v22 }
  0x6a   :  { %3846 = vmatmul.mubr.bf16.gmra.mxu0 %v117_v27 }
  0x6b   :  { %3849 = vmatprep.mubr.bf16.mxu0 %v118_v28 }
  0x72   :  { %3850 = vmatmul.mubr.bf16.gmra.mxu0 %v119_v31 }
 0x11a   :  { %v3839_v35 = vpop.f32.mrf.mxu0 }
 0x11b   :  { %v4505_v36 = vadd.f32 %v3839_v35, %v4502_v34 }
 0x11c   :  { %v225_v37 = vpop.f32.mrf.mxu0 }
 0x11d   :  { %7332 = vst [vmem:[#allocation18_spill] sm:$0xff] %v4505_v36  ;;  %v4508_v38 = vadd.f32 %v4502_v34, %v225_v37  ;;  %481 = vperm.xlu1 %3894, %v4505_v36  }
 0x11e   :  { %v3840_v39 = vpop.f32.mrf.mxu0 }
 0x11f   :  { %7333 = vst [vmem:[#allocation19_spill] sm:$0xff] %v4508_v38  ;;  %620 = vperm.xlu0 %3902, %v4508_v38   ;;  %v4530_v50 = vadd.f32 %v3840_v39, %v4502_v34 }
 0x120   :  { %v228_v40 = vpop.f32.mrf.mxu0 }
 0x121   :  { %3895 = vset.pattern.permute.xlu1 %v7222_v33  ;;  %7334 = vst [vmem:[#allocation20_spill] sm:$0xff] %v4530_v50  ;;  %v4545_v59 = vadd.f32 %v4502_v34, %v228_v40  ;;  %v3638_v18 = vpack.c.bf16 %v4530_v50, %v4505_v36 }
 0x122   :  { %628 = vperm.xlu1 %3895, %v4505_v36   ;;  %v4514_v41 = vpop.f32.mrf.mxu0 }
 0x123   :  { %3903 = vset.pattern.permute.xlu0 %v7218_v42  ;;  %7336 = vst [vmem:[#allocation22_spill] sm:$0xff] %v4545_v59  ;;  %v4601_v11 = vadd.f32 %v4514_v41, %v4502_v34  ;;  %v3641_v19 = vpack.c.bf16 %v4545_v59, %v4508_v38 }
 0x124   :  { %v4517_v43 = vpop.f32.mrf.mxu0  ;;  %754 = vperm.xlu0 %3903, %v4508_v38  }
 0x125   :  { %7348 = vst [vmem:[#allocation30_spill] sm:$0xff] %v4601_v11  ;;  %v4631_v14 = vadd.f32 %v4502_v34, %v4517_v43  ;;  %v7213_v43 = vmov 23  }
 0x126   :  { %3896 = vset.pattern.permute.xlu1 %v7218_v42  ;;  %v4521_v44 = vpop.f32.mrf.mxu0 }
 0x127   :  { %762 = vperm.xlu1 %3896, %v4505_v36   ;;  %v4615_v12 = vadd.f32 %v4521_v44, %v4502_v34  ;;  %7350 = vst [vmem:[#allocation32_spill] sm:$0xff] %v4631_v14 }
 0x128   :  { %v4524_v45 = vpop.f32.mrf.mxu0  ;;  %3905 = vset.pattern.permute.xlu0 %v7216_v46 }
 0x129   :  { %1022 = vperm.xlu0 %3905, %v4508_v38   ;;  %7349 = vst [vmem:[#allocation31_spill] sm:$0xff] %v4615_v12  ;;  %v4635_v15 = vadd.f32 %v4502_v34, %v4524_v45  ;;  %v3632_v16 = vpack.c.bf16 %v4615_v12, %v4601_v11 }
 0x12a   :  { %v3847_v47 = vpop.f32.mrf.mxu0 }
 0x12b   :  { %3897 = vset.pattern.permute.xlu1 %v7224_v49  ;;  %v4561_v1 = vadd.f32 %v3847_v47, %v4502_v34  ;;  %7351 = vst [vmem:[#allocation33_spill] sm:$0xff] %v4635_v15  ;;  %v3635_v17 = vpack.c.bf16 %v4635_v15, %v4631_v14 }
 0x12c   :  { %896 = vperm.xlu1 %3897, %v4505_v36   ;;  %v257_v51 = vpop.f32.mrf.mxu0 }
 0x12d   :  { %3909 = vset.pattern.permute.xlu0 %v7218_v42  ;;  %7341 = vst [vmem:[#allocation25_spill] sm:$0xff] %v4561_v1  ;;  %v4591_v9 = vadd.f32 %v4502_v34, %v257_v51 }
 0x12e   :  { %v3848_v52 = vpop.f32.mrf.mxu0  ;;  %766 = vperm.xlu0 %3909, %v4530_v50  }
 0x12f   :  { %v4564_v2 = vadd.f32 %v3848_v52, %v4502_v34  ;;  %7346 = vst [vmem:[#allocation28_spill] sm:$0xff] %v4591_v9 }
 0x130   :  { %3898 = vset.pattern.permute.xlu1 %v7216_v46  ;;  %v260_v54 = vpop.f32.mrf.mxu0 }
 0x131   :  { %1030 = vperm.xlu1 %3898, %v4505_v36   ;;  %7342 = vst [vmem:[#allocation26_spill] sm:$0xff] %v4564_v2  ;;  %v3626_v8 = vpack.c.bf16 %v4564_v2, %v4561_v1  ;;  %v4594_v10 = vadd.f32 %v4502_v34, %v260_v54 }
 0x132   :  { %v3851_v55 = vpop.f32.mrf.mxu0  ;;  %3911 = vset.pattern.permute.xlu0 %v7216_v46 }
 0x133   :  { %1034 = vperm.xlu0 %3911, %v4530_v50   ;;  %v4541_v57 = vadd.f32 %v3851_v55, %v4502_v34  ;;  %7347 = vst [vmem:[#allocation29_spill] sm:$0xff] %v4594_v10  ;;  %v3629_v13 = vpack.c.bf16 %v4594_v10, %v4591_v9 }
 0x134   :  { %v273_v56 = vpop.f32.mrf.mxu0 }
 0x135   :  { %7335 = vst [vmem:[#allocation21_spill] sm:$0xff] %v4541_v57  ;;  %3899 = vset.pattern.permute.xlu1 %v7226_v58  ;;  %v4549_v61 = vadd.f32 %v4502_v34, %v273_v56 }
 0x136   :  { %1164 = vperm.xlu1 %3899, %v4505_v36   ;;  %v3852_v60 = vpop.f32.mrf.mxu0 }
 0x137   :  { %7337 = vst [vmem:[#allocation23_spill] sm:$0xff] %v4549_v61  ;;  %v4552_v62 = vadd.f32 %v3852_v60, %v4502_v34  ;;  %3916 = vset.pattern.permute.xlu0 %v7224_v49 }
 0x138   :  { %892 = vperm.xlu0 %3916, %v4545_v59   ;;  %v276_v63 = vpop.f32.mrf.mxu0 }
 0x139   :  { %7338 = vst [vmem:[#allocation24_spill] sm:$0xff] %v4552_v62  ;;  %v4567_v3 = vadd.f32 %v4502_v34, %v276_v63  ;;  %v3620_v4 = vpack.c.bf16 %v4552_v62, %v4541_v57 }
 0x13a   :  { %3900 = vset.pattern.permute.xlu1 %v7215_v6 }
 0x13b   :  { %7343 = vst [vmem:[#allocation27_spill] sm:$0xff] %v4567_v3  ;;  %1298 = vperm.xlu1 %3900, %v4505_v36   ;;  %3757 = vmatprep.subr.msk.bf16.mxu0 %vm4556_vm4, %v3620_v4  ;;  %v3623_v7 = vpack.c.bf16 %v4567_v3, %v4549_v61 }
 0x13c   :  { %3853 = vmatprep.subr.msk.bf16.mxu1 %vm4556_vm4, %v3620_v4  ;;  %3758 = vmatpush3.bf16.msk.msra.mxu0 %vm4571_vm5, %v3620_v4 }
 0x13d   :  { %3861 = vmatpush3.bf16.msk.msra.mxu1 %vm4571_vm5, %v3620_v4  ;;  %3918 = vset.pattern.permute.xlu0 %v7226_v58 }
 0x13e   :  { %1160 = vperm.xlu0 %3918, %v4545_v59   ;;  %3759 = vmatprep.subr.msk.bf16.mxu0 %vm4556_vm4, %v3623_v7 }
 0x13f   :  { %3901 = vset.pattern.permute.xlu1 %v7220_v32  ;;  %3854 = vmatprep.subr.msk.bf16.mxu1 %vm4556_vm4, %v3623_v7 }
 0x140   :  { %3760 = vmatpush3.bf16.msk.msra.mxu0 %vm4571_vm5, %v3623_v7  ;;  %471 = vperm.xlu1 %3901, %v4508_v38  }
 0x141   :  { %3862 = vmatpush3.bf16.msk.msra.mxu1 %vm4571_vm5, %v3623_v7  ;;  %3761 = vmatprep.subr.msk.bf16.mxu0 %vm4556_vm4, %v3626_v8 }
 0x142   :  { %3923 = vset.pattern.permute.xlu0 %v7224_v49  ;;  %3855 = vmatprep.subr.msk.bf16.mxu1 %vm4556_vm4, %v3626_v8 }
 0x143   :  { %912 = vperm.xlu0 %3923, %v4601_v11  }
 0x144   :  { %3762 = vmatpush3.bf16.msk.msra.mxu0 %vm4571_vm5, %v3626_v8  ;;  %3904 = vset.pattern.permute.xlu1 %v7224_v49 }
 0x145   :  { %3863 = vmatpush3.bf16.msk.msra.mxu1 %vm4571_vm5, %v3626_v8  ;;  %888 = vperm.xlu1 %3904, %v4508_v38  }
 0x146   :  { %3763 = vmatprep.subr.msk.bf16.mxu0 %vm4556_vm4, %v3629_v13  ;;  %3856 = vmatprep.subr.msk.bf16.mxu1 %vm4556_vm4, %v3629_v13 }
 0x147   :  { %3925 = vset.pattern.permute.xlu0 %v7226_v58 }
 0x148   :  { %1180 = vperm.xlu0 %3925, %v4601_v11   ;;  %3764 = vmatpush3.bf16.msk.msra.mxu0 %vm4571_vm5, %v3629_v13 }
 0x149   :  { %3864 = vmatpush3.bf16.msk.msra.mxu1 %vm4571_vm5, %v3629_v13  ;;  %3906 = vset.pattern.permute.xlu1 %v7226_v58 }
 0x14a   :  { %1156 = vperm.xlu1 %3906, %v4508_v38   ;;  %3765 = vmatprep.subr.msk.bf16.mxu0 %vm4556_vm4, %v3632_v16 }
 0x14b   :  { %3857 = vmatprep.subr.msk.bf16.mxu1 %vm4556_vm4, %v3632_v16 }
 0x14c   :  { %3929 = vset.pattern.permute.xlu0 %v7224_v49  ;;  %3766 = vmatpush3.bf16.msk.msra.mxu0 %vm4571_vm5, %v3632_v16 }
 0x14d   :  { %3865 = vmatpush3.bf16.msk.msra.mxu1 %vm4571_vm5, %v3632_v16  ;;  %904 = vperm.xlu0 %3929, %v4631_v14  }
 0x14e   :  { %3907 = vset.pattern.permute.xlu1 %v7220_v32  ;;  %3767 = vmatprep.subr.msk.bf16.mxu0 %vm4556_vm4, %v3635_v17 }
 0x14f   :  { %3858 = vmatprep.subr.msk.bf16.mxu1 %vm4556_vm4, %v3635_v17  ;;  %486 = vperm.xlu1 %3907, %v4530_v50  }
 0x150   :  { %3768 = vmatpush3.bf16.msk.msra.mxu0 %vm4571_vm5, %v3635_v17 }
 0x151   :  { %3866 = vmatpush3.bf16.msk.msra.mxu1 %vm4571_vm5, %v3635_v17  ;;  %3931 = vset.pattern.permute.xlu0 %v7226_v58 }
 0x152   :  { %3769 = vmatprep.subr.msk.bf16.mxu0 %vm4556_vm4, %v3638_v18  ;;  %3859 = vmatprep.subr.msk.bf16.mxu1 %vm4556_vm4, %v3638_v18 }
 0x153   :  { %1172 = vperm.xlu0 %3931, %v4631_v14   ;;  %3908 = vset.pattern.permute.xlu1 %v7222_v33 }
 0x154   :  { %3770 = vmatpush3.bf16.msk.msra.mxu0 %vm4571_vm5, %v3638_v18  ;;  %632 = vperm.xlu1 %3908, %v4530_v50  }
 0x155   :  { %3867 = vmatpush3.bf16.msk.msra.mxu1 %vm4571_vm5, %v3638_v18  ;;  %3771 = vmatprep.subr.msk.bf16.mxu0 %vm4556_vm4, %v3641_v19 }
 0x156   :  { %3860 = vmatprep.subr.msk.bf16.mxu1 %vm4556_vm4, %v3641_v19 }
 0x157   :  { %3935 = vset.pattern.permute.xlu0 %v7218_v42 }
 0x158   :  { %782 = vperm.xlu0 %3935, %v4615_v12   ;;  %3910 = vset.pattern.permute.xlu1 %v7224_v49 }
 0x159   :  { %3772 = vmatpush3.bf16.msk.msra.mxu0 %vm4571_vm5, %v3641_v19  ;;  %3868 = vmatpush3.bf16.msk.msra.mxu1 %vm4571_vm5, %v3641_v19 }
 0x15a   :  { %900 = vperm.xlu1 %3910, %v4530_v50  }
 0x15c   :  { %3937 = vset.pattern.permute.xlu0 %v7216_v46 }
 0x15d   :  { %1050 = vperm.xlu0 %3937, %v4615_v12  }
 0x15e   :  { %3912 = vset.pattern.permute.xlu1 %v7226_v58 }
 0x15f   :  { %1168 = vperm.xlu1 %3912, %v4530_v50  }
 0x161   :  { %3941 = vset.pattern.permute.xlu0 %v7218_v42 }
 0x162   :  { %774 = vperm.xlu0 %3941, %v4635_v15  }
 0x163   :  { %3913 = vset.pattern.permute.xlu1 %v7220_v32 }
 0x164   :  { %476 = vperm.xlu1 %3913, %v4545_v59  }
 0x166   :  { %3943 = vset.pattern.permute.xlu0 %v7216_v46 }
 0x167   :  { %1042 = vperm.xlu0 %3943, %v4635_v15  }
 0x168   :  { %3914 = vset.pattern.permute.xlu1 %v7222_v33 }
 0x169   :  { %624 = vperm.xlu1 %3914, %v4545_v59  }
 0x16b   :  { %3948 = vset.pattern.permute.xlu0 %v7224_v49 }
 0x16c   :  { %928 = vperm.xlu0 %3948, %v4561_v1  }
 0x16d   :  { %3915 = vset.pattern.permute.xlu1 %v7218_v42 }
 0x16e   :  { %758 = vperm.xlu1 %3915, %v4545_v59  }
 0x170   :  { %3950 = vset.pattern.permute.xlu0 %v7226_v58 }
 0x171   :  { %1196 = vperm.xlu0 %3950, %v4561_v1  }
 0x172   :  { %3917 = vset.pattern.permute.xlu1 %v7216_v46 }
 0x173   :  { %1026 = vperm.xlu1 %3917, %v4545_v59  }
 0x175   :  { %3954 = vset.pattern.permute.xlu0 %v7224_v49 }
 0x176   :  { %920 = vperm.xlu0 %3954, %v4591_v9  }
 0x177   :  { %3919 = vset.pattern.permute.xlu1 %v7215_v6 }
 0x178   :  { %1294 = vperm.xlu1 %3919, %v4545_v59  }
 0x17a   :  { %3956 = vset.pattern.permute.xlu0 %v7226_v58 }
 0x17b   :  { %1188 = vperm.xlu0 %3956, %v4591_v9  }
 0x17c   :  { %3920 = vset.pattern.permute.xlu1 %v7220_v32 }
 0x17d   :  { %501 = vperm.xlu1 %3920, %v4601_v11  }
 0x17f   :  { %3959 = vset.pattern.permute.xlu0 %v7218_v42 }
 0x180   :  { %798 = vperm.xlu0 %3959, %v4564_v2  }
 0x181   :  { %3921 = vset.pattern.permute.xlu1 %v7222_v33 }
 0x182   :  { %644 = vperm.xlu1 %3921, %v4601_v11  }
 0x184   :  { %3961 = vset.pattern.permute.xlu0 %v7216_v46 }
 0x185   :  { %1066 = vperm.xlu0 %3961, %v4564_v2  }
 0x186   :  { %3922 = vset.pattern.permute.xlu1 %v7218_v42 }
 0x187   :  { %778 = vperm.xlu1 %3922, %v4601_v11  }
 0x189   :  { %3965 = vset.pattern.permute.xlu0 %v7218_v42 }
 0x18a   :  { %790 = vperm.xlu0 %3965, %v4594_v10  }
 0x18b   :  { %3924 = vset.pattern.permute.xlu1 %v7216_v46 }
 0x18c   :  { %1046 = vperm.xlu1 %3924, %v4601_v11  }
 0x18e   :  { %3967 = vset.pattern.permute.xlu0 %v7216_v46 }
 0x18f   :  { %1058 = vperm.xlu0 %3967, %v4594_v10  }
 0x190   :  { %3926 = vset.pattern.permute.xlu1 %v7220_v32 }
 0x191   :  { %491 = vperm.xlu1 %3926, %v4631_v14  }
 0x193   :  { %3970 = vset.pattern.permute.xlu0 %v7222_v33 }
 0x194   :  { %676 = vperm.xlu0 %3970, %v4541_v57  }
 0x195   :  { %3927 = vset.pattern.permute.xlu1 %v7222_v33 }
 0x196   :  { %636 = vperm.xlu1 %3927, %v4631_v14  }
 0x198   :  { %3972 = vset.pattern.permute.xlu0 %v7224_v49  ;;  %v4750_v20 = vpop.permute.xlu1 %481 }
 0x199   :  { %7352 = vst [vmem:[#allocation34_spill] sm:$0xff] %v4750_v20  ;;  %944 = vperm.xlu0 %3972, %v4541_v57   ;;  %v5199_v20 = vld [vmem:[#allocation11 + $0x8] sm:$0xff]  }
 0x19a   :  { %3928 = vset.pattern.permute.xlu1 %v7218_v42  ;;  %v4754_v21 = vpop.permute.xlu0 %620  ;;  %7441 = vst [vmem:[#allocation110_spill] sm:$0xff] %v5199_v20 }
 0x19b   :  { %7353 = vst [vmem:[#allocation35_spill] sm:$0xff] %v4754_v21  ;;  %770 = vperm.xlu1 %3928, %v4631_v14   ;;  %v5221_v21 = vld [vmem:[#allocation11 + $0x18] sm:$0xff]  }
 0x19c   :  { %7444 = vst [vmem:[#allocation112_spill] sm:$0xff] %v5221_v21 }
 0x19d   :  { %3974 = vset.pattern.permute.xlu0 %v7226_v58  ;;  %v4758_v22 = vpop.permute.xlu1 %628 }
 0x19e   :  { %7354 = vst [vmem:[#allocation36_spill] sm:$0xff] %v4758_v22  ;;  %1212 = vperm.xlu0 %3974, %v4541_v57  }
 0x19f   :  { %3930 = vset.pattern.permute.xlu1 %v7216_v46  ;;  %v4762_v23 = vpop.permute.xlu0 %754 }
 0x1a0   :  { %7355 = vst [vmem:[#allocation37_spill] sm:$0xff] %v4762_v23  ;;  %1038 = vperm.xlu1 %3930, %v4631_v14   ;;  %v5188_v23 = vstv %s1288_s2 }
 0x1a1   :  { %7439 = vst [vmem:[#allocation108_spill] sm:$0xff] %v5188_v23 }
 0x1a2   :  { %3976 = vset.pattern.permute.xlu0 %v7222_v33  ;;  %v4766_v24 = vpop.permute.xlu1 %762 }
 0x1a3   :  { %7356 = vst [vmem:[#allocation38_spill] sm:$0xff] %v4766_v24  ;;  %668 = vperm.xlu0 %3976, %v4549_v61  }
 0x1a4   :  { %3932 = vset.pattern.permute.xlu1 %v7215_v6  ;;  %v4770_v25 = vpop.permute.xlu0 %1022 }
 0x1a5   :  { %7357 = vst [vmem:[#allocation39_spill] sm:$0xff] %v4770_v25  ;;  %1306 = vperm.xlu1 %3932, %v4631_v14   ;;  %v5176_v25 = vld [vmem:[#allocation11 + $0x30] sm:$0xff]  }
 0x1a6   :  { %7436 = vst [vmem:[#allocation107_spill] sm:$0xff] %v5176_v25 }
 0x1a7   :  { %3978 = vset.pattern.permute.xlu0 %v7224_v49  ;;  %v4774_v26 = vpop.permute.xlu1 %896 }
 0x1a8   :  { %7358 = vst [vmem:[#allocation40_spill] sm:$0xff] %v4774_v26  ;;  %936 = vperm.xlu0 %3978, %v4549_v61   ;;  %v5169_v26 = vld [vmem:[#allocation11 + $0x38] sm:$0xff]  }
 0x1a9   :  { %3933 = vset.pattern.permute.xlu1 %v7220_v32  ;;  %v4778_v27 = vpop.permute.xlu0 %766  ;;  %7434 = vst [vmem:[#allocation105_spill] sm:$0xff] %v5169_v26 }
 0x1aa   :  { %7359 = vst [vmem:[#allocation41_spill] sm:$0xff] %v4778_v27  ;;  %506 = vperm.xlu1 %3933, %v4615_v12  }
 0x1ac   :  { %3980 = vset.pattern.permute.xlu0 %v7226_v58  ;;  %v4782_v28 = vpop.permute.xlu1 %1030 }
 0x1ad   :  { %7360 = vst [vmem:[#allocation42_spill] sm:$0xff] %v4782_v28  ;;  %1204 = vperm.xlu0 %3980, %v4549_v61   ;;  %v5121_v28 = vld [vmem:[#allocation11 + $0x28] sm:$0xff]  }
 0x1ae   :  { %3934 = vset.pattern.permute.xlu1 %v7222_v33  ;;  %v4786_v29 = vpop.permute.xlu0 %1034  ;;  %7430 = vst [vmem:[#allocation103_spill] sm:$0xff] %v5121_v28 }
 0x1af   :  { %7361 = vst [vmem:[#allocation43_spill] sm:$0xff] %v4786_v29  ;;  %648 = vperm.xlu1 %3934, %v4615_v12  }
 0x1b1   :  { %3983 = vset.pattern.permute.xlu0 %v7218_v42  ;;  %v4790_v30 = vpop.permute.xlu1 %1164 }
 0x1b2   :  { %7362 = vst [vmem:[#allocation44_spill] sm:$0xff] %v4790_v30  ;;  %814 = vperm.xlu0 %3983, %v4552_v62  }
 0x1b3   :  { %3936 = vset.pattern.permute.xlu1 %v7224_v49  ;;  %v4794_v31 = vpop.permute.xlu0 %892 }
 0x1b4   :  { %916 = vperm.xlu1 %3936, %v4615_v12  }
 0x1b6   :  { %3985 = vset.pattern.permute.xlu0 %v7216_v46  ;;  %v4798_v34 = vpop.permute.xlu1 %1298 }
 0x1b7   :  { %7363 = vst [vmem:[#allocation45_spill] sm:$0xff] %v4798_v34  ;;  %1082 = vperm.xlu0 %3985, %v4552_v62  }
 0x1b8   :  { %3938 = vset.pattern.permute.xlu1 %v7226_v58 }
 0x1b9   :  { %1184 = vperm.xlu1 %3938, %v4615_v12   ;;  %v4803_v35 = vpop.permute.xlu0 %1160 }
 0x1bb   :  { %3989 = vset.pattern.permute.xlu0 %v7218_v42  ;;  %v4806_v37 = vpop.permute.xlu1 %471 }
 0x1bc   :  { %806 = vperm.xlu0 %3989, %v4567_v3  }
 0x1bd   :  { %3939 = vset.pattern.permute.xlu1 %v7220_v32 }
 0x1be   :  { %496 = vperm.xlu1 %3939, %v4635_v15   ;;  %v4811_v39 = vpop.permute.xlu0 %912 }
 0x1bf   :  { %7364 = vst [vmem:[#allocation46_spill] sm:$0xff] %v4811_v39 }
 0x1c0   :  { %3991 = vset.pattern.permute.xlu0 %v7216_v46  ;;  %v4814_v40 = vpop.permute.xlu1 %888 }
 0x1c1   :  { %7365 = vst [vmem:[#allocation47_spill] sm:$0xff] %v4814_v40  ;;  %1074 = vperm.xlu0 %3991, %v4567_v3  }
 0x1c2   :  { %3940 = vset.pattern.permute.xlu1 %v7222_v33 }
 0x1c3   :  { %640 = vperm.xlu1 %3940, %v4635_v15   ;;  %v4819_v41 = vpop.permute.xlu0 %1180 }
 0x1c4   :  { %7366 = vst [vmem:[#allocation48_spill] sm:$0xff] %v4819_v41  ;;  %v7393_v41 = vmov 21  }
 0x1c5   :  { %3995 = vset.pattern.permute.xlu0 %v7213_v43  ;;  %v4822_v44 = vpop.permute.xlu1 %1156 }
 0x1c6   :  { %7367 = vst [vmem:[#allocation49_spill] sm:$0xff] %v4822_v44  ;;  %1428 = vperm.xlu0 %3995, %v4545_v59  }
 0x1c7   :  { %3942 = vset.pattern.permute.xlu1 %v7224_v49 }
 0x1c8   :  { %908 = vperm.xlu1 %3942, %v4635_v15   ;;  %v4827_v45 = vpop.permute.xlu0 %904 }
 0x1c9   :  { %7368 = vst [vmem:[#allocation50_spill] sm:$0xff] %v4827_v45 }
 0x1ca   :  { %3996 = vset.pattern.permute.xlu0 %v7215_v6  ;;  %v4830_v47 = vpop.permute.xlu1 %486 }
 0x1cb   :  { %7369 = vst [vmem:[#allocation51_spill] sm:$0xff] %v4830_v47  ;;  %1290 = vperm.xlu0 %3996, %v4508_v38  }
 0x1cc   :  { %3944 = vset.pattern.permute.xlu1 %v7226_v58 }
 0x1cd   :  { %1176 = vperm.xlu1 %3944, %v4635_v15  }
 0x1ce   :  { %v4835_v51 = vpop.permute.xlu0 %1172 }
 0x1cf   :  { %7370 = vst [vmem:[#allocation52_spill] sm:$0xff] %v4835_v51  ;;  %1302 = vperm.xlu0 %3996, %v4530_v50   ;;  %v4838_v52 = vpop.permute.xlu1 %632  ;;  %v7397_v51 = vmov 18  }
 0x1d0   :  { %7371 = vst [vmem:[#allocation53_spill] sm:$0xff] %v4838_v52 }
 0x1d1   :  { %3945 = vset.pattern.permute.xlu1 %v7220_v32 }
 0x1d2   :  { %521 = vperm.xlu1 %3945, %v4561_v1  }
 0x1d3   :  { %1310 = vperm.xlu0 %3996, %v4635_v15   ;;  %v4843_v53 = vpop.permute.xlu0 %782 }
 0x1d4   :  { %7372 = vst [vmem:[#allocation54_spill] sm:$0xff] %v4843_v53 }
 0x1d5   :  { %v4845_v54 = vpop.permute.xlu1 %900 }
 0x1d6   :  { %7373 = vst [vmem:[#allocation55_spill] sm:$0xff] %v4845_v54  ;;  %3946 = vset.pattern.permute.xlu1 %v7222_v33 }
 0x1d7   :  { %1318 = vperm.xlu0 %3996, %v4615_v12   ;;  %660 = vperm.xlu1 %3946, %v4561_v1  }
 0x1d8   :  { %v4850_v55 = vpop.permute.xlu0 %1050 }
 0x1d9   :  { %7374 = vst [vmem:[#allocation56_spill] sm:$0xff] %v4850_v55 }
 0x1da   :  { %v4852_v56 = vpop.permute.xlu1 %1168 }
 0x1db   :  { %7375 = vst [vmem:[#allocation57_spill] sm:$0xff] %v4852_v56  ;;  %1326 = vperm.xlu0 %3996, %v4594_v10   ;;  %3947 = vset.pattern.permute.xlu1 %v7218_v42 }
 0x1dc   :  { %794 = vperm.xlu1 %3947, %v4561_v1  }
 0x1dd   :  { %v4857_v60 = vpop.permute.xlu0 %774 }
 0x1de   :  { %7376 = vst [vmem:[#allocation58_spill] sm:$0xff] %v4857_v60 }
 0x1df   :  { %1334 = vperm.xlu0 %3996, %v4564_v2   ;;  %v4860_v63 = vpop.permute.xlu1 %476 }
 0x1e0   :  { %3949 = vset.pattern.permute.xlu1 %v7216_v46 }
 0x1e1   :  { %1062 = vperm.xlu1 %3949, %v4561_v1  }
 0x1e2   :  { %v4864_v0 = vpop.permute.xlu0 %1042 }
 0x1e3   :  { %7377 = vst [vmem:[#allocation59_spill] sm:$0xff] %v4864_v0  ;;  %1350 = vperm.xlu0 %3996, %v4552_v62  }
 0x1e4   :  { %v4867_v4 = vpop.permute.xlu1 %624 }
 0x1e5   :  { %3951 = vset.pattern.permute.xlu1 %v7220_v32 }
 0x1e6   :  { %511 = vperm.xlu1 %3951, %v4591_v9  }
 0x1e7   :  { %1342 = vperm.xlu0 %3996, %v4567_v3   ;;  %v4872_v5 = vpop.permute.xlu0 %928 }
 0x1e8   :  { %7378 = vst [vmem:[#allocation60_spill] sm:$0xff] %v4872_v5  ;;  %v7389_v5 = vmov 17  }
 0x1e9   :  { %v4874_v7 = vpop.permute.xlu1 %758 }
 0x1ea   :  { %3952 = vset.pattern.permute.xlu1 %v7222_v33 }
 0x1eb   :  { %652 = vperm.xlu1 %3952, %v4591_v9  }
 0x1ec   :  { %v4878_v8 = vpop.permute.xlu0 %1196 }
 0x1ed   :  { %7379 = vst [vmem:[#allocation61_spill] sm:$0xff] %v4878_v8  ;;  %v7387_v8 = vmov 16  }
 0x1ee   :  { %v4880_v13 = vpop.permute.xlu1 %1026 }
 0x1ef   :  { %3953 = vset.pattern.permute.xlu1 %v7218_v42 }
 0x1f0   :  { %786 = vperm.xlu1 %3953, %v4591_v9  }
 0x1f1   :  { %v4884_v16 = vpop.permute.xlu0 %920 }
 0x1f2   :  { %7380 = vst [vmem:[#allocation62_spill] sm:$0xff] %v4884_v16  ;;  %v7391_v16 = vmov 19  }
 0x1f3   :  { %v4886_v17 = vpop.permute.xlu1 %1294 }
 0x1f4   :  { %3955 = vset.pattern.permute.xlu1 %v7216_v46 }
 0x1f5   :  { %1054 = vperm.xlu1 %3955, %v4591_v9  }
 0x1f6   :  { %v4890_v18 = vpop.permute.xlu0 %1188 }
 0x1f7   :  { %7381 = vst [vmem:[#allocation63_spill] sm:$0xff] %v4890_v18 }
 0x1f8   :  { %v4892_v19 = vpop.permute.xlu1 %501 }
 0x1f9   :  { %7382 = vst [vmem:[#allocation64_spill] sm:$0xff] %v4892_v19  ;;  %3957 = vset.pattern.permute.xlu1 %v7220_v32 }
 0x1fa   :  { %526 = vperm.xlu1 %3957, %v4564_v2  }
 0x1fb   :  { %v4896_v48 = vpop.permute.xlu0 %798 }
 0x1fd   :  { %v4898_v43 = vpop.permute.xlu1 %644 }
 0x1fe   :  { %7383 = vst [vmem:[#allocation65_spill] sm:$0xff] %v4898_v43  ;;  %3958 = vset.pattern.permute.xlu1 %v7222_v33  ;;  %v7399_v43 = vmov 20  }
 0x1ff   :  { %664 = vperm.xlu1 %3958, %v4564_v2  }
 0x200   :  { %v4902_v6 = vpop.permute.xlu0 %1066 }
 0x202   :  { %v4904_v46 = vpop.permute.xlu1 %778 }
 0x203   :  { %7384 = vst [vmem:[#allocation66_spill] sm:$0xff] %v4904_v46  ;;  %3960 = vset.pattern.permute.xlu1 %v7224_v49 }
 0x204   :  { %932 = vperm.xlu1 %3960, %v4564_v2  }
 0x205   :  { %304 = vxpose.xlu0.b32.start [1/16] (narrow) %v4508_v38, 16  ;;  %v4911_v32 = vpop.permute.xlu0 %790 }
 0x207   :  { %v4909_v42 = vpop.permute.xlu1 %1046 }
 0x208   :  { %7385 = vst [vmem:[#allocation67_spill] sm:$0xff] %v4909_v42  ;;  %3962 = vset.pattern.permute.xlu1 %v7226_v58 }
 0x209   :  { %305 = vxpose.xlu0.b32.cont [2/16] (narrow) %v4545_v59, 16  ;;  %1200 = vperm.xlu1 %3962, %v4564_v2  }
 0x20a   :  { %v4920_v49 = vpop.permute.xlu0 %1058 }
 0x20c   :  { %v4916_v33 = vpop.permute.xlu1 %491 }
 0x20d   :  { %7386 = vst [vmem:[#allocation68_spill] sm:$0xff] %v4916_v33  ;;  %306 = vxpose.xlu0.b32.cont [3/16] (narrow) %v4505_v36, 16  ;;  %3963 = vset.pattern.permute.xlu1 %v7387_v8 }
 0x20e   :  { %516 = vperm.xlu1 %3963, %v4594_v10  }
 0x20f   :  { %v4928_v58 = vpop.permute.xlu0 %676 }
 0x211   :  { %307 = vxpose.xlu0.b32.cont [4/16] (narrow) %v4530_v50, 16  ;;  %v4924_v18 = vpop.permute.xlu1 %636 }
 0x212   :  { %7388 = vst [vmem:[#allocation69_spill] sm:$0xff] %v4924_v18  ;;  %3964 = vset.pattern.permute.xlu1 %v7389_v5  ;;  %v7419_v18 = vmov 22  }
 0x213   :  { %656 = vperm.xlu1 %3964, %v4594_v10  }
 0x214   :  { %v4936_v55 = vpop.permute.xlu0 %944 }
 0x215   :  { %308 = vxpose.xlu0.b32.cont [5/16] (narrow) %v4631_v14, 16 }
 0x216   :  { %v4931_v59 = vpop.permute.xlu1 %770 }
 0x217   :  { %7390 = vst [vmem:[#allocation70_spill] sm:$0xff] %v4931_v59  ;;  %3966 = vset.pattern.permute.xlu1 %v7391_v16 }
 0x218   :  { %924 = vperm.xlu1 %3966, %v4594_v10  }
 0x219   :  { %309 = vxpose.xlu0.b32.cont [6/16] (narrow) %v4635_v15, 16  ;;  %v4943_v42 = vpop.permute.xlu0 %1212 }
 0x21a   :  { %7394 = vst [vmem:[#allocation72_spill] sm:$0xff] %v4943_v42 }
 0x21b   :  { %v4938_v53 = vpop.permute.xlu1 %1038 }
 0x21c   :  { %7392 = vst [vmem:[#allocation71_spill] sm:$0xff] %v4938_v53  ;;  %3968 = vset.pattern.permute.xlu1 %v7393_v41 }
 0x21d   :  { %310 = vxpose.xlu0.b32.cont [7/16] (narrow) %v4601_v11, 16  ;;  %1192 = vperm.xlu1 %3968, %v4594_v10  }
 0x21e   :  { %v4951_v0 = vpop.permute.xlu0 %668 }
 0x220   :  { %v4945_v39 = vpop.permute.xlu1 %1306 }
 0x221   :  { %7395 = vst [vmem:[#allocation73_spill] sm:$0xff] %v4945_v39  ;;  %311 = vxpose.xlu0.b32.cont [8/16] (narrow) %v4615_v12, 16  ;;  %3969 = vset.pattern.permute.xlu1 %v7387_v8 }
 0x222   :  { %541 = vperm.xlu1 %3969, %v4541_v57  }
 0x223   :  { %v4960_v39 = vpop.permute.xlu0 %936 }
 0x225   :  { %312 = vxpose.xlu0.b32.cont [9/16] (narrow) %v4591_v9, 16  ;;  %v4953_v46 = vpop.permute.xlu1 %506 }
 0x226   :  { %7396 = vst [vmem:[#allocation74_spill] sm:$0xff] %v4953_v46  ;;  %3971 = vset.pattern.permute.xlu1 %v7397_v51 }
 0x227   :  { %810 = vperm.xlu1 %3971, %v4541_v57  }
 0x228   :  { %v4968_v46 = vpop.permute.xlu0 %1204 }
 0x229   :  { %313 = vxpose.xlu0.b32.cont [10/16] (narrow) %v4594_v10, 16  ;;  %7401 = vst [vmem:[#allocation77_spill] sm:$0xff] %v4968_v46 }
 0x22a   :  { %v4958_v42 = vpop.permute.xlu1 %648 }
 0x22b   :  { %7398 = vst [vmem:[#allocation75_spill] sm:$0xff] %v4958_v42  ;;  %3973 = vset.pattern.permute.xlu1 %v7399_v43 }
 0x22c   :  { %1078 = vperm.xlu1 %3973, %v4541_v57  }
 0x22d   :  { %314 = vxpose.xlu0.b32.cont [11/16] (narrow) %v4561_v1, 16  ;;  %v4977_v42 = vpop.permute.xlu0 %814 }
 0x22f   :  { %v4965_v60 = vpop.permute.xlu1 %916 }
 0x230   :  { %7400 = vst [vmem:[#allocation76_spill] sm:$0xff] %v4965_v60  ;;  %3975 = vset.pattern.permute.xlu1 %v7387_v8 }
 0x231   :  { %315 = vxpose.xlu0.b32.cont [12/16] (narrow) %v4564_v2, 16  ;;  %531 = vperm.xlu1 %3975, %v4549_v61  }
 0x232   :  { %v4984_v46 = vpop.permute.xlu0 %1082 }
 0x234   :  { %v4972_v53 = vpop.permute.xlu1 %1184 }
 0x235   :  { %7402 = vst [vmem:[#allocation78_spill] sm:$0xff] %v4972_v53  ;;  %316 = vxpose.xlu0.b32.cont [13/16] (narrow) %v4549_v61, 16  ;;  %3977 = vset.pattern.permute.xlu1 %v7397_v51 }
 0x236   :  { %802 = vperm.xlu1 %3977, %v4549_v61  }
 0x237   :  { %v4992_v51 = vpop.permute.xlu0 %806 }
 0x238   :  { %7405 = vst [vmem:[#allocation81_spill] sm:$0xff] %v4992_v51 }
 0x239   :  { %317 = vxpose.xlu0.b32.cont [14/16] (narrow) %v4567_v3, 16  ;;  %v4980_v60 = vpop.permute.xlu1 %496 }
 0x23a   :  { %7403 = vst [vmem:[#allocation79_spill] sm:$0xff] %v4980_v60  ;;  %3979 = vset.pattern.permute.xlu1 %v7399_v43 }
 0x23b   :  { %1070 = vperm.xlu1 %3979, %v4549_v61  }
 0x23c   :  { %v5000_v45 = vpop.permute.xlu0 %1074 }
 0x23d   :  { %318 = vxpose.xlu0.b32.cont [15/16] (narrow) %v4541_v57, 16  ;;  %7408 = vst [vmem:[#allocation84_spill] sm:$0xff] %v5000_v45 }
 0x23e   :  { %v4987_v53 = vpop.permute.xlu1 %640 }
 0x23f   :  { %7404 = vst [vmem:[#allocation80_spill] sm:$0xff] %v4987_v53  ;;  %3981 = vset.pattern.permute.xlu1 %v7387_v8 }
 0x240   :  { %546 = vperm.xlu1 %3981, %v4552_v62  }
 0x241   :  { %319 = vxpose.xlu0.b32.end [16/16] (narrow) %v4552_v62, 16  ;;  %v5007_v60 = vpop.permute.xlu0 %1428 }
 0x242   :  { %7410 = vst [vmem:[#allocation86_spill] sm:$0xff] %v5007_v60 }
 0x243   :  { %v4994_v19 = vpop.permute.xlu1 %908 }
 0x244   :  { %7406 = vst [vmem:[#allocation82_spill] sm:$0xff] %v4994_v19  ;;  %3982 = vset.pattern.permute.xlu1 %v7389_v5 }
 0x245   :  { %680 = vperm.xlu1 %3982, %v4552_v62  }
 0x248   :  { %v4998_v43 = vpop.permute.xlu1 %1176 }
 0x249   :  { %7407 = vst [vmem:[#allocation83_spill] sm:$0xff] %v4998_v43  ;;  %3984 = vset.pattern.permute.xlu1 %v7391_v16  ;;  %v5014_v43 = vpop.permute.xlu0 %1290 }
 0x24a   :  { %948 = vperm.xlu1 %3984, %v4552_v62   ;;  %7412 = vst [vmem:[#allocation88_spill] sm:$0xff] %v5014_v43  ;;  %v5134_v43 = vld [vmem:[#allocation11 + $0x20] sm:$0xff]  }
 0x24b   :  { %7431 = vst [vmem:[#allocation104_spill] sm:$0xff] %v5134_v43 }
 0x24d   :  { %v5004_v53 = vpop.permute.xlu1 %521 }
 0x24e   :  { %7409 = vst [vmem:[#allocation85_spill] sm:$0xff] %v5004_v53  ;;  %3986 = vset.pattern.permute.xlu1 %v7393_v41  ;;  %v5020_v53 = vpop.permute.xlu0 %1302 }
 0x24f   :  { %1216 = vperm.xlu1 %3986, %v4552_v62   ;;  %7414 = vst [vmem:[#allocation90_spill] sm:$0xff] %v5020_v53  ;;  %v410_v53 = vstv %s409_s13 }
 0x252   :  { %v5010_v19 = vpop.permute.xlu1 %660 }
 0x253   :  { %7411 = vst [vmem:[#allocation87_spill] sm:$0xff] %v5010_v19  ;;  %3987 = vset.pattern.permute.xlu1 %v7387_v8  ;;  %v5026_v19 = vpop.permute.xlu0 %1310 }
 0x254   :  { %536 = vperm.xlu1 %3987, %v4567_v3   ;;  %7416 = vst [vmem:[#allocation92_spill] sm:$0xff] %v5026_v19 }
 0x257   :  { %v5016_v59 = vpop.permute.xlu1 %794 }
 0x258   :  { %7413 = vst [vmem:[#allocation89_spill] sm:$0xff] %v5016_v59  ;;  %3988 = vset.pattern.permute.xlu1 %v7389_v5  ;;  %v5034_v5 = vpop.permute.xlu0 %1318 }
 0x259   :  { %672 = vperm.xlu1 %3988, %v4567_v3   ;;  %7418 = vst [vmem:[#allocation94_spill] sm:$0xff] %v5034_v5 }
 0x25c   :  { %v5022_v56 = vpop.permute.xlu1 %1062  ;;  %v5043_v19 = vpop.permute.xlu0 %1326 }
 0x25d   :  { %7415 = vst [vmem:[#allocation91_spill] sm:$0xff] %v5022_v56  ;;  %3990 = vset.pattern.permute.xlu1 %v7391_v16  ;;  %v7420_v56 = vmov 23   ;;  %7422 = vst [vmem:[#allocation96_spill] sm:$0xff] %v5043_v19 }
 0x25e   :  { %940 = vperm.xlu1 %3990, %v4567_v3  }
 0x261   :  { %v5028_v8 = vpop.permute.xlu1 %511 }
 0x262   :  { %3992 = vset.pattern.permute.xlu1 %v7393_v41 }
 0x263   :  { %1208 = vperm.xlu1 %3992, %v4567_v3  }
 0x266   :  { %v5032_v59 = vpop.permute.xlu1 %652 }
 0x267   :  { %7417 = vst [vmem:[#allocation93_spill] sm:$0xff] %v5032_v59  ;;  %3993 = vset.pattern.permute.xlu1 %v7419_v18  ;;  %v5051_v18 = vpop.permute.xlu0 %1334 }
 0x268   :  { %1314 = vperm.xlu1 %3993, %v4601_v11   ;;  %7424 = vst [vmem:[#allocation98_spill] sm:$0xff] %v5051_v18  ;;  %v373_v18 = vstv %s372_s25  ;;  %s6104_s25 = sld [smem:[#allocation10 + $0xb]] }
 0x26a   :  { %3997 = vset.pattern.permute.xlu0 %v7420_v56 }
 0x26b   :  { %1440 = vperm.xlu0 %3997, %v4631_v14   ;;  %v5040_v16 = vpop.permute.xlu1 %786  ;;  %v5063_v19 = vpop.permute.xlu0 %1350 }
 0x26c   :  { %7421 = vst [vmem:[#allocation95_spill] sm:$0xff] %v5040_v16  ;;  %1322 = vperm.xlu1 %3993, %v4591_v9   ;;  %7425 = vst [vmem:[#allocation99_spill] sm:$0xff] %v5063_v19  ;;  %v394_v16 = vstv %s393_s30  ;;  %s6111_s30 = sld [smem:[#allocation10 + $0xc]] }
 0x26e   :  { %s1759_s1 = smul.f32 0.6, %s6104_s25 }
 0x26f   :  { %1448 = vperm.xlu0 %3997, %v4601_v11   ;;  %v5078_v19 = vpop.permute.xlu0 %1342 }
 0x270   :  { %1330 = vperm.xlu1 %3993, %v4561_v1   ;;  %v5047_v41 = vpop.permute.xlu1 %1054  ;;  %7426 = vst [vmem:[#allocation100_spill] sm:$0xff] %v5078_v19 }
 0x271   :  { %7423 = vst [vmem:[#allocation97_spill] sm:$0xff] %v5047_v41  ;;  %v386_v41 = vstv %s385_s29  ;;  %s1751_s29 = smul.f32 0.6, %s6096_s23 }
 0x272   :  { %s1767_s13 = smul.f32 0.6, %s6111_s30 }
 0x273   :  { %1456 = vperm.xlu0 %3997, %v4591_v9   ;;  %s2354_s2 = smul.f32 0.4, %s6111_s30 }
 0x274   :  { %1338 = vperm.xlu1 %3993, %v4549_v61  }
 0x275   :  { %v5059_v11 = vpop.permute.xlu1 %526 }
 0x277   :  { %1464 = vperm.xlu0 %3997, %v4561_v1  }
 0x278   :  { %1346 = vperm.xlu1 %3993, %v4541_v57  }
 0x27a   :  { %v5069_v9 = vpop.permute.xlu1 %664 }
 0x27b   :  { %1472 = vperm.xlu0 %3997, %v4549_v61  }
 0x27c   :  { %3994 = vset.pattern.permute.xlu1 %v7420_v56  ;;  %v378_v56 = vstv %s377_s24  ;;  %s1743_s24 = smul.f32 0.6, %s6086_s20 }
 0x27d   :  { %1424 = vperm.xlu1 %3994, %v4508_v38   ;;  %v402_v38 = vstv %s401_s12  ;;  %s6121_s12 = sld [smem:[#allocation10 + $0xd]] }
 0x27f   :  { %1480 = vperm.xlu0 %3997, %v4541_v57   ;;  %v5085_v1 = vpop.permute.xlu1 %932 }
 0x281   :  { %v5088_v61 = vpop.trf.xlu0  ;;  %1432 = vperm.xlu1 %3994, %v4505_v36  }
 0x282   :  { %v374_v19 = vmul.f32 %v373_v18, %v5088_v61  ;;  %v379_v57 = vmul.f32 %v378_v56, %v5088_v61  ;;  %v387_v5 = vmul.f32 %v386_v41, %v5088_v61  ;;  %v395_v59 = vmul.f32 %v394_v16, %v5088_v61 }
 0x283   :  { %v403_v33 = vmul.f32 %v402_v38, %v5088_v61  ;;  %v411_v56 = vmul.f32 %v410_v53, %v5088_v61  ;;  %v418_v41 = vstv %s417_s15  ;;  %v7427_v16 = vlaneseq  ;;  %s1775_s15 = smul.f32 0.6, %s6121_s12 }
 0x284   :  { %v5099_v36 = vpop.permute.xlu1 %1200  ;;  %v381_v29 = vrot.slane %v379_v57, 1  ;;  %v389_v34 = vrot.slane %v387_v5, 2  ;;  %v397_v30 = vrot.slane %v395_v59, 3  ;;  %v419_v38 = vmul.f32 %v418_v41, %v5088_v61 }
 0x285   :  { %1436 = vperm.xlu1 %3994, %v4530_v50   ;;  %v5106_v54 = vshrl.u32 %v7427_v16, 7  ;;  %v405_v5 = vrot.slane %v403_v33, 4  ;;  %v426_v53 = vstv %s425_s16  ;;  %v5156_v41 = vstv %s886_s3  ;;  %s6139_s16 = sld [smem:[#allocation10 + $0xf]]  ;;  %s1952_s3 = smul.f32 0.4, %s6086_s20 }
 0x286   :  { %v383_v18 = vadd.f32 %v381_v29, %v374_v19  ;;  %v413_v29 = vrot.slane %v411_v56, 5  ;;  %v421_v19 = vrot.slane %v419_v38, 6  ;;  %v427_v27 = vmul.f32 %v426_v53, %v5088_v61  ;;  %s2488_s20 = smul.f32 0.4, %s6121_s12 }
 0x287   :  { %7428 = vst [vmem:[#allocation101_spill] sm:$0xff] %v5106_v54  ;;  %v5118_v16 = vsub.s32 0, %v5106_v54  ;;  %v7432_v38 = vsub.s32 1, %v5106_v54  ;;  %v5164_v33 = vstv %s1020_s5  ;;  %v7438_v40 = vsub.s32 4, %v5106_v54  ;;  %s2086_s5 = smul.f32 0.4, %s6096_s23 }
 0x288   :  { %v391_v57 = vadd.f32 %v389_v34, %v383_v18  ;;  %v5166_v34 = vstv %s1154_s19  ;;  %v429_v24 = vrot.slane %v427_v27, 7  ;;  %s2220_s19 = smul.f32 0.4, %s6104_s25 }
 0x289   :  { %1444 = vperm.xlu1 %3994, %v4635_v15   ;;  %v5110_v50 = vpop.permute.xlu1 %516  ;;  %7429 = vst [vmem:[#allocation102_spill] sm:$0xff] %v5118_v16  ;;  %v5152_v53 = vrot.slane %v5088_v61, %v7432_v38  ;;  %v5171_v38 = vld [vmem:[#allocation11] sm:$0xff]   ;;  %v5186_v52 = vrot.slane %v5088_v61, %v7438_v40 }
 0x28a   :  { %v399_v59 = vadd.f32 %v397_v30, %v391_v57  ;;  %v5140_v30 = vstv %s468_s17  ;;  %v5154_v57 = vstv %s752_s0  ;;  %7435 = vst [vmem:[#allocation106_spill] sm:$0xff] %v5171_v38  ;;  %s1783_s17 = smul.f32 0.6, %s6132_s14 }
 0x28b   :  { %s1818_s0 = smul.f32 0.4, %s6094_s22 }
 0x28c   :  { %v407_v18 = vadd.f32 %v405_v5, %v399_v59  ;;  %v5142_v5 = vstv %s618_s18  ;;  %v5147_v59 = vrot.slane %v5088_v61, %v5118_v16  ;;  %s1791_s18 = smul.f32 0.6, %s6139_s16 }
 0x28d   :  { %1452 = vperm.xlu1 %3994, %v4615_v12   ;;  %s2622_s22 = smul.f32 0.4, %s6132_s14 }
 0x28e   :  { %v5129_v56 = vpop.permute.xlu1 %656  ;;  %v415_v12 = vadd.f32 %v413_v29, %v407_v18  ;;  %v7433_v29 = vsub.s32 2, %v5106_v54  ;;  %v564_v27 = vadd.f32 %v5147_v59, %v5059_v11 }
 0x290   :  { %v5162_v18 = vrot.slane %v5088_v61, %v7433_v29  ;;  %v423_v47 = vadd.f32 %v421_v19, %v415_v12  ;;  %v7437_v29 = vsub.s32 3, %v5106_v54  ;;  %v5190_v12 = vstv %s1422_s21  ;;  %s2756_s21 = smul.f32 0.4, %s6139_s16 }
 0x291   :  { %1460 = vperm.xlu1 %3994, %v4594_v10   ;;  %7440 = vst [vmem:[#allocation109_spill] sm:$0xff] %v5190_v12  ;;  %v698_v19 = vadd.f32 %v5152_v53, %v5069_v9  ;;  %v7442_v12 = vsub.s32 5, %v5106_v54 }
 0x292   :  { %v5181_v22 = vrot.slane %v5088_v61, %v7437_v29  ;;  %v832_v40 = vadd.f32 %v5162_v18, %v4896_v48  ;;  %v431_v45 = vadd.f32 %v429_v24, %v423_v47  ;;  %v5211_v29 = vld [vmem:[#allocation11 + $0x10] sm:$0xff]   ;;  %v1100_v48 = vadd.f32 %v5186_v52, %v4902_v6 }
 0x293   :  { %v5174_v10 = vpop.permute.xlu1 %924  ;;  %v5207_v11 = vrot.slane %v5088_v61, %v7442_v12  ;;  %7443 = vst [vmem:[#allocation111_spill] sm:$0xff] %v5211_v29  ;;  %v580_v24 = vand.u32 2147483647, %v564_v27  ;;  %v714_v47 = vand.u32 2147483647, %v698_v19  ;;  %v562_v6 = vadd.f32 %v5147_v59, %v5110_v50 }
 0x294   :  { %v966_v44 = vadd.f32 %v5181_v22, %v5085_v1  ;;  %v848_v9 = vand.u32 2147483647, %v832_v40  ;;  %v5232_v12 = vrot.slane %v431_v45, %v5118_v16  ;;  %v561_v27 = vadd.f32 %v5147_v59, %v5028_v8 }
 0x295   :  { %1468 = vperm.xlu1 %3994, %v4564_v2   ;;  %v1234_v2 = vadd.f32 %v5207_v11, %v5099_v36  ;;  %v554_v36 = vadd.f32 %v5147_v59, %v4860_v63  ;;  %v7445_v40 = vsub.s32 6, %v5106_v54  ;;  %v1116_v60 = vand.u32 2147483647, %v1100_v48 }
 0x296   :  { %v982_v50 = vand.u32 2147483647, %v966_v44  ;;  %v7446_v45 = vsub.s32 7, %v5106_v54  ;;  %v597_v8 = vmul.f32 %v5140_v30, %v580_v24  ;;  %v731_v63 = vmul.f32 %v5142_v5, %v714_v47 }
 0x297   :  { %v5242_v1 = vrot.slane %v5088_v61, %v7445_v40  ;;  %v865_v40 = vmul.f32 %v5154_v57, %v848_v9  ;;  %v578_v29 = vand.u32 2147483647, %v562_v6  ;;  %v696_v44 = vadd.f32 %v5152_v53, %v5129_v56 }
 0x298   :  { %v5217_v51 = vpop.permute.xlu1 %1192  ;;  %v5248_v16 = vrot.slane %v5088_v61, %v7446_v45  ;;  %v830_v48 = vadd.f32 %v5162_v18, %v4911_v32  ;;  %v7447_v61 = vunpack.c.h.bf16 %v5121_v28  ;;  %v577_v24 = vand.u32 2147483647, %v561_v27 }
 0x299   :  { %1476 = vperm.xlu1 %3994, %v4567_v3   ;;  %v1250_v3 = vand.u32 2147483647, %v1234_v2  ;;  %v570_v23 = vand.u32 2147483647, %v554_v36  ;;  %v688_v2 = vadd.f32 %v5152_v53, %v4867_v4  ;;  %v5264_v47 = vmul.f32 %v5156_v41, %v982_v50 }
 0x29a   :  { %v463_v45 = vadd.f32 %v7447_v61, %v5232_v12  ;;  %v5267_v9 = vmul.f32 %v5164_v33, %v1116_v60  ;;  %v7448_v56 = vunpack.c.h.bf16 %v5134_v43  ;;  %v1098_v32 = vadd.f32 %v5186_v52, %v4920_v49 }
 0x29b   :  { %v5275_v61 = vmul.f32 %v5166_v34, %v1250_v3  ;;  %v7262_v27 = vmov 24   ;;  %v701_v4 = vadd.f32 %v5152_v53, %v4928_v58  ;;  %v969_v60 = vadd.f32 %v5181_v22, %v4936_v55 }
 0x29c   :  { %v461_v6 = vadd.f32 %v7448_v56, %v5232_v12  ;;  %v7450_v36 = vunpack.c.h.bf16 %v5171_v38  ;;  %v595_v56 = vmul.f32 %v5140_v30, %v578_v29  ;;  %v712_v54 = vand.u32 2147483647, %v696_v44 }
 0x29d   :  { %1484 = vperm.xlu1 %3994, %v4552_v62   ;;  %v542_v19 = vpop.permute.xlu1 %541  ;;  %7449 = vst [vmem:[#allocation113_spill] sm:$0xff] %v5275_v61  ;;  %v846_v49 = vand.u32 2147483647, %v830_v48  ;;  %v613_v62 = vadd.f32 %v597_v8, %v463_v45  ;;  %v587_v58 = vmul.f32 %v5140_v30, %v570_v23  ;;  %v704_v28 = vand.u32 2147483647, %v688_v2 }
 0x29e   :  { %v453_v50 = vadd.f32 %v7450_v36, %v5232_v12  ;;  %v822_v55 = vadd.f32 %v5162_v18, %v4874_v7  ;;  %v594_v21 = vmul.f32 %v5140_v30, %v577_v24  ;;  %v611_v36 = vadd.f32 %v595_v56, %v461_v6 }
 0x29f   :  { %v1114_v20 = vand.u32 2147483647, %v1098_v32  ;;  %v967_v29 = vadd.f32 %v5181_v22, %v4960_v39  ;;  %v567_v44 = vadd.f32 %v5147_v59, %v542_v19  ;;  %v717_v48 = vand.u32 2147483647, %v701_v4 }
 0x2a0   :  { %v985_v61 = vand.u32 2147483647, %v969_v60  ;;  %v603_v38 = vadd.f32 %v587_v58, %v453_v50  ;;  %v863_v23 = vmul.f32 %v5154_v57, %v846_v49  ;;  %v964_v8 = vadd.f32 %v5181_v22, %v5174_v10 }
 0x2a1   :  { %3998 = vset.pattern.permute.xlu1 %v7262_v27  ;;  %v699_v27 = vadd.f32 %v5152_v53, %v4951_v0  ;;  %v729_v0 = vmul.f32 %v5142_v5, %v712_v54  ;;  %v7276_v7 = vmov 25   ;;  %v747_v24 = vadd.f32 %v731_v63, %v613_v62 }
 0x2a2   :  { %1840 = vperm.xlu1 %3998, %v4635_v15   ;;  %v811_v3 = vpop.permute.xlu1 %810  ;;  %v721_v19 = vmul.f32 %v5142_v5, %v704_v28  ;;  %v838_v2 = vand.u32 2147483647, %v822_v55  ;;  %v956_v54 = vadd.f32 %v5181_v22, %v4794_v31  ;;  %v1131_v32 = vmul.f32 %v5164_v33, %v1114_v20 }
 0x2a3   :  { %v715_v45 = vand.u32 2147483647, %v699_v27  ;;  %v745_v6 = vadd.f32 %v729_v0, %v611_v36  ;;  %v983_v4 = vand.u32 2147483647, %v967_v29  ;;  %v836_v10 = vadd.f32 %v5162_v18, %v4977_v42 }
 0x2a4   :  { %v583_v60 = vand.u32 2147483647, %v567_v44  ;;  %v734_v62 = vmul.f32 %v5142_v5, %v717_v48  ;;  %v5312_v63 = vmul.f32 %v5156_v41, %v985_v61  ;;  %v737_v27 = vadd.f32 %v721_v19, %v603_v38 }
 0x2a5   :  { %v980_v50 = vand.u32 2147483647, %v964_v8  ;;  %v1232_v28 = vadd.f32 %v5207_v11, %v5217_v51  ;;  %v5317_v31 = vmul.f32 %v5142_v5, %v715_v45  ;;  %v1104_v20 = vadd.f32 %v5186_v52, %v4984_v46 }
 0x2a6   :  { %3999 = vset.pattern.permute.xlu1 %v7276_v7  ;;  %v881_v56 = vadd.f32 %v865_v40, %v747_v24  ;;  %v855_v42 = vmul.f32 %v5154_v57, %v838_v2  ;;  %v972_v49 = vand.u32 2147483647, %v956_v54  ;;  %v1090_v61 = vadd.f32 %v5186_v52, %v4880_v13 }
 0x2a7   :  { %1970 = vperm.xlu1 %3999, %v4631_v14   ;;  %v5302_v39 = vpop.permute.xlu1 %1078  ;;  %v7451_v38 = vunpack.c.l.bf16 %v5134_v43  ;;  %v879_v51 = vadd.f32 %v863_v23, %v745_v6  ;;  %v5329_v36 = vmul.f32 %v5156_v41, %v983_v4  ;;  %v852_v29 = vand.u32 2147483647, %v836_v10  ;;  %v7476_v43 = vld [vmem:[#allocation40_spill] sm:$0xff] }
 0x2a8   :  { %v7452_v46 = vunpack.c.l.bf16 %v5169_v26  ;;  %v600_v44 = vmul.f32 %v5140_v30, %v583_v60  ;;  %v835_v48 = vadd.f32 %v5162_v18, %v811_v3  ;;  %v871_v0 = vadd.f32 %v855_v42, %v737_v27 }
 0x2a9   :  { %v460_v58 = vadd.f32 %v7451_v38, %v5232_v12  ;;  %v997_v13 = vmul.f32 %v5156_v41, %v980_v50  ;;  %v1248_v8 = vand.u32 2147483647, %v1232_v28  ;;  %v7453_v23 = vunpack.c.l.bf16 %v5176_v25  ;;  %v7456_v38 = vld [vmem:[#allocation86_spill] sm:$0xff] }
 0x2aa   :  { %v466_v40 = vadd.f32 %v7452_v46, %v5232_v12  ;;  %v1120_v24 = vand.u32 2147483647, %v1104_v20  ;;  %v1015_v19 = vadd.f32 %v5264_v47, %v881_v56  ;;  %v7274_v2 = vmov 26  }
 0x2ab   :  { %1974 = vperm.xlu1 %3999, %v4635_v15   ;;  %v5340_v45 = vadd.f32 %v7453_v23, %v5232_v12  ;;  %v989_v54 = vmul.f32 %v5156_v41, %v972_v49  ;;  %v1106_v6 = vand.u32 2147483647, %v1090_v61  ;;  %v1224_v3 = vadd.f32 %v5207_v11, %v4803_v35  ;;  %v7507_v15 = vld [vmem:[#allocation59_spill] sm:$0xff] }
 0x2ac   :  { %v532_v55 = vpop.permute.xlu1 %531  ;;  %v5347_v4 = vadd.f32 %v594_v21, %v460_v58  ;;  %v1013_v10 = vadd.f32 %v997_v13, %v879_v51  ;;  %v7454_v60 = vunpack.c.h.bf16 %v5169_v26  ;;  %v553_v47 = vadd.f32 %v5147_v59, %v4806_v37 }
 0x2ad   :  { %v616_v50 = vadd.f32 %v600_v44, %v466_v40  ;;  %v851_v28 = vand.u32 2147483647, %v835_v48  ;;  %v5358_v56 = vmul.f32 %v5154_v57, %v852_v29  ;;  %v1005_v35 = vadd.f32 %v989_v54, %v871_v0  ;;  %v7457_v0 = vld [vmem:[#allocation35_spill] sm:$0xff] }
 0x2ae   :  { %v5353_v27 = vadd.f32 %v7454_v60, %v5232_v12  ;;  %v5361_v21 = vmul.f32 %v5164_v33, %v1120_v24  ;;  %v7455_v42 = vunpack.c.h.bf16 %v5176_v25  ;;  %v1358_v61 = vadd.f32 %v5242_v1, %v4886_v17  ;;  %v7458_v60 = vld [vmem:[#allocation81_spill] sm:$0xff] }
 0x2af   :  { %4000 = vset.pattern.permute.xlu1 %v7274_v2  ;;  %v1492_v37 = vadd.f32 %v5248_v16, %v7456_v38  ;;  %v1149_v58 = vadd.f32 %v5267_v9, %v1015_v19  ;;  %v1265_v51 = vmul.f32 %v5166_v34, %v1248_v8  ;;  %v1123_v29 = vmul.f32 %v5164_v33, %v1106_v6  ;;  %v7466_v2 = vld [vmem:[#allocation109_spill] sm:$0xff] }
 0x2b0   :  { %2104 = vperm.xlu1 %4000, %v4631_v14   ;;  %v5366_v49 = vadd.f32 %v7455_v42, %v5232_v12  ;;  %v1240_v46 = vand.u32 2147483647, %v1224_v3  ;;  %v1147_v40 = vadd.f32 %v1131_v32, %v1013_v10  ;;  %v565_v44 = vadd.f32 %v5147_v59, %v532_v55  ;;  %v7459_v32 = vld [vmem:[#allocation106_spill] sm:$0xff]  ;;  %v7461_v10 = vld [vmem:[#allocation113_spill] sm:$0xff] }
 0x2b1   :  { %v803_v20 = vpop.permute.xlu1 %802  ;;  %v569_v48 = vand.u32 2147483647, %v553_v47  ;;  %v687_v13 = vadd.f32 %v5152_v53, %v7457_v0  ;;  %v750_v23 = vadd.f32 %v734_v62, %v616_v50  ;;  %v868_v17 = vmul.f32 %v5154_v57, %v851_v28  ;;  %v7462_v50 = vld [vmem:[#allocation84_spill] sm:$0xff] }
 0x2b2   :  { %v1103_v24 = vadd.f32 %v5186_v52, %v5302_v39  ;;  %v1139_v54 = vadd.f32 %v1123_v29, %v1005_v35  ;;  %v1374_v19 = vand.u32 2147483647, %v1358_v61  ;;  %v1508_v8 = vand.u32 2147483647, %v1492_v37  ;;  %v7463_v39 = vld [vmem:[#allocation34_spill] sm:$0xff]  ;;  %v7464_v37 = vld [vmem:[#allocation37_spill] sm:$0xff] }
 0x2b3   :  { %v834_v6 = vadd.f32 %v5162_v18, %v7458_v60  ;;  %v7460_v55 = vunpack.c.l.bf16 %v7459_v32  ;;  %v5387_v47 = vadd.f32 %v7461_v10, %v1149_v58  ;;  %v1257_v62 = vmul.f32 %v5166_v34, %v1240_v46  ;;  %v7465_v10 = vld [vmem:[#allocation108_spill] sm:$0xff] }
 0x2b4   :  { %v1102_v28 = vadd.f32 %v5186_v52, %v7462_v50  ;;  %v555_v35 = vadd.f32 %v5147_v59, %v7463_v39  ;;  %v581_v42 = vand.u32 2147483647, %v565_v44  ;;  %v586_v61 = vmul.f32 %v5140_v30, %v569_v48  ;;  %v7467_v44 = vld [vmem:[#allocation47_spill] sm:$0xff]  ;;  %v7468_v32 = vld [vmem:[#allocation36_spill] sm:$0xff] }
 0x2b5   :  { %v452_v3 = vadd.f32 %v7460_v55, %v5232_v12  ;;  %v703_v38 = vand.u32 2147483647, %v687_v13  ;;  %v821_v29 = vadd.f32 %v5162_v18, %v7464_v37  ;;  %v5397_v0 = vadd.f32 %v1265_v51, %v1147_v40 }
 0x2b6   :  { %v1071_v9 = vpop.permute.xlu1 %1070  ;;  %v884_v60 = vadd.f32 %v868_v17, %v750_v23  ;;  %v1119_v58 = vand.u32 2147483647, %v1103_v24  ;;  %v1273_v55 = vadd.f32 %v1257_v62, %v1139_v54  ;;  %v1391_v46 = vmul.f32 %v7465_v10, %v1374_v19 }
 0x2b7   :  { %v1525_v7 = vmul.f32 %v7466_v2, %v1508_v8  ;;  %v850_v50 = vand.u32 2147483647, %v834_v6  ;;  %v602_v25 = vadd.f32 %v586_v61, %v452_v3  ;;  %v1118_v39 = vand.u32 2147483647, %v1102_v28  ;;  %v7469_v8 = vld [vmem:[#allocation110_spill] sm:$0xff]  ;;  %v7471_v28 = vld [vmem:[#allocation39_spill] sm:$0xff] }
 0x2b8   :  { %v955_v48 = vadd.f32 %v5181_v22, %v7467_v44  ;;  %v571_v13 = vand.u32 2147483647, %v555_v35  ;;  %v689_v37 = vadd.f32 %v5152_v53, %v7468_v32  ;;  %v598_v51 = vmul.f32 %v5140_v30, %v581_v42 }
 0x2b9   :  { %v833_v40 = vadd.f32 %v5162_v18, %v803_v20  ;;  %v720_v23 = vmul.f32 %v5142_v5, %v703_v38  ;;  %v837_v17 = vand.u32 2147483647, %v821_v29  ;;  %v1018_v24 = vadd.f32 %v5312_v63, %v884_v60  ;;  %v7472_v20 = vld [vmem:[#allocation49_spill] sm:$0xff]  ;;  %v7473_v38 = vld [vmem:[#allocation38_spill] sm:$0xff]  ;;  %v7474_v60 = vld [vmem:[#allocation51_spill] sm:$0xff] }
 0x2ba   :  { %v1136_v54 = vmul.f32 %v5164_v33, %v1119_v58  ;;  %v1407_v19 = vadd.f32 %v1391_v46, %v1273_v55  ;;  %v7470_v6 = vunpack.c.l.bf16 %v7469_v8  ;;  %v5414_v62 = vmul.f32 %v5154_v57, %v850_v50 }
 0x2bb   :  { %v547_v26 = vpop.permute.xlu1 %546  ;;  %v736_v32 = vadd.f32 %v720_v23, %v602_v25  ;;  %v1089_v35 = vadd.f32 %v5186_v52, %v7471_v28  ;;  %v1223_v42 = vadd.f32 %v5207_v11, %v7472_v20  ;;  %v588_v61 = vmul.f32 %v5140_v30, %v571_v13 }
 0x2bc   :  { %v454_v3 = vadd.f32 %v7470_v6, %v5232_v12  ;;  %v705_v63 = vand.u32 2147483647, %v689_v37  ;;  %v823_v29 = vadd.f32 %v5162_v18, %v7473_v38  ;;  %v556_v58 = vadd.f32 %v5147_v59, %v7474_v60 }
 0x2bd   :  { %v614_v55 = vadd.f32 %v598_v51, %v5340_v45  ;;  %v849_v46 = vand.u32 2147483647, %v833_v40  ;;  %v854_v25 = vmul.f32 %v5154_v57, %v837_v17  ;;  %v971_v44 = vand.u32 2147483647, %v955_v48  ;;  %v7477_v17 = vld [vmem:[#allocation53_spill] sm:$0xff] }
 0x2be   :  { %v5427_v23 = vadd.f32 %v1136_v54, %v1018_v24  ;;  %v5429_v6 = vadd.f32 %v1525_v7, %v1407_v19  ;;  %v5432_v13 = vmul.f32 %v5164_v33, %v1118_v39  ;;  %v604_v37 = vadd.f32 %v588_v61, %v454_v3  ;;  %v7478_v3 = vld [vmem:[#allocation88_spill] sm:$0xff] }
 0x2bf   :  { %v870_v28 = vadd.f32 %v854_v25, %v736_v32  ;;  %v1105_v20 = vand.u32 2147483647, %v1089_v35  ;;  %v1239_v38 = vand.u32 2147483647, %v1223_v42  ;;  %v957_v60 = vadd.f32 %v5181_v22, %v7476_v43  ;;  %v7479_v35 = vld [vmem:[#allocation42_spill] sm:$0xff] }
 0x2c0   :  { %v681_v50 = vpop.permute.xlu1 %680  ;;  %7475 = vst [vmem:[#allocation86_spill] sm:$0xff] %v5429_v6  ;;  %v722_v45 = vmul.f32 %v5142_v5, %v705_v63  ;;  %v839_v51 = vand.u32 2147483647, %v823_v29  ;;  %v572_v40 = vand.u32 2147483647, %v556_v58  ;;  %v690_v48 = vadd.f32 %v5152_v53, %v7477_v17 }
 0x2c1   :  { %v748_v7 = vadd.f32 %v5317_v31, %v614_v55  ;;  %v866_v24 = vmul.f32 %v5154_v57, %v849_v46  ;;  %v1101_v39 = vadd.f32 %v5186_v52, %v1071_v9  ;;  %v988_v54 = vmul.f32 %v5156_v41, %v971_v44  ;;  %v7481_v44 = vld [vmem:[#allocation41_spill] sm:$0xff] }
 0x2c2   :  { %v1357_v32 = vadd.f32 %v5242_v1, %v7478_v3  ;;  %v738_v43 = vadd.f32 %v722_v45, %v604_v37  ;;  %v1091_v42 = vadd.f32 %v5186_v52, %v7479_v35  ;;  %v7480_v61 = vunpack.c.h.bf16 %v7469_v8 }
 0x2c3   :  { %v568_v31 = vadd.f32 %v5147_v59, %v547_v26  ;;  %v1004_v29 = vadd.f32 %v988_v54, %v870_v28  ;;  %v1122_v58 = vmul.f32 %v5164_v33, %v1105_v20  ;;  %v973_v9 = vand.u32 2147483647, %v957_v60 }
 0x2c4   :  { %v455_v63 = vadd.f32 %v7480_v61, %v5232_v12  ;;  %v856_v55 = vmul.f32 %v5154_v57, %v839_v51  ;;  %v589_v46 = vmul.f32 %v5140_v30, %v572_v40  ;;  %v706_v25 = vand.u32 2147483647, %v690_v48  ;;  %v7482_v48 = vld [vmem:[#allocation55_spill] sm:$0xff] }
 0x2c5   :  { %v949_v19 = vpop.permute.xlu1 %948  ;;  %v824_v37 = vadd.f32 %v5162_v18, %v7481_v44  ;;  %v882_v45 = vadd.f32 %v866_v24, %v748_v7  ;;  %v1117_v17 = vand.u32 2147483647, %v1101_v39  ;;  %v702_v3 = vadd.f32 %v5152_v53, %v681_v50  ;;  %v7483_v44 = vld [vmem:[#allocation44_spill] sm:$0xff] }
 0x2c6   :  { %v1256_v35 = vmul.f32 %v5166_v34, %v1239_v38  ;;  %v1373_v61 = vand.u32 2147483647, %v1357_v32  ;;  %v872_v26 = vadd.f32 %v856_v55, %v738_v43  ;;  %v1107_v28 = vand.u32 2147483647, %v1091_v42  ;;  %v7484_v38 = vld [vmem:[#allocation68_spill] sm:$0xff] }
 0x2c7   :  { %v605_v54 = vadd.f32 %v589_v46, %v455_v63  ;;  %v584_v20 = vand.u32 2147483647, %v568_v31  ;;  %v1138_v51 = vadd.f32 %v1122_v58, %v1004_v29  ;;  %v990_v40 = vmul.f32 %v5156_v41, %v973_v9  ;;  %v7485_v63 = vld [vmem:[#allocation45_spill] sm:$0xff] }
 0x2c8   :  { %v958_v8 = vadd.f32 %v5181_v22, %v7482_v48  ;;  %v1225_v7 = vadd.f32 %v5207_v11, %v7483_v44  ;;  %v723_v50 = vmul.f32 %v5142_v5, %v706_v25  ;;  %v840_v24 = vand.u32 2147483647, %v824_v37  ;;  %v7486_v48 = vld [vmem:[#allocation43_spill] sm:$0xff] }
 0x2c9   :  { %v557_v39 = vadd.f32 %v5147_v59, %v7484_v38  ;;  %v1016_v32 = vadd.f32 %v5329_v36, %v882_v45  ;;  %v1134_v43 = vmul.f32 %v5164_v33, %v1117_v17  ;;  %v718_v42 = vand.u32 2147483647, %v702_v3  ;;  %v7487_v38 = vld [vmem:[#allocation69_spill] sm:$0xff] }
 0x2ca   :  { %v5458_v60 = vpop.permute.xlu1 %1216  ;;  %v1359_v31 = vadd.f32 %v5242_v1, %v7485_v63  ;;  %v1390_v29 = vmul.f32 %v7465_v10, %v1373_v61  ;;  %v1006_v58 = vadd.f32 %v990_v40, %v872_v26  ;;  %v1124_v9 = vmul.f32 %v5164_v33, %v1107_v28  ;;  %v7489_v40 = vld [vmem:[#allocation111_spill] sm:$0xff] }
 0x2cb   :  { %v739_v55 = vadd.f32 %v723_v50, %v605_v54  ;;  %v601_v46 = vmul.f32 %v5140_v30, %v584_v20  ;;  %v1272_v25 = vadd.f32 %v1256_v35, %v1138_v51  ;;  %v974_v37 = vand.u32 2147483647, %v958_v8  ;;  %v7488_v54 = vld [vmem:[#allocation57_spill] sm:$0xff] }
 0x2cc   :  { %v1092_v44 = vadd.f32 %v5186_v52, %v7486_v48  ;;  %v1241_v45 = vand.u32 2147483647, %v1225_v7  ;;  %v857_v17 = vmul.f32 %v5154_v57, %v840_v24  ;;  %v573_v3 = vand.u32 2147483647, %v557_v39 }
 0x2cd   :  { %v691_v63 = vadd.f32 %v5152_v53, %v7487_v38  ;;  %v5480_v61 = vadd.f32 %v1134_v43, %v1016_v32  ;;  %v735_v26 = vmul.f32 %v5142_v5, %v718_v42  ;;  %v1375_v28 = vand.u32 2147483647, %v1359_v31  ;;  %v7491_v43 = vld [vmem:[#allocation90_spill] sm:$0xff] }
 0x2ce   :  { %v1226_v35 = vadd.f32 %v5207_v11, %v7488_v54  ;;  %v970_v8 = vadd.f32 %v5181_v22, %v949_v19  ;;  %v1140_v20 = vadd.f32 %v1124_v9, %v1006_v58  ;;  %v873_v51 = vadd.f32 %v857_v17, %v739_v55  ;;  %v7492_v38 = vld [vmem:[#allocation70_spill] sm:$0xff]  ;;  %v7493_v58 = vld [vmem:[#allocation79_spill] sm:$0xff] }
 0x2cf   :  { %v537_v36 = vpop.permute.xlu1 %536  ;;  %v7490_v7 = vunpack.c.l.bf16 %v7489_v40  ;;  %v617_v24 = vadd.f32 %v601_v46, %v5353_v27  ;;  %v991_v39 = vmul.f32 %v5156_v41, %v974_v37  ;;  %v1108_v32 = vand.u32 2147483647, %v1092_v44  ;;  %v7494_v37 = vld [vmem:[#allocation50_spill] sm:$0xff] }
 0x2d0   :  { %v1360_v42 = vadd.f32 %v5242_v1, %v7491_v43  ;;  %v590_v31 = vmul.f32 %v5140_v30, %v573_v3  ;;  %v707_v48 = vand.u32 2147483647, %v691_v63  ;;  %v825_v19 = vadd.f32 %v5162_v18, %v7492_v38 }
 0x2d1   :  { %v456_v50 = vadd.f32 %v7490_v7, %v5232_v12  ;;  %v558_v9 = vadd.f32 %v5147_v59, %v7493_v58  ;;  %v751_v55 = vadd.f32 %v735_v26, %v617_v24  ;;  %v1258_v27 = vmul.f32 %v5166_v34, %v1241_v45  ;;  %v7495_v45 = vld [vmem:[#allocation80_spill] sm:$0xff] }
 0x2d2   :  { %v1242_v46 = vand.u32 2147483647, %v1226_v35  ;;  %v959_v44 = vadd.f32 %v5181_v22, %v7494_v37  ;;  %v986_v54 = vand.u32 2147483647, %v970_v8  ;;  %v5502_v7 = vadd.f32 %v1390_v29, %v1272_v25  ;;  %v7496_v8 = vld [vmem:[#allocation64_spill] sm:$0xff] }
 0x2d3   :  { %v1007_v3 = vadd.f32 %v991_v39, %v873_v51  ;;  %v606_v63 = vadd.f32 %v590_v31, %v456_v50  ;;  %v1274_v43 = vadd.f32 %v1258_v27, %v1140_v20  ;;  %v1392_v38 = vmul.f32 %v7465_v10, %v1375_v28 }
 0x2d4   :  { %1558 = vmax.xlane.f32.xlu1 %v5429_v6  ;;  %v673_v17 = vpop.permute.xlu1 %672  ;;  %v1125_v58 = vmul.f32 %v5164_v33, %v1108_v32  ;;  %v1376_v26 = vand.u32 2147483647, %v1360_v42  ;;  %v724_v24 = vmul.f32 %v5142_v5, %v707_v48  ;;  %v841_v6 = vand.u32 2147483647, %v825_v19  ;;  %v7498_v19 = vld [vmem:[#allocation71_spill] sm:$0xff] }
 0x2d5   :  { %v574_v14 = vand.u32 2147483647, %v558_v9  ;;  %v692_v35 = vadd.f32 %v5152_v53, %v7495_v45  ;;  %v885_v37 = vadd.f32 %v5358_v56, %v751_v55  ;;  %v1259_v29 = vmul.f32 %v5166_v34, %v1242_v46 }
 0x2d6   :  { %v975_v25 = vand.u32 2147483647, %v959_v44  ;;  %v559_v20 = vadd.f32 %v5147_v59, %v7496_v8  ;;  %v1003_v28 = vmul.f32 %v5156_v41, %v986_v54  ;;  %v1141_v50 = vadd.f32 %v1125_v58, %v1007_v3  ;;  %v7499_v44 = vld [vmem:[#allocation58_spill] sm:$0xff] }
 0x2d7   :  { %v740_v39 = vadd.f32 %v724_v24, %v606_v63  ;;  %v7497_v32 = vunpack.c.h.bf16 %v7489_v40  ;;  %v1238_v31 = vadd.f32 %v5207_v11, %v5458_v60  ;;  %v5519_v48 = vadd.f32 %v1392_v38, %v1274_v43  ;;  %v7500_v43 = vld [vmem:[#allocation65_spill] sm:$0xff] }
 0x2d8   :  { %v1393_v56 = vmul.f32 %v7465_v10, %v1376_v26  ;;  %v1093_v9 = vadd.f32 %v5186_v52, %v7498_v19  ;;  %v858_v55 = vmul.f32 %v5154_v57, %v841_v6  ;;  %v591_v27 = vmul.f32 %v5140_v30, %v574_v14 }
 0x2d9   :  { %v941_v51 = vpop.permute.xlu1 %940  ;;  %v457_v42 = vadd.f32 %v7497_v32, %v5232_v12  ;;  %v708_v46 = vand.u32 2147483647, %v692_v35  ;;  %v826_v54 = vadd.f32 %v5162_v18, %v7499_v44  ;;  %v566_v3 = vadd.f32 %v5147_v59, %v537_v36  ;;  %v7501_v35 = vld [vmem:[#allocation52_spill] sm:$0xff] }
 0x2da   :  { %v992_v63 = vmul.f32 %v5156_v41, %v975_v25  ;;  %v575_v60 = vand.u32 2147483647, %v559_v20  ;;  %v693_v38 = vadd.f32 %v5152_v53, %v7500_v43  ;;  %v1019_v58 = vadd.f32 %v1003_v28, %v885_v37  ;;  %v7502_v36 = vld [vmem:[#allocation112_spill] sm:$0xff]  ;;  %v7504_v37 = vld [vmem:[#allocation82_spill] sm:$0xff] }
 0x2db   :  { %v1275_v26 = vadd.f32 %v1259_v29, %v1141_v50  ;;  %v874_v24 = vadd.f32 %v858_v55, %v740_v39  ;;  %v607_v45 = vadd.f32 %v591_v27, %v457_v42  ;;  %v700_v6 = vadd.f32 %v5152_v53, %v673_v17  ;;  %v7505_v39 = vld [vmem:[#allocation66_spill] sm:$0xff]  ;;  %v7506_v27 = vld [vmem:[#allocation73_spill] sm:$0xff] }
 0x2dc   :  { %v1109_v14 = vand.u32 2147483647, %v1093_v9  ;;  %v1227_v32 = vadd.f32 %v5207_v11, %v7501_v35  ;;  %v7503_v19 = vunpack.c.l.bf16 %v7502_v36  ;;  %v1254_v20 = vand.u32 2147483647, %v1238_v31 }
 0x2dd   :  { %v725_v44 = vmul.f32 %v5142_v5, %v708_v46  ;;  %v842_v43 = vand.u32 2147483647, %v826_v54  ;;  %v960_v29 = vadd.f32 %v5181_v22, %v7504_v37  ;;  %v582_v28 = vand.u32 2147483647, %v566_v3 }
 0x2de   :  { %v5533_v8 = vpop.permute.xlu1 %1208  ;;  %v458_v25 = vadd.f32 %v7503_v19, %v5232_v12  ;;  %v592_v17 = vmul.f32 %v5140_v30, %v575_v60  ;;  %v709_v50 = vand.u32 2147483647, %v693_v38  ;;  %v827_v42 = vadd.f32 %v5162_v18, %v7505_v39 }
 0x2df   :  { %v1153_v9 = vadd.f32 %v5361_v21, %v1019_v58  ;;  %v1008_v55 = vadd.f32 %v992_v63, %v874_v24  ;;  %v1361_v35 = vadd.f32 %v5242_v1, %v7506_v27  ;;  %v741_v31 = vadd.f32 %v725_v44, %v607_v45  ;;  %v7508_v24 = vld [vmem:[#allocation46_spill] sm:$0xff]  ;;  %v5560_v45 = vpop.trf.xlu0 }
 0x2e0   :  { %v716_v19 = vand.u32 2147483647, %v700_v6  ;;  %v5549_v46 = vadd.f32 %v1393_v56, %v1275_v26  ;;  %v1126_v54 = vmul.f32 %v5164_v33, %v1109_v14  ;;  %v608_v37 = vadd.f32 %v592_v17, %v458_v25  ;;  %7509 = vst [vmem:[#allocation35_spill] sm:$0xff] %v5560_v45 }
 0x2e1   :  { %v1243_v40 = vand.u32 2147483647, %v1227_v32  ;;  %v859_v60 = vmul.f32 %v5154_v57, %v842_v43  ;;  %v976_v38 = vand.u32 2147483647, %v960_v29  ;;  %v1094_v39 = vadd.f32 %v5186_v52, %v7507_v15  ;;  %v7510_v15 = vld [vmem:[#allocation83_spill] sm:$0xff] }
 0x2e2   :  { %v599_v21 = vmul.f32 %v5140_v30, %v582_v28  ;;  %v726_v63 = vmul.f32 %v5142_v5, %v709_v50  ;;  %v843_v58 = vand.u32 2147483647, %v827_v42  ;;  %v961_v56 = vadd.f32 %v5181_v22, %v7508_v24 }
 0x2e3   :  { %v1315_v3 = vpop.permute.xlu1 %1314  ;;  %v1271_v26 = vmul.f32 %v5166_v34, %v1254_v20  ;;  %v1142_v6 = vadd.f32 %v1126_v54, %v1008_v55  ;;  %v1377_v14 = vand.u32 2147483647, %v1361_v35  ;;  %v875_v32 = vadd.f32 %v859_v60, %v741_v31  ;;  %v7511_v20 = vld [vmem:[#allocation74_spill] sm:$0xff] }
 0x2e4   :  { %v733_v25 = vmul.f32 %v5142_v5, %v716_v19  ;;  %v968_v44 = vadd.f32 %v5181_v22, %v941_v51  ;;  %v1228_v43 = vadd.f32 %v5207_v11, %v7510_v15  ;;  %v742_v29 = vadd.f32 %v726_v63, %v608_v37  ;;  %v7512_v19 = vld [vmem:[#allocation67_spill] sm:$0xff]  ;;  %v7513_v63 = vld [vmem:[#allocation92_spill] sm:$0xff] }
 0x2e5   :  { %v1260_v17 = vmul.f32 %v5166_v34, %v1243_v40  ;;  %v993_v50 = vmul.f32 %v5156_v41, %v976_v38  ;;  %v1110_v42 = vand.u32 2147483647, %v1094_v39  ;;  %v560_v27 = vadd.f32 %v5147_v59, %v7511_v20 }
 0x2e6   :  { %v615_v55 = vadd.f32 %v599_v21, %v5366_v49  ;;  %v860_v35 = vmul.f32 %v5154_v57, %v843_v58  ;;  %v977_v31 = vand.u32 2147483647, %v961_v56  ;;  %v1095_v51 = vadd.f32 %v5186_v52, %v7512_v19  ;;  %v1441_v20 = vpop.permute.xlu0 %1440  ;;  %v7514_v56 = vld [vmem:[#allocation75_spill] sm:$0xff] }
 0x2e7   :  { %v1323_v28 = vpop.permute.xlu1 %1322  ;;  %v5574_v54 = vadd.f32 %v1271_v26, %v1153_v9  ;;  %v1276_v37 = vadd.f32 %v1260_v17, %v1142_v6  ;;  %v1009_v60 = vadd.f32 %v993_v50, %v875_v32  ;;  %v1362_v40 = vadd.f32 %v5242_v1, %v7513_v63 }
 0x2e8   :  { %v749_v38 = vadd.f32 %v733_v25, %v615_v55  ;;  %v984_v39 = vand.u32 2147483647, %v968_v44  ;;  %v1244_v24 = vand.u32 2147483647, %v1228_v43  ;;  %v876_v15 = vadd.f32 %v860_v35, %v742_v29  ;;  %v7515_v25 = vld [vmem:[#allocation48_spill] sm:$0xff] }
 0x2e9   :  { %v1394_v49 = vmul.f32 %v7465_v10, %v1377_v14  ;;  %v1127_v21 = vmul.f32 %v5164_v33, %v1110_v42  ;;  %v576_v58 = vand.u32 2147483647, %v560_v27  ;;  %v694_v9 = vadd.f32 %v5152_v53, %v7514_v56 }
 0x2ea   :  { %v1363_v26 = vadd.f32 %v5242_v1, %v1315_v3  ;;  %v994_v6 = vmul.f32 %v5156_v41, %v977_v31  ;;  %v1111_v32 = vand.u32 2147483647, %v1095_v51  ;;  %v1229_v44 = vadd.f32 %v5207_v11, %v7515_v25  ;;  %v7517_v51 = vld [vmem:[#allocation54_spill] sm:$0xff] }
 0x2eb   :  { %v5578_v45 = vpop.permute.xlu1 %1330  ;;  %v5588_v43 = vadd.f32 %v1394_v49, %v1276_v37  ;;  %v1143_v29 = vadd.f32 %v1127_v21, %v1009_v60  ;;  %v1378_v17 = vand.u32 2147483647, %v1362_v40  ;;  %v7516_v14 = vunpack.c.h.bf16 %v7502_v36  ;;  %v7518_v60 = vld [vmem:[#allocation76_spill] sm:$0xff]  ;;  %v7520_v25 = vld [vmem:[#allocation78_spill] sm:$0xff] }
 0x2ec   :  { %v883_v42 = vadd.f32 %v5414_v62, %v749_v38  ;;  %v1001_v27 = vmul.f32 %v5156_v41, %v984_v39  ;;  %v1261_v3 = vmul.f32 %v5166_v34, %v1244_v24  ;;  %v1010_v55 = vadd.f32 %v994_v6, %v876_v15  ;;  %v7519_v38 = vld [vmem:[#allocation56_spill] sm:$0xff]  ;;  %v1449_v15 = vpop.permute.xlu0 %1448 }
 0x2ed   :  { %v459_v50 = vadd.f32 %v7516_v14, %v5232_v12  ;;  %v593_v31 = vmul.f32 %v5140_v30, %v576_v58  ;;  %v710_v19 = vand.u32 2147483647, %v694_v9  ;;  %v828_v37 = vadd.f32 %v5162_v18, %v7517_v51 }
 0x2ee   :  { %v962_v63 = vadd.f32 %v5181_v22, %v7518_v60  ;;  %v1379_v40 = vand.u32 2147483647, %v1363_v26  ;;  %v1128_v49 = vmul.f32 %v5164_v33, %v1111_v32  ;;  %v1245_v62 = vand.u32 2147483647, %v1229_v44 }
 0x2ef   :  { %v5596_v35 = vpop.permute.xlu1 %1338  ;;  %v1096_v39 = vadd.f32 %v5186_v52, %v7519_v38  ;;  %v5608_v24 = vadd.f32 %v5207_v11, %v5533_v8  ;;  %v1277_v21 = vadd.f32 %v1261_v3, %v1143_v29  ;;  %v1395_v58 = vmul.f32 %v7465_v10, %v1378_v17 }
 0x2f0   :  { %v609_v56 = vadd.f32 %v593_v31, %v459_v50  ;;  %v5611_v9 = vadd.f32 %v1001_v27, %v883_v42  ;;  %v1495_v6 = vadd.f32 %v5248_v16, %v1441_v20  ;;  %v1144_v26 = vadd.f32 %v1128_v49, %v1010_v55  ;;  %v7521_v42 = vld [vmem:[#allocation93_spill] sm:$0xff] }
 0x2f1   :  { %v1230_v32 = vadd.f32 %v5207_v11, %v7520_v25  ;;  %v1365_v44 = vadd.f32 %v5242_v1, %v1323_v28  ;;  %v727_v8 = vmul.f32 %v5142_v5, %v710_v19  ;;  %v844_v51 = vand.u32 2147483647, %v828_v37  ;;  %v7522_v28 = vld [vmem:[#allocation85_spill] sm:$0xff] }
 0x2f2   :  { %v978_v60 = vand.u32 2147483647, %v962_v63  ;;  %v1396_v29 = vmul.f32 %v7465_v10, %v1379_v40  ;;  %v1262_v17 = vmul.f32 %v5166_v34, %v1245_v62  ;;  %v1112_v50 = vand.u32 2147483647, %v1096_v39  ;;  %v7523_v63 = vld [vmem:[#allocation94_spill] sm:$0xff]  ;;  %v1457_v62 = vpop.permute.xlu0 %1456 }
 0x2f3   :  { %v5617_v14 = vpop.permute.xlu1 %1346  ;;  %v695_v20 = vadd.f32 %v5152_v53, %v7521_v42  ;;  %v5625_v3 = vadd.f32 %v1395_v58, %v1277_v21  ;;  %v743_v55 = vadd.f32 %v727_v8, %v609_v56  ;;  %v563_v31 = vadd.f32 %v5147_v59, %v7522_v28  ;;  %v7524_v42 = vld [vmem:[#allocation103_spill] sm:$0xff] }
 0x2f4   :  { %v1511_v49 = vand.u32 2147483647, %v1495_v6  ;;  %v1278_v19 = vadd.f32 %v1262_v17, %v1144_v26  ;;  %v1246_v37 = vand.u32 2147483647, %v1230_v32  ;;  %v1364_v40 = vadd.f32 %v5242_v1, %v7523_v63  ;;  %v7525_v6 = vld [vmem:[#allocation95_spill] sm:$0xff] }
 0x2f5   :  { %v1381_v38 = vand.u32 2147483647, %v1365_v44  ;;  %v861_v39 = vmul.f32 %v5154_v57, %v844_v51  ;;  %v995_v25 = vmul.f32 %v5156_v41, %v978_v60  ;;  %v7292_v27 = vunpack.c.l.bf16 %v7524_v42  ;;  %v7526_v17 = vld [vmem:[#allocation87_spill] sm:$0xff] }
 0x2f6   :  { %v5634_v58 = vadd.f32 %v1396_v29, %v1278_v19  ;;  %v1129_v56 = vmul.f32 %v5164_v33, %v1112_v50  ;;  %v711_v59 = vand.u32 2147483647, %v695_v20  ;;  %v829_v26 = vadd.f32 %v5162_v18, %v7525_v6 }
 0x2f7   :  { %v877_v8 = vadd.f32 %v861_v39, %v743_v55  ;;  %v579_v44 = vand.u32 2147483647, %v563_v31  ;;  %v697_v51 = vadd.f32 %v5152_v53, %v7526_v17  ;;  %v1528_v60 = vmul.f32 %v7466_v2, %v1511_v49  ;;  %v7527_v39 = vld [vmem:[#allocation62_spill] sm:$0xff] }
 0x2f8   :  { %v1425_v21 = vpop.permute.xlu1 %1424  ;;  %v1497_v28 = vadd.f32 %v5248_v16, %v1449_v15  ;;  %v1263_v29 = vmul.f32 %v5166_v34, %v1246_v37  ;;  %v1380_v19 = vand.u32 2147483647, %v1364_v40  ;;  %v5646_v50 = vmul.f32 %v7465_v10, %v1381_v38  ;;  %v7528_v37 = vld [vmem:[#allocation89_spill] sm:$0xff]  ;;  %v1465_v38 = vpop.permute.xlu0 %1464 }
 0x2f9   :  { %v1491_v32 = vadd.f32 %v5248_v16, %v1425_v21  ;;  %v1367_v20 = vadd.f32 %v5242_v1, %v5578_v45  ;;  %v462_v55 = vadd.f32 %v7292_v27, %v5232_v12  ;;  %v728_v53 = vmul.f32 %v5142_v5, %v711_v59 }
 0x2fa   :  { %v845_v49 = vand.u32 2147483647, %v829_v26  ;;  %v963_v15 = vadd.f32 %v5181_v22, %v7527_v39  ;;  %v831_v40 = vadd.f32 %v5162_v18, %v7528_v37  ;;  %v596_v6 = vmul.f32 %v5140_v30, %v579_v44  ;;  %v7529_v30 = vld [vmem:[#allocation97_spill] sm:$0xff] }
 0x2fb   :  { %v1507_v63 = vand.u32 2147483647, %v1491_v32  ;;  %v713_v32 = vand.u32 2147483647, %v697_v51  ;;  %v1513_v17 = vand.u32 2147483647, %v1497_v28  ;;  %v5662_v12 = vadd.f32 %v1528_v60, %v5588_v43 }
 0x2fc   :  { %v1433_v31 = vpop.permute.xlu1 %1432  ;;  %v1011_v59 = vadd.f32 %v995_v25, %v877_v8  ;;  %v744_v26 = vadd.f32 %v728_v53, %v5347_v4  ;;  %v1397_v18 = vmul.f32 %v7465_v10, %v1380_v19  ;;  %v612_v37 = vadd.f32 %v596_v6, %v462_v55  ;;  %v7531_v6 = vld [vmem:[#allocation63_spill] sm:$0xff] }
 0x2fd   :  { %v1524_v21 = vmul.f32 %v7466_v2, %v1507_v63  ;;  %v1493_v45 = vadd.f32 %v5248_v16, %v1433_v31  ;;  %v862_v31 = vmul.f32 %v5154_v57, %v845_v49  ;;  %v979_v42 = vand.u32 2147483647, %v963_v15  ;;  %v1473_v49 = vpop.permute.xlu0 %1472 }
 0x2fe   :  { %v1097_v44 = vadd.f32 %v5186_v52, %v7529_v30  ;;  %v847_v51 = vand.u32 2147483647, %v831_v40  ;;  %v730_v4 = vmul.f32 %v5142_v5, %v713_v32  ;;  %v1530_v60 = vmul.f32 %v7466_v2, %v1513_v17  ;;  %v7532_v32 = vld [vmem:[#allocation91_spill] sm:$0xff] }
 0x2ff   :  { %v1509_v27 = vand.u32 2147483647, %v1493_v45  ;;  %v5666_v39 = vadd.f32 %v1524_v21, %v5502_v7  ;;  %v7530_v7 = vld [vmem:[#allocation60_spill] sm:$0xff]  ;;  %v1383_v28 = vand.u32 2147483647, %v1367_v20  ;;  %v1145_v19 = vadd.f32 %v1129_v56, %v1011_v59 }
 0x300   :  { %v1437_v63 = vpop.permute.xlu1 %1436  ;;  %v965_v8 = vadd.f32 %v5181_v22, %v7530_v7  ;;  %v878_v55 = vadd.f32 %v862_v31, %v744_v26  ;;  %v1499_v53 = vadd.f32 %v5248_v16, %v1457_v62  ;;  %v746_v40 = vadd.f32 %v730_v4, %v612_v37 }
 0x301   :  { %v1526_v43 = vmul.f32 %v7466_v2, %v1509_v27  ;;  %v1494_v25 = vadd.f32 %v5248_v16, %v1437_v63  ;;  %1556 = vmax.xlane.f32.xlu0 %v5666_v39  ;;  %v996_v45 = vmul.f32 %v5156_v41, %v979_v42  ;;  %v1113_v5 = vand.u32 2147483647, %v1097_v44  ;;  %v1481_v4 = vpop.permute.xlu0 %1480 }
 0x302   :  { %v1231_v22 = vadd.f32 %v5207_v11, %v7531_v6  ;;  %v1099_v20 = vadd.f32 %v5186_v52, %v7532_v32  ;;  %v981_v17 = vand.u32 2147483647, %v965_v8  ;;  %v5693_v59 = vmul.f32 %v7465_v10, %v1383_v28  ;;  %v7533_v8 = vld [vmem:[#allocation61_spill] sm:$0xff]  ;;  %v7535_v32 = vld [vmem:[#allocation72_spill] sm:$0xff] }
 0x303   :  { %v1510_v15 = vand.u32 2147483647, %v1494_v25  ;;  %v5681_v27 = vadd.f32 %v1526_v43, %v5519_v48  ;;  %v864_v48 = vmul.f32 %v5154_v57, %v847_v51  ;;  %v5697_v42 = vadd.f32 %v5242_v1, %v5596_v35 }
 0x304   :  { %v1445_v21 = vpop.permute.xlu1 %1444  ;;  %v1501_v26 = vadd.f32 %v5248_v16, %v1465_v38  ;;  %v1012_v37 = vadd.f32 %v996_v45, %v878_v55  ;;  %v1279_v31 = vadd.f32 %v1263_v29, %v1145_v19  ;;  %v1515_v44 = vand.u32 2147483647, %v1499_v53 }
 0x305   :  { %v1527_v56 = vmul.f32 %v7466_v2, %v1510_v15  ;;  %v1496_v62 = vadd.f32 %v5248_v16, %v1445_v21  ;;  %1560 = vmax.xlane.f32.xlu0 %v5681_v27  ;;  %v880_v30 = vadd.f32 %v864_v48, %v746_v40  ;;  %v1130_v57 = vmul.f32 %v5164_v33, %v1113_v5  ;;  %v7534_v21 = vld [vmem:[#allocation98_spill] sm:$0xff]  ;;  %v7536_v48 = vld [vmem:[#allocation96_spill] sm:$0xff] }
 0x306   :  { %v1247_v51 = vand.u32 2147483647, %v1231_v22  ;;  %v1115_v25 = vand.u32 2147483647, %v1099_v20  ;;  %v998_v38 = vmul.f32 %v5156_v41, %v981_v17  ;;  %v1517_v29 = vand.u32 2147483647, %v1501_v26 }
 0x307   :  { %v1512_v52 = vand.u32 2147483647, %v1496_v62  ;;  %v5701_v63 = vadd.f32 %v1527_v56, %v5549_v46  ;;  %v1233_v46 = vadd.f32 %v5207_v11, %v7533_v8  ;;  %v1371_v28 = vadd.f32 %v5242_v1, %v5617_v14  ;;  %v7538_v8 = vld [vmem:[#allocation99_spill] sm:$0xff] }
 0x308   :  { %v1453_v43 = vpop.permute.xlu1 %1452  ;;  %v5713_v19 = vadd.f32 %v1530_v60, %v5634_v58  ;;  %v1146_v55 = vadd.f32 %v1130_v57, %v1012_v37  ;;  %v1014_v40 = vadd.f32 %v998_v38, %v880_v30  ;;  %v1368_v45 = vadd.f32 %v5242_v1, %v7534_v21 }
 0x309   :  { %v1529_v7 = vmul.f32 %v7466_v2, %v1512_v52  ;;  %v1498_v35 = vadd.f32 %v5248_v16, %v1453_v43  ;;  %1562 = vmax.xlane.f32.xlu0 %v5701_v63  ;;  %v1505_v41 = vadd.f32 %v5248_v16, %v1481_v4  ;;  %v1413_v6 = vadd.f32 %v1397_v18, %v1279_v31 }
 0x30a   :  { %v1264_v22 = vmul.f32 %v5166_v34, %v1247_v51  ;;  %v1237_v14 = vadd.f32 %v5207_v11, %v7535_v32  ;;  %v1532_v58 = vmul.f32 %v7466_v2, %v1515_v44  ;;  %v1249_v20 = vand.u32 2147483647, %v1233_v46 }
 0x30b   :  { %v1514_v53 = vand.u32 2147483647, %v1498_v35  ;;  %v5716_v15 = vadd.f32 %v1529_v7, %v5625_v3  ;;  %v1132_v3 = vmul.f32 %v5164_v33, %v1115_v25  ;;  %v1387_v56 = vand.u32 2147483647, %v1371_v28  ;;  %v7537_v7 = vld [vmem:[#allocation77_spill] sm:$0xff] }
 0x30c   :  { %v1461_v5 = vpop.permute.xlu1 %1460  ;;  %v1280_v18 = vadd.f32 %v1264_v22, %v1146_v55  ;;  %v1366_v17 = vadd.f32 %v5242_v1, %v7536_v48  ;;  %v1534_v26 = vmul.f32 %v7466_v2, %v1517_v29  ;;  %v1384_v31 = vand.u32 2147483647, %v1368_v45 }
 0x30d   :  { %v1531_v60 = vmul.f32 %v7466_v2, %v1514_v53  ;;  %1564 = vmax.xlane.f32.xlu0 %v5662_v12  ;;  %1566 = vmax.xlane.f32.xlu1 %v5716_v15  ;;  %v1500_v62 = vadd.f32 %v5248_v16, %v1461_v5  ;;  %v1148_v52 = vadd.f32 %v1132_v3, %v1014_v40  ;;  %v1521_v44 = vand.u32 2147483647, %v1505_v41 }
 0x30e   :  { %v1503_v30 = vadd.f32 %v5248_v16, %v1473_v49  ;;  %v1414_v33 = vadd.f32 %v5646_v50, %v1280_v18  ;;  %v1253_v57 = vand.u32 2147483647, %v1237_v14  ;;  %v1385_v51 = vand.u32 2147483647, %v5697_v42 }
 0x30f   :  { %v5733_v37 = vadd.f32 %v1531_v60, %v1413_v6  ;;  %v1266_v4 = vmul.f32 %v5166_v34, %v1249_v20  ;;  %v1235_v35 = vadd.f32 %v5207_v11, %v7537_v7  ;;  %v1516_v38 = vand.u32 2147483647, %v1500_v62  ;;  %v7539_v62 = vld [vmem:[#allocation100_spill] sm:$0xff] }
 0x310   :  { %v1469_v43 = vpop.permute.xlu1 %1468  ;;  %v1382_v49 = vand.u32 2147483647, %v1366_v17  ;;  %v1372_v46 = vadd.f32 %v5242_v1, %v7538_v8  ;;  %v5746_v29 = vadd.f32 %v1532_v58, %v1414_v33  ;;  %v1401_v28 = vmul.f32 %v7465_v10, %v1384_v31  ;;  %v7545_v8 = vld [vmem:[#allocation32_spill] sm:$0xff] }
 0x311   :  { %v1502_v25 = vadd.f32 %v5248_v16, %v1469_v43  ;;  %1568 = vmax.xlane.f32.xlu0 %v5713_v19  ;;  %1570 = vmax.xlane.f32.xlu1 %v5733_v37  ;;  %v1282_v42 = vadd.f32 %v1266_v4, %v1148_v52  ;;  %v7298_v55 = vmov 31   ;;  %v1404_v53 = vmul.f32 %v7465_v10, %v1387_v56 }
 0x312   :  { %4010 = vset.pattern.permute.xlu0 %v7298_v55  ;;  %v1519_v40 = vand.u32 2147483647, %v1503_v30  ;;  %v1538_v21 = vmul.f32 %v7466_v2, %v1521_v44  ;;  %v1270_v45 = vmul.f32 %v5166_v34, %v1253_v57  ;;  %v1417_v6 = vadd.f32 %v1401_v28, %v5387_v47 }
 0x313   :  { %v1518_v50 = vand.u32 2147483647, %v1502_v25  ;;  %v1416_v5 = vadd.f32 %v5693_v59, %v1282_v42  ;;  %v1251_v22 = vand.u32 2147483647, %v1235_v35  ;;  %v1533_v32 = vmul.f32 %v7466_v2, %v1516_v38 }
 0x314   :  { %v1477_v11 = vpop.permute.xlu1 %1476  ;;  %v1286_v14 = vadd.f32 %v1270_v45, %v5427_v23  ;;  %v1399_v58 = vmul.f32 %v7465_v10, %v1382_v49  ;;  %v1388_v60 = vand.u32 2147483647, %v1372_v46  ;;  %v1370_v18 = vadd.f32 %v5242_v1, %v7539_v62  ;;  %v7543_v49 = vld [vmem:[#allocation33_spill] sm:$0xff]  ;;  %v7547_v46 = vld [vmem:[#allocation31_spill] sm:$0xff] }
 0x315   :  { %v1535_v41 = vmul.f32 %v7466_v2, %v1518_v50  ;;  %1572 = vmax.xlane.f32.xlu0 %v5746_v29  ;;  %v1504_v3 = vadd.f32 %v5248_v16, %v1477_v11  ;;  %v5761_v20 = vadd.f32 %v1534_v26, %v1416_v5  ;;  %v1151_v47 = vadd.f32 %v5432_v13, %v5611_v9  ;;  %v7548_v50 = vld [vmem:[#allocation26_spill] sm:$0xff]  ;;  %v7551_v11 = vld [vmem:[#allocation28_spill] sm:$0xff]  ;;  %v7552_v45 = vld [vmem:[#allocation29_spill] sm:$0xff] }
 0x316   :  { %v7540_v59 = vand.u32 2147483647, %v5608_v24  ;;  %v1420_v17 = vadd.f32 %v1404_v53, %v1286_v14  ;;  %v1415_v52 = vadd.f32 %v1399_v58, %v5397_v0  ;;  %v1402_v31 = vmul.f32 %v7465_v10, %v1385_v51 }
 0x317   :  { %v5763_v56 = vadd.f32 %v1535_v41, %v1417_v6  ;;  %v1268_v1 = vmul.f32 %v5166_v34, %v1251_v22  ;;  %v1536_v13 = vmul.f32 %v7466_v2, %v1519_v40  ;;  %v1405_v30 = vmul.f32 %v7465_v10, %v1388_v60 }
 0x318   :  { %v1269_v48 = vmul.f32 %v5166_v34, %v7540_v59  ;;  %v1485_v23 = vpop.permute.xlu1 %1484  ;;  %v5779_v9 = vadd.f32 %v1538_v21, %v1420_v17  ;;  %v5781_v24 = vadd.f32 %v1533_v32, %v1415_v52  ;;  %v1520_v44 = vand.u32 2147483647, %v1504_v3 }
 0x319   :  { %v1506_v26 = vadd.f32 %v5248_v16, %v1485_v23  ;;  %1576 = vmax.xlane.f32.xlu0 %v5761_v20  ;;  %1578 = vmax.xlane.f32.xlu1 %v5763_v56  ;;  %v1284_v43 = vadd.f32 %v1268_v1, %v5480_v61  ;;  %v1386_v33 = vand.u32 2147483647, %v1370_v18  ;;  %v1421_v51 = vadd.f32 %v1405_v30, %v5574_v54  ;;  %v7544_v54 = vld [vmem:[#allocation30_spill] sm:$0xff] }
 0x31a   :  { %7541 = vst [vmem:[#allocation81_spill] sm:$0xff] %v5779_v9  ;;  %v1285_v16 = vadd.f32 %v1269_v48, %v1151_v47  ;;  %v1537_v25 = vmul.f32 %v7466_v2, %v1520_v44  ;;  %v7300_v42 = vmov 28   ;;  %v7549_v28 = vmov 25  }
 0x31b   :  { %v1522_v0 = vand.u32 2147483647, %v1506_v26  ;;  %v1418_v34 = vadd.f32 %v1402_v31, %v1284_v43  ;;  %v1403_v35 = vmul.f32 %v7465_v10, %v1386_v33  ;;  %v7546_v10 = vmov 24  }
 0x31c   :  { %v7306_v53 = vmov 29   ;;  %v7550_v40 = vmov 26   ;;  %v7296_v21 = vmov 30  }
 0x31d   :  { %v1539_v57 = vmul.f32 %v7466_v2, %v1522_v0  ;;  %1584 = vmax.xlane.f32.xlu0 %v5779_v9  ;;  %1574 = vmax.xlane.f32.xlu1 %v5781_v24  ;;  %v5790_v4 = vadd.f32 %v1536_v13, %v1418_v34  ;;  %v1419_v61 = vadd.f32 %v1403_v35, %v1285_v16  ;;  %v7294_v2 = vmov 27   ;;  %v5853_v59 = vpop.permute.xlu1 %1840  ;;  %v7558_v13 = vld [vmem:[#allocation25_spill] sm:$0xff] }
 0x31e   :  { %7554 = vst [vmem:[#allocation34_spill] sm:$0xff] %v5853_v59 }
 0x31f   :  { %v5792_v7 = vadd.f32 %v1539_v57, %v1421_v51  ;;  %v5797_v38 = vadd.f32 %v1537_v25, %v1419_v61 }
 0x321   :  { %7542 = vst [vmem:[#allocation113_spill] sm:$0xff] %v5792_v7  ;;  %1580 = vmax.xlane.f32.xlu0 %v5790_v4  ;;  %1586 = vmax.xlane.f32.xlu1 %v5792_v7 }
 0x322   :  { %v5863_v31 = vpop.permute.xlu1 %1970 }
 0x325   :  { %1582 = vmax.xlane.f32.xlu1 %v5797_v38 }
 0x326   :  { %v5872_v30 = vpop.permute.xlu1 %1974 }
 0x327   :  { %7559 = vst [vmem:[#allocation47_spill] sm:$0xff] %v5872_v30 }
 0x32b   :  { %v5882_v16 = vpop.permute.xlu1 %2104 }
 0x336   :  { %2108 = vperm.xlu1 %4000, %v7543_v49  }
 0x337   :  { %2778 = vperm.xlu0 %4010, %v7543_v49  }
 0x33a   :  { %4001 = vset.pattern.permute.xlu1 %v7294_v2 }
 0x33b   :  { %2782 = vperm.xlu0 %4010, %v7544_v54   ;;  %2238 = vperm.xlu1 %4001, %v7545_v8  }
 0x33f   :  { %4018 = vset.pattern.permute.xlu0 %v7546_v10  ;;  %2242 = vperm.xlu1 %4001, %v7543_v49  }
 0x340   :  { %1836 = vperm.xlu0 %4018, %v7545_v8  }
 0x343   :  { %4002 = vset.pattern.permute.xlu1 %v7546_v10 }
 0x344   :  { %1848 = vperm.xlu0 %4018, %v7547_v46   ;;  %1844 = vperm.xlu1 %4002, %v7544_v54  }
 0x348   :  { %1864 = vperm.xlu0 %4018, %v7548_v50   ;;  %4003 = vset.pattern.permute.xlu1 %v7300_v42 }
 0x349   :  { %2372 = vperm.xlu1 %4003, %v7545_v8  }
 0x34d   :  { %4004 = vset.pattern.permute.xlu1 %v7549_v28 }
 0x34e   :  { %1978 = vperm.xlu1 %4004, %v7544_v54  }
 0x352   :  { %1982 = vperm.xlu1 %4004, %v7547_v46  }
 0x356   :  { %4005 = vset.pattern.permute.xlu1 %v7306_v53 }
 0x357   :  { %2510 = vperm.xlu1 %4005, %v7543_v49  }
 0x35b   :  { %4006 = vset.pattern.permute.xlu1 %v7550_v40 }
 0x35c   :  { %2112 = vperm.xlu1 %4006, %v7544_v54  }
 0x35d   :  { %v1559_v34 = vpop.xlane.xlu1 %1558 }
 0x360   :  { %4007 = vset.pattern.permute.xlu1 %v7296_v21 }
 0x361   :  { %2640 = vperm.xlu1 %4007, %v7545_v8  }
 0x365   :  { %2644 = vperm.xlu1 %4007, %v7543_v49  }
 0x369   :  { %4008 = vset.pattern.permute.xlu1 %v7294_v2 }
 0x36a   :  { %2250 = vperm.xlu1 %4008, %v7547_v46  }
 0x36e   :  { %4009 = vset.pattern.permute.xlu1 %v7298_v55 }
 0x36f   :  { %2774 = vperm.xlu1 %4009, %v7545_v8  }
 0x373   :  { %4011 = vset.pattern.permute.xlu1 %v7546_v10 }
 0x374   :  { %1852 = vperm.xlu1 %4011, %v7551_v11  }
 0x378   :  { %1856 = vperm.xlu1 %4011, %v7552_v45  }
 0x37c   :  { %4012 = vset.pattern.permute.xlu1 %v7300_v42 }
 0x37d   :  { %2384 = vperm.xlu1 %4012, %v7547_v46  }
 0x381   :  { %4013 = vset.pattern.permute.xlu1 %v7549_v28 }
 0x382   :  { %1986 = vperm.xlu1 %4013, %v7551_v11  }
 0x386   :  { %4014 = vset.pattern.permute.xlu1 %v7306_v53 }
 0x387   :  { %2514 = vperm.xlu1 %4014, %v7544_v54  }
 0x38a   :  { %v1557_v41 = vpop.xlane.xlu0 %1556 }
 0x38b   :  { %v1588_v5 = vsub.f32 %v5666_v39, %v1557_v41  ;;  %2518 = vperm.xlu1 %4014, %v7547_v46  }
 0x38d   :  { %v1604_v6 = vmul.f32 1.442695, %v1588_v5  ;;  %v7565_v5 = vld [vmem:[#allocation86_spill] sm:$0xff] }
 0x38e   :  { %v1561_v22 = vpop.xlane.xlu0 %1560 }
 0x38f   :  { %4063 = vpow2.f32 %v1604_v6  ;;  %v1590_v32 = vsub.f32 %v5681_v27, %v1561_v22  ;;  %4015 = vset.pattern.permute.xlu1 %v7550_v40  ;;  %v1589_v6 = vsub.f32 %v7565_v5, %v1559_v34  ;;  %v7566_v22 = vld [vmem:[#allocation19_spill] sm:$0xff]  ;;  %v7576_v34 = vld [vmem:[#allocation24_spill] sm:$0xff] }
 0x390   :  { %2124 = vperm.xlu1 %4015, %v7552_v45  }
 0x391   :  { %v1608_v14 = vmul.f32 1.442695, %v1590_v32 }
 0x392   :  { %v5842_v58 = vpop.xlane.xlu0 %1562 }
 0x393   :  { %4065 = vpow2.f32 %v1608_v14  ;;  %v1606_v14 = vmul.f32 1.442695, %v1589_v6 }
 0x394   :  { %4016 = vset.pattern.permute.xlu1 %v7296_v21 }
 0x395   :  { %2648 = vperm.xlu1 %4016, %v7544_v54  }
 0x396   :  { %v1565_v39 = vpop.xlane.xlu0 %1564  ;;  %v1567_v51 = vpop.xlane.xlu1 %1566 }
 0x397   :  { %v1592_v60 = vsub.f32 %v5662_v12, %v1565_v39  ;;  %v1591_v39 = vsub.f32 %v5701_v63, %v5842_v58 }
 0x399   :  { %v1612_v3 = vmul.f32 1.442695, %v1592_v60  ;;  %4017 = vset.pattern.permute.xlu1 %v7294_v2  ;;  %v7567_v60 = vld [vmem:[#allocation27_spill] sm:$0xff] }
 0x39a   :  { %v1569_v62 = vpop.xlane.xlu0 %1568  ;;  %2254 = vperm.xlu1 %4017, %v7551_v11  }
 0x39b   :  { %4067 = vpow2.f32 %v1612_v3  ;;  %v1594_v27 = vsub.f32 %v5713_v19, %v1569_v62  ;;  %v1610_v3 = vmul.f32 1.442695, %v1591_v39  ;;  %v1593_v62 = vsub.f32 %v5716_v15, %v1567_v51 }
 0x39c   :  { %v5850_v18 = vpop.eup %4063 }
 0x39d   :  { %7553 = vst [vmem:[#allocation84_spill] sm:$0xff] %v5850_v18  ;;  %v1616_v47 = vmul.f32 1.442695, %v1594_v27  ;;  %1636 = vadd.xlane.f32.xlu0 %v5850_v18  ;;  %v7594_v18 = vld [vmem:[#allocation20_spill] sm:$0xff] }
 0x39e   :  { %v1573_v48 = vpop.xlane.xlu0 %1572  ;;  %2258 = vperm.xlu1 %4017, %v7552_v45  }
 0x39f   :  { %4069 = vpow2.f32 %v1616_v47  ;;  %v1596_v12 = vsub.f32 %v5746_v29, %v1573_v48  ;;  %v7569_v47 = vld [vmem:[#allocation21_spill] sm:$0xff]  ;;  %v1614_v48 = vmul.f32 1.442695, %v1593_v62 }
 0x3a0   :  { %v5857_v23 = vpop.eup %4065 }
 0x3a1   :  { %7555 = vst [vmem:[#allocation37_spill] sm:$0xff] %v5857_v23  ;;  %v1620_v17 = vmul.f32 1.442695, %v1596_v12  ;;  %1640 = vadd.xlane.f32.xlu0 %v5857_v23 }
 0x3a2   :  { %v1577_v52 = vpop.xlane.xlu0 %1576  ;;  %4019 = vset.pattern.permute.xlu1 %v7298_v55 }
 0x3a3   :  { %4071 = vpow2.f32 %v1620_v17  ;;  %v1598_v19 = vsub.f32 %v5761_v20, %v1577_v52  ;;  %2786 = vperm.xlu1 %4019, %v7547_v46  }
 0x3a5   :  { %v1624_v26 = vmul.f32 1.442695, %v1598_v19 }
 0x3a6   :  { %v5865_v1 = vpop.xlane.xlu0 %1584 }
 0x3a7   :  { %7556 = vst [vmem:[#allocation108_spill] sm:$0xff] %v5865_v1  ;;  %4073 = vpow2.f32 %v1624_v26  ;;  %4020 = vset.pattern.permute.xlu1 %v7546_v10 }
 0x3a8   :  { %v5868_v29 = vpop.eup %4067  ;;  %1860 = vperm.xlu1 %4020, %v7558_v13  }
 0x3a9   :  { %7557 = vst [vmem:[#allocation109_spill] sm:$0xff] %v5868_v29  ;;  %1644 = vadd.xlane.f32.xlu0 %v5868_v29 }
 0x3aa   :  { %v1581_v44 = vpop.xlane.xlu0 %1580 }
 0x3ab   :  { %v1600_v20 = vsub.f32 %v5790_v4, %v1581_v44  ;;  %v1571_v4 = vpop.xlane.xlu1 %1570 }
 0x3ac   :  { %v5875_v0 = vpop.eup %4069  ;;  %4021 = vset.pattern.permute.xlu1 %v7300_v42  ;;  %v1595_v12 = vsub.f32 %v5733_v37, %v1571_v4  ;;  %v7572_v37 = vld [vmem:[#allocation23_spill] sm:$0xff] }
 0x3ad   :  { %7560 = vst [vmem:[#allocation36_spill] sm:$0xff] %v5875_v0  ;;  %v1628_v43 = vmul.f32 1.442695, %v1600_v20  ;;  %1648 = vadd.xlane.f32.xlu0 %v5875_v0  ;;  %2388 = vperm.xlu1 %4021, %v7551_v11  }
 0x3ae   :  { %v1618_v63 = vmul.f32 1.442695, %v1595_v12 }
 0x3af   :  { %4075 = vpow2.f32 %v1628_v43  ;;  %v1579_v35 = vpop.xlane.xlu1 %1578 }
 0x3b0   :  { %v5880_v33 = vpop.eup %4071  ;;  %4077 = vpow2.f32 %v1606_v14  ;;  %v1599_v58 = vsub.f32 %v5763_v56, %v1579_v35  ;;  %v7574_v56 = vld [vmem:[#allocation18_spill] sm:$0xff] }
 0x3b1   :  { %7561 = vst [vmem:[#allocation39_spill] sm:$0xff] %v5880_v33  ;;  %1652 = vadd.xlane.f32.xlu0 %v5880_v33  ;;  %2392 = vperm.xlu1 %4021, %v7552_v45   ;;  %4079 = vpow2.f32 %v1610_v3 }
 0x3b2   :  { %4081 = vpow2.f32 %v1614_v48  ;;  %v1626_v15 = vmul.f32 1.442695, %v1599_v58  ;;  %v5965_v3 = vpop.permute.xlu0 %2778 }
 0x3b3   :  { %v1575_v61 = vpop.xlane.xlu1 %1574  ;;  %4083 = vpow2.f32 %v1618_v63  ;;  %7581 = vst [vmem:[#allocation43_spill] sm:$0xff] %v5965_v3 }
 0x3b4   :  { %v5886_v57 = vpop.eup %4073  ;;  %v1597_v52 = vsub.f32 %v5781_v24, %v1575_v61  ;;  %4085 = vpow2.f32 %v1626_v15 }
 0x3b5   :  { %7562 = vst [vmem:[#allocation49_spill] sm:$0xff] %v5886_v57  ;;  %1656 = vadd.xlane.f32.xlu0 %v5886_v57  ;;  %4022 = vset.pattern.permute.xlu1 %v7549_v28  ;;  %v7596_v57 = vmov 30  }
 0x3b6   :  { %1998 = vperm.xlu1 %4022, %v7548_v50   ;;  %v1622_v44 = vmul.f32 1.442695, %v1597_v52  ;;  %v5972_v48 = vpop.permute.xlu0 %2782 }
 0x3b7   :  { %v5900_v41 = vpop.xlane.xlu1 %1586 }
 0x3b8   :  { %7564 = vst [vmem:[#allocation51_spill] sm:$0xff] %v5900_v41  ;;  %4087 = vpow2.f32 %v1622_v44 }
 0x3ba   :  { %4023 = vset.pattern.permute.xlu1 %v7306_v53 }
 0x3bb   :  { %2522 = vperm.xlu1 %4023, %v7551_v11   ;;  %v5904_v32 = vpop.xlane.xlu1 %1582  ;;  %v5977_v63 = vpop.permute.xlu0 %1836 }
 0x3bc   :  { %v5893_v25 = vpop.eup %4075  ;;  %v1601_v58 = vsub.f32 %v5797_v38, %v5904_v32  ;;  %v7585_v32 = vld [vmem:[#allocation22_spill] sm:$0xff] }
 0x3bd   :  { %7563 = vst [vmem:[#allocation38_spill] sm:$0xff] %v5893_v25  ;;  %1660 = vadd.xlane.f32.xlu0 %v5893_v25  ;;  %v5923_v26 = vpop.eup %4077 }
 0x3be   :  { %7571 = vst [vmem:[#allocation88_spill] sm:$0xff] %v5923_v26  ;;  %v5927_v20 = vpop.eup %4079  ;;  %v1630_v52 = vmul.f32 1.442695, %v1601_v58 }
 0x3bf   :  { %4024 = vset.pattern.permute.xlu1 %v7550_v40  ;;  %v5910_v27 = vpop.permute.xlu1 %2108  ;;  %7573 = vst [vmem:[#allocation42_spill] sm:$0xff] %v5927_v20  ;;  %v5933_v24 = vpop.eup %4081 }
 0x3c0   :  { %2128 = vperm.xlu1 %4024, %v7558_v13   ;;  %7568 = vst [vmem:[#allocation40_spill] sm:$0xff] %v5910_v27  ;;  %7575 = vst [vmem:[#allocation41_spill] sm:$0xff] %v5933_v24  ;;  %v5939_v4 = vpop.eup %4083  ;;  %v5986_v44 = vpop.permute.xlu0 %1848  ;;  %4089 = vpow2.f32 %v1630_v52 }
 0x3c1   :  { %7577 = vst [vmem:[#allocation55_spill] sm:$0xff] %v5939_v4  ;;  %v5944_v35 = vpop.eup %4085 }
 0x3c2   :  { %7578 = vst [vmem:[#allocation44_spill] sm:$0xff] %v5944_v35 }
 0x3c3   :  { %v5915_v17 = vpop.permute.xlu1 %2238 }
 0x3c4   :  { %2132 = vperm.xlu1 %4024, %v7548_v50  }
 0x3c5   :  { %v5950_v5 = vpop.eup %4087 }
 0x3c6   :  { %7579 = vst [vmem:[#allocation68_spill] sm:$0xff] %v5950_v5 }
 0x3c7   :  { %v5921_v19 = vpop.permute.xlu1 %2242 }
 0x3c8   :  { %4025 = vset.pattern.permute.xlu1 %v7296_v21  ;;  %7570 = vst [vmem:[#allocation53_spill] sm:$0xff] %v5921_v19  ;;  %v5991_v21 = vpop.permute.xlu0 %1864 }
 0x3cb   :  { %v5929_v43 = vpop.permute.xlu1 %1844 }
 0x3cf   :  { %v5937_v51 = vpop.permute.xlu1 %2372 }
 0x3d3   :  { %1820 = vperm.xlu0 %4018, %v7566_v22   ;;  %v5946_v61 = vpop.permute.xlu1 %1978 }
 0x3d7   :  { %1872 = vperm.xlu0 %4018, %v7567_v60   ;;  %v5954_v6 = vpop.permute.xlu1 %1982 }
 0x3db   :  { %1876 = vperm.xlu0 %4018, %v7569_v47   ;;  %v5957_v14 = vpop.permute.xlu1 %2510 }
 0x3dc   :  { %7580 = vst [vmem:[#allocation45_spill] sm:$0xff] %v5957_v14 }
 0x3df   :  { %4037 = vset.pattern.permute.xlu0 %v7549_v28  ;;  %v5961_v39 = vpop.permute.xlu1 %2112 }
 0x3e0   :  { %1990 = vperm.xlu0 %4037, %v7552_v45  }
 0x3e3   :  { %v5968_v62 = vpop.permute.xlu1 %2640 }
 0x3e4   :  { %1994 = vperm.xlu0 %4037, %v7558_v13  }
 0x3e7   :  { %v5974_v12 = vpop.permute.xlu1 %2644 }
 0x3e8   :  { %2002 = vperm.xlu0 %4037, %v7572_v37   ;;  %1638 = vadd.xlane.f32.xlu1 %v5923_v26  ;;  %7582 = vst [vmem:[#allocation69_spill] sm:$0xff] %v5974_v12  ;;  %v1739_v12 = vstv %s1738_s26 }
 0x3eb   :  { %v5982_v15 = vpop.permute.xlu1 %2250 }
 0x3ec   :  { %1962 = vperm.xlu0 %4037, %v7574_v56   ;;  %1642 = vadd.xlane.f32.xlu1 %v5927_v20 }
 0x3f0   :  { %2014 = vperm.xlu0 %4037, %v7576_v34   ;;  %1646 = vadd.xlane.f32.xlu1 %v5933_v24 }
 0x3f4   :  { %4040 = vset.pattern.permute.xlu0 %v7550_v40  ;;  %1650 = vadd.xlane.f32.xlu1 %v5939_v4 }
 0x3f5   :  { %2116 = vperm.xlu0 %4040, %v7547_v46  }
 0x3f8   :  { %1658 = vadd.xlane.f32.xlu1 %v5944_v35 }
 0x3f9   :  { %2120 = vperm.xlu0 %4040, %v7551_v11  }
 0x3fc   :  { %1654 = vadd.xlane.f32.xlu1 %v5950_v5 }
 0x3fd   :  { %2136 = vperm.xlu0 %4040, %v7572_v37  }
 0x401   :  { %2096 = vperm.xlu0 %4040, %v7574_v56  }
 0x405   :  { %2148 = vperm.xlu0 %4040, %v7576_v34  }
 0x409   :  { %4043 = vset.pattern.permute.xlu0 %v7294_v2 }
 0x40a   :  { %2246 = vperm.xlu0 %4043, %v7544_v54  }
 0x40d   :  { %2660 = vperm.xlu1 %4025, %v7552_v45  }
 0x40e   :  { %2266 = vperm.xlu0 %4043, %v7548_v50  }
 0x411   :  { %4026 = vset.pattern.permute.xlu1 %v7294_v2  ;;  %v5988_v2 = vpop.permute.xlu1 %2774 }
 0x412   :  { %2270 = vperm.xlu0 %4043, %v7572_v37  }
 0x415   :  { %v5994_v55 = vpop.permute.xlu1 %1852 }
 0x416   :  { %2230 = vperm.xlu0 %4043, %v7574_v56   ;;  %7583 = vst [vmem:[#allocation57_spill] sm:$0xff] %v5994_v55 }
 0x419   :  { %v5999_v58 = vpop.permute.xlu1 %1856 }
 0x41a   :  { %2282 = vperm.xlu0 %4043, %v7576_v34  }
 0x41e   :  { %4046 = vset.pattern.permute.xlu0 %v7300_v42 }
 0x41f   :  { %2376 = vperm.xlu0 %4046, %v7543_v49   ;;  %v6002_v49 = vpop.eup %4089 }
 0x420   :  { %7586 = vst [vmem:[#allocation70_spill] sm:$0xff] %v6002_v49 }
 0x423   :  { %2380 = vperm.xlu0 %4046, %v7544_v54   ;;  %v6008_v54 = vpop.permute.xlu1 %2384 }
 0x426   :  { %v5996_v38 = vpop.xlane.xlu0 %1636 }
 0x427   :  { %2400 = vperm.xlu0 %4046, %v7548_v50   ;;  %7584 = vst [vmem:[#allocation90_spill] sm:$0xff] %v5996_v38  ;;  %v6014_v23 = vpop.permute.xlu1 %1986 }
 0x428   :  { %7589 = vst [vmem:[#allocation80_spill] sm:$0xff] %v6014_v23 }
 0x42a   :  { %v6004_v42 = vpop.xlane.xlu0 %1640 }
 0x42b   :  { %2360 = vperm.xlu0 %4046, %v7585_v32   ;;  %7587 = vst [vmem:[#allocation79_spill] sm:$0xff] %v6004_v42  ;;  %v6019_v25 = vpop.permute.xlu1 %2514 }
 0x42f   :  { %2364 = vperm.xlu0 %4046, %v7574_v56  }
 0x431   :  { %1662 = vadd.xlane.f32.xlu1 %v6002_v49  ;;  %v6026_v49 = vpop.permute.xlu1 %2518 }
 0x432   :  { %v6010_v52 = vpop.xlane.xlu0 %1644 }
 0x433   :  { %2416 = vperm.xlu0 %4046, %v7576_v34   ;;  %7588 = vst [vmem:[#allocation50_spill] sm:$0xff] %v6010_v52 }
 0x435   :  { %v6036_v38 = vpop.permute.xlu1 %2124 }
 0x436   :  { %v6016_v20 = vpop.xlane.xlu0 %1648 }
 0x437   :  { %4049 = vset.pattern.permute.xlu0 %v7306_v53  ;;  %7590 = vst [vmem:[#allocation64_spill] sm:$0xff] %v6016_v20  ;;  %v7606_v20 = vmov 29  }
 0x438   :  { %2506 = vperm.xlu0 %4049, %v7545_v8   ;;  %v7593_v8 = vmov 31  }
 0x439   :  { %v6045_v33 = vpop.permute.xlu1 %2648 }
 0x43a   :  { %v6021_v42 = vpop.xlane.xlu0 %1652 }
 0x43b   :  { %7591 = vst [vmem:[#allocation71_spill] sm:$0xff] %v6021_v42 }
 0x43c   :  { %2526 = vperm.xlu0 %4049, %v7552_v45  }
 0x43e   :  { %v6028_v53 = vpop.xlane.xlu0 %1656 }
 0x43f   :  { %7592 = vst [vmem:[#allocation58_spill] sm:$0xff] %v6028_v53 }
 0x440   :  { %2534 = vperm.xlu0 %4049, %v7548_v50  }
 0x442   :  { %2262 = vperm.xlu1 %4026, %v7558_v13  }
 0x444   :  { %2494 = vperm.xlu0 %4049, %v7585_v32  }
 0x446   :  { %4027 = vset.pattern.permute.xlu1 %v7593_v8  ;;  %v6033_v26 = vpop.xlane.xlu0 %1660 }
 0x447   :  { %2790 = vperm.xlu1 %4027, %v7551_v11   ;;  %7595 = vst [vmem:[#allocation65_spill] sm:$0xff] %v6033_v26  ;;  %v6053_v26 = vpop.permute.xlu1 %2254 }
 0x448   :  { %2502 = vperm.xlu0 %4049, %v7594_v18   ;;  %7600 = vst [vmem:[#allocation66_spill] sm:$0xff] %v6053_v26 }
 0x44b   :  { %2794 = vperm.xlu1 %4027, %v7552_v45  }
 0x44c   :  { %4051 = vset.pattern.permute.xlu0 %v7596_v57 }
 0x44d   :  { %2652 = vperm.xlu0 %4051, %v7547_v46   ;;  %v7601_v46 = vmov 28  }
 0x44e   :  { %v6040_v35 = vpop.permute.xlu0 %1820 }
 0x44f   :  { %7597 = vst [vmem:[#allocation52_spill] sm:$0xff] %v6040_v35  ;;  %4028 = vset.pattern.permute.xlu1 %v7546_v10  ;;  %v7612_v35 = vld [vmem:[#allocation35_spill] sm:$0xff] }
 0x450   :  { %1824 = vperm.xlu1 %4028, %v7585_v32   ;;  %v1740_v14 = vmul.f32 %v1739_v12, %v7612_v35 }
 0x451   :  { %2656 = vperm.xlu0 %4051, %v7551_v11   ;;  %v6062_v11 = vpop.permute.xlu1 %2258 }
 0x452   :  { %v6047_v5 = vpop.permute.xlu0 %1872 }
 0x453   :  { %7598 = vst [vmem:[#allocation112_spill] sm:$0xff] %v6047_v5 }
 0x454   :  { %1868 = vperm.xlu1 %4028, %v7572_v37  }
 0x455   :  { %2668 = vperm.xlu0 %4051, %v7548_v50   ;;  %v6071_v29 = vpop.permute.xlu1 %2786 }
 0x456   :  { %v6051_v45 = vpop.permute.xlu0 %1876 }
 0x457   :  { %7599 = vst [vmem:[#allocation82_spill] sm:$0xff] %v6051_v45  ;;  %v1744_v45 = vstv %s1743_s24 }
 0x458   :  { %4029 = vset.pattern.permute.xlu1 %v7601_v46  ;;  %v1745_v3 = vmul.f32 %v1744_v45, %v7612_v35  ;;  %v1760_v45 = vstv %s1759_s1 }
 0x459   :  { %2628 = vperm.xlu0 %4051, %v7585_v32   ;;  %2396 = vperm.xlu1 %4029, %v7558_v13   ;;  %v6078_v24 = vpop.permute.xlu1 %1860  ;;  %v1761_v27 = vmul.f32 %v1760_v45, %v7612_v35 }
 0x45a   :  { %7605 = vst [vmem:[#allocation83_spill] sm:$0xff] %v6078_v24  ;;  %v1747_v26 = vrot.slane %v1745_v3, 1  ;;  %v1768_v3 = vstv %s1767_s13 }
 0x45b   :  { %v6058_v0 = vpop.permute.xlu0 %1990  ;;  %v1763_v30 = vrot.slane %v1761_v27, 3 }
 0x45c   :  { %v1749_v19 = vadd.f32 %v1747_v26, %v1740_v14  ;;  %v1776_v26 = vstv %s1775_s15 }
 0x45d   :  { %2632 = vperm.xlu0 %4051, %v7574_v56   ;;  %4030 = vset.pattern.permute.xlu1 %v7549_v28  ;;  %v1777_v45 = vmul.f32 %v1776_v26, %v7612_v35 }
 0x45e   :  { %1954 = vperm.xlu1 %4030, %v7566_v22  }
 0x45f   :  { %v6065_v53 = vpop.permute.xlu0 %1994 }
 0x460   :  { %7602 = vst [vmem:[#allocation73_spill] sm:$0xff] %v6065_v53  ;;  %v7614_v53 = vmov 27  }
 0x461   :  { %2684 = vperm.xlu0 %4051, %v7576_v34  }
 0x462   :  { %1958 = vperm.xlu1 %4030, %v7585_v32  }
 0x463   :  { %v6069_v4 = vpop.permute.xlu0 %2002 }
 0x464   :  { %7603 = vst [vmem:[#allocation59_spill] sm:$0xff] %v6069_v4 }
 0x465   :  { %4053 = vset.pattern.permute.xlu0 %v7593_v8 }
 0x466   :  { %2802 = vperm.xlu0 %4053, %v7548_v50   ;;  %2006 = vperm.xlu1 %4030, %v7567_v60   ;;  %v6089_v50 = vpop.permute.xlu1 %2388 }
 0x467   :  { %v6076_v42 = vpop.permute.xlu0 %1962  ;;  %7608 = vst [vmem:[#allocation67_spill] sm:$0xff] %v6089_v50 }
 0x468   :  { %7604 = vst [vmem:[#allocation46_spill] sm:$0xff] %v6076_v42 }
 0x46a   :  { %2762 = vperm.xlu0 %4053, %v7585_v32   ;;  %4031 = vset.pattern.permute.xlu1 %v7606_v20  ;;  %v6101_v9 = vpop.permute.xlu1 %2392 }
 0x46b   :  { %v6082_v52 = vpop.permute.xlu0 %2014  ;;  %2530 = vperm.xlu1 %4031, %v7558_v13  }
 0x46c   :  { %7607 = vst [vmem:[#allocation74_spill] sm:$0xff] %v6082_v52 }
 0x46e   :  { %2770 = vperm.xlu0 %4053, %v7594_v18   ;;  %v6113_v5 = vpop.permute.xlu1 %1998 }
 0x46f   :  { %4032 = vset.pattern.permute.xlu1 %v7550_v40 }
 0x470   :  { %v6091_v7 = vpop.permute.xlu0 %2116  ;;  %2088 = vperm.xlu1 %4032, %v7566_v22  }
 0x474   :  { %v6098_v41 = vpop.permute.xlu0 %2120  ;;  %2092 = vperm.xlu1 %4032, %v7585_v32  }
 0x475   :  { %7609 = vst [vmem:[#allocation92_spill] sm:$0xff] %v6098_v41  ;;  %v6128_v41 = vpop.permute.xlu1 %2522 }
 0x476   :  { %7615 = vst [vmem:[#allocation76_spill] sm:$0xff] %v6128_v41 }
 0x478   :  { %v6106_v1 = vpop.permute.xlu0 %2136  ;;  %2140 = vperm.xlu1 %4032, %v7567_v60  }
 0x479   :  { %7610 = vst [vmem:[#allocation75_spill] sm:$0xff] %v6106_v1  ;;  %v1752_v1 = vstv %s1751_s29 }
 0x47a   :  { %v1753_v24 = vmul.f32 %v1752_v1, %v7612_v35  ;;  %v6141_v1 = vpop.permute.xlu1 %2128 }
 0x47b   :  { %7616 = vst [vmem:[#allocation56_spill] sm:$0xff] %v6141_v1  ;;  %v1784_v1 = vstv %s1783_s17 }
 0x47c   :  { %v6115_v4 = vpop.permute.xlu0 %2096  ;;  %4033 = vset.pattern.permute.xlu1 %v7596_v57  ;;  %v1755_v55 = vrot.slane %v1753_v24, 2 }
 0x47d   :  { %7611 = vst [vmem:[#allocation48_spill] sm:$0xff] %v6115_v4  ;;  %2664 = vperm.xlu1 %4033, %v7558_v13  }
 0x47e   :  { %v1757_v41 = vadd.f32 %v1755_v55, %v1749_v19  ;;  %v6151_v52 = vpop.permute.xlu1 %2132  ;;  %v1779_v19 = vrot.slane %v1777_v45, 5 }
 0x480   :  { %v6123_v50 = vpop.permute.xlu0 %2148  ;;  %v1765_v14 = vadd.f32 %v1763_v30, %v1757_v41  ;;  %v1792_v30 = vstv %s1791_s18 }
 0x481   :  { %7613 = vst [vmem:[#allocation54_spill] sm:$0xff] %v6123_v50  ;;  %4034 = vset.pattern.permute.xlu1 %v7614_v53  ;;  %v1769_v50 = vmul.f32 %v1768_v3, %v7612_v35  ;;  %v1785_v3 = vmul.f32 %v1784_v1, %v7612_v35 }
 0x482   :  { %2222 = vperm.xlu1 %4034, %v7566_v22   ;;  %v6159_v59 = vpop.xlane.xlu1 %1638 }
 0x483   :  { %7619 = vst [vmem:[#allocation85_spill] sm:$0xff] %v6159_v59  ;;  %v1787_v26 = vrot.slane %v1785_v3, 6 }
 0x485   :  { %v6134_v23 = vpop.permute.xlu0 %2246 }
 0x486   :  { %2226 = vperm.xlu1 %4034, %v7585_v32   ;;  %v1771_v32 = vrot.slane %v1769_v50, 4 }
 0x488   :  { %v1773_v27 = vadd.f32 %v1771_v32, %v1765_v14  ;;  %v6170_v32 = vpop.xlane.xlu1 %1642 }
 0x489   :  { %v6143_v12 = vpop.permute.xlu0 %2266  ;;  %7622 = vst [vmem:[#allocation95_spill] sm:$0xff] %v6170_v32 }
 0x48a   :  { %2274 = vperm.xlu1 %4034, %v7567_v60   ;;  %v1781_v50 = vadd.f32 %v1779_v19, %v1773_v27  ;;  %v7624_v27 = vld [vmem:[#allocation101_spill] sm:$0xff] }
 0x48b   :  { %v7625_v19 = vsub.s32 1, %v7624_v27 }
 0x48c   :  { %v1789_v1 = vadd.f32 %v1787_v26, %v1781_v50  ;;  %v7627_v26 = vsub.s32 2, %v7624_v27 }
 0x48d   :  { %v6148_v24 = vpop.permute.xlu0 %2270  ;;  %v6180_v3 = vrot.slane %v7612_v35, %v7625_v19  ;;  %v6194_v19 = vstv %s1818_s0 }
 0x48e   :  { %7617 = vst [vmem:[#allocation78_spill] sm:$0xff] %v6148_v24  ;;  %4035 = vset.pattern.permute.xlu1 %v7593_v8  ;;  %v7621_v24 = vld [vmem:[#allocation102_spill] sm:$0xff]  ;;  %v7637_v8 = vunpack.c.l.bf16 %v7502_v36 }
 0x48f   :  { %2798 = vperm.xlu1 %4035, %v7558_v13   ;;  %v1793_v13 = vmul.f32 %v1792_v30, %v7612_v35  ;;  %v6168_v14 = vrot.slane %v7612_v35, %v7621_v24 }
 0x491   :  { %v6156_v55 = vpop.permute.xlu0 %2230  ;;  %v1795_v45 = vrot.slane %v1793_v13, 7  ;;  %v2025_v13 = vadd.f32 %v6180_v3, %v5863_v31 }
 0x492   :  { %7618 = vst [vmem:[#allocation93_spill] sm:$0xff] %v6156_v55 }
 0x493   :  { %4036 = vset.pattern.permute.xlu1 %v7546_v10  ;;  %v1891_v10 = vadd.f32 %v6168_v14, %v5977_v63  ;;  %v1797_v30 = vadd.f32 %v1795_v45, %v1789_v1  ;;  %v6189_v63 = vrot.slane %v7612_v35, %v7627_v26 }
 0x494   :  { %1828 = vperm.xlu1 %4036, %v7574_v56  }
 0x495   :  { %v6163_v41 = vpop.permute.xlu0 %2282  ;;  %v1907_v32 = vand.u32 2147483647, %v1891_v10  ;;  %v6199_v1 = vrot.slane %v1797_v30, %v7621_v24  ;;  %v1893_v10 = vadd.f32 %v6168_v14, %v5929_v43  ;;  %v2159_v31 = vadd.f32 %v6189_v63, %v5882_v16 }
 0x496   :  { %7620 = vst [vmem:[#allocation94_spill] sm:$0xff] %v6163_v41  ;;  %v6184_v41 = vpop.xlane.xlu1 %1646  ;;  %v2027_v30 = vadd.f32 %v6180_v3, %v5946_v61  ;;  %v7632_v43 = vsub.s32 3, %v7624_v27  ;;  %v7634_v61 = vsub.s32 4, %v7624_v27 }
 0x497   :  { %7626 = vst [vmem:[#allocation62_spill] sm:$0xff] %v6184_v41  ;;  %v1924_v45 = vmul.f32 %v6194_v19, %v1907_v32  ;;  %v2041_v41 = vand.u32 2147483647, %v2025_v13  ;;  %v6216_v32 = vstv %s1952_s3  ;;  %v1909_v13 = vand.u32 2147483647, %v1893_v10 }
 0x498   :  { %1832 = vperm.xlu1 %4036, %v7594_v18   ;;  %v6222_v42 = vrot.slane %v7612_v35, %v7632_v43  ;;  %v2175_v56 = vand.u32 2147483647, %v2159_v31  ;;  %v1808_v53 = vadd.f32 %v7637_v8, %v6199_v1 }
 0x499   :  { %v1926_v43 = vmul.f32 %v6194_v19, %v1909_v13  ;;  %v7638_v13 = vsub.s32 5, %v7624_v27 }
 0x49a   :  { %v6175_v59 = vpop.permute.xlu0 %2376  ;;  %v6214_v24 = vpop.xlane.xlu1 %1650 }
 0x49b   :  { %7623 = vst [vmem:[#allocation87_spill] sm:$0xff] %v6175_v59  ;;  %v7629_v59 = vld [vmem:[#allocation111_spill] sm:$0xff]  ;;  %7631 = vst [vmem:[#allocation97_spill] sm:$0xff] %v6214_v24  ;;  %v6231_v24 = vrot.slane %v7612_v35, %v7634_v61 }
 0x49c   :  { %1880 = vperm.xlu1 %4036, %v7576_v34   ;;  %v7630_v55 = vunpack.c.l.bf16 %v7629_v59  ;;  %v6233_v34 = vstv %s2086_s5 }
 0x49e   :  { %v2381_v50 = vpop.permute.xlu0 %2380  ;;  %v1806_v4 = vadd.f32 %v7630_v55, %v6199_v1  ;;  %v2161_v55 = vadd.f32 %v6189_v63, %v5961_v39  ;;  %v2295_v39 = vadd.f32 %v6222_v42, %v6134_v23 }
 0x4a0   :  { %4038 = vset.pattern.permute.xlu1 %v7601_v46  ;;  %v1940_v16 = vadd.f32 %v1924_v45, %v1806_v4  ;;  %v2058_v46 = vmul.f32 %v6216_v32, %v2041_v41  ;;  %v2293_v4 = vadd.f32 %v6222_v42, %v5915_v17  ;;  %v2043_v45 = vand.u32 2147483647, %v2027_v30 }
 0x4a1   :  { %2356 = vperm.xlu1 %4038, %v7566_v22   ;;  %v2177_v61 = vand.u32 2147483647, %v2161_v55  ;;  %v2429_v41 = vadd.f32 %v6231_v24, %v2381_v50  ;;  %v2192_v17 = vmul.f32 %v6233_v34, %v2175_v56  ;;  %v2427_v30 = vadd.f32 %v6231_v24, %v5937_v51 }
 0x4a2   :  { %v6204_v26 = vpop.permute.xlu0 %2400  ;;  %v2074_v10 = vadd.f32 %v2058_v46, %v1940_v16  ;;  %v2309_v23 = vand.u32 2147483647, %v2293_v4  ;;  %v2060_v46 = vmul.f32 %v6216_v32, %v2043_v45  ;;  %v2311_v16 = vand.u32 2147483647, %v2295_v39 }
 0x4a3   :  { %7628 = vst [vmem:[#allocation89_spill] sm:$0xff] %v6204_v26  ;;  %v6259_v50 = vrot.slane %v7612_v35, %v7638_v13  ;;  %v6262_v55 = vstv %s2220_s19  ;;  %v1942_v56 = vadd.f32 %v1926_v43, %v1808_v53  ;;  %v2194_v4 = vmul.f32 %v6233_v34, %v2177_v61 }
 0x4a4   :  { %v2208_v51 = vadd.f32 %v2192_v17, %v2074_v10  ;;  %v2445_v8 = vand.u32 2147483647, %v2429_v41  ;;  %v7640_v45 = vsub.s32 6, %v7624_v27  ;;  %v2443_v13 = vand.u32 2147483647, %v2427_v30 }
 0x4a5   :  { %2404 = vperm.xlu1 %4038, %v7572_v37   ;;  %v2326_v53 = vmul.f32 %v6262_v55, %v2309_v23  ;;  %v6277_v10 = vstv %s2354_s2  ;;  %v2076_v43 = vadd.f32 %v2060_v46, %v1942_v56  ;;  %v2328_v61 = vmul.f32 %v6262_v55, %v2311_v16 }
 0x4a6   :  { %v6226_v59 = vpop.permute.xlu0 %2360  ;;  %v6272_v39 = vrot.slane %v7612_v35, %v7640_v45  ;;  %v7642_v17 = vsub.s32 7, %v7624_v27  ;;  %v6287_v45 = vstv %s2756_s21  ;;  %v1894_v30 = vadd.f32 %v6168_v14, %v5986_v44 }
 0x4a7   :  { %7633 = vst [vmem:[#allocation60_spill] sm:$0xff] %v6226_v59  ;;  %v6243_v59 = vpop.xlane.xlu1 %1658  ;;  %v2342_v23 = vadd.f32 %v2326_v53, %v2208_v51  ;;  %v2210_v46 = vadd.f32 %v2194_v4, %v2076_v43  ;;  %v2462_v27 = vmul.f32 %v6277_v10, %v2445_v8  ;;  %v2028_v56 = vadd.f32 %v6180_v3, %v5954_v6 }
 0x4a8   :  { %7635 = vst [vmem:[#allocation63_spill] sm:$0xff] %v6243_v59  ;;  %v2695_v16 = vadd.f32 %v6272_v39, %v5968_v62  ;;  %v2697_v51 = vadd.f32 %v6272_v39, %v6045_v33  ;;  %v2030_v62 = vadd.f32 %v6180_v3, %v6058_v0  ;;  %v1910_v53 = vand.u32 2147483647, %v1894_v30 }
 0x4a9   :  { %2408 = vperm.xlu1 %4038, %v7567_v60   ;;  %v2344_v4 = vadd.f32 %v2328_v61, %v2210_v46  ;;  %v6309_v43 = vstv %s2488_s20  ;;  %v2162_v6 = vadd.f32 %v6189_v63, %v6091_v7  ;;  %v2044_v30 = vand.u32 2147483647, %v2028_v56 }
 0x4aa   :  { %v6246_v31 = vpop.permute.xlu0 %2364  ;;  %v2046_v26 = vand.u32 2147483647, %v2030_v62  ;;  %v2164_v56 = vadd.f32 %v6189_v63, %v6036_v38 }
 0x4ab   :  { %7636 = vst [vmem:[#allocation91_spill] sm:$0xff] %v6246_v31  ;;  %v6280_v41 = vpop.xlane.xlu1 %1654  ;;  %v2478_v31 = vadd.f32 %v2462_v27, %v2344_v4  ;;  %v7643_v27 = vunpack.c.h.bf16 %v7502_v36  ;;  %v2296_v36 = vadd.f32 %v6222_v42, %v5982_v15 }
 0x4ac   :  { %7641 = vst [vmem:[#allocation98_spill] sm:$0xff] %v6280_v41  ;;  %v6313_v41 = vstv %s2622_s22  ;;  %v2180_v15 = vand.u32 2147483647, %v2164_v56 }
 0x4ad   :  { %4039 = vset.pattern.permute.xlu1 %v7549_v28  ;;  %v2563_v28 = vadd.f32 %v6259_v50, %v6019_v25  ;;  %v1896_v25 = vadd.f32 %v6168_v14, %v5999_v58  ;;  %v1809_v4 = vadd.f32 %v7643_v27, %v6199_v1 }
 0x4ae   :  { %v6266_v59 = vpop.permute.xlu0 %2416  ;;  %1966 = vperm.xlu1 %4039, %v7594_v18  }
 0x4af   :  { %7639 = vst [vmem:[#allocation61_spill] sm:$0xff] %v6266_v59  ;;  %v6285_v59 = vrot.slane %v7612_v35, %v7642_v17  ;;  %v2460_v35 = vmul.f32 %v6277_v10, %v2443_v13  ;;  %v2579_v17 = vand.u32 2147483647, %v2563_v28  ;;  %v1912_v13 = vand.u32 2147483647, %v1896_v25  ;;  %v6315_v28 = vpop.permute.xlu1 %2660 }
 0x4b0   :  { %v2713_v25 = vand.u32 2147483647, %v2697_v51 }
 0x4b1   :  { %v2829_v44 = vadd.f32 %v6285_v59, %v5988_v2  ;;  %v2711_v2 = vand.u32 2147483647, %v2695_v16  ;;  %v2831_v0 = vadd.f32 %v6285_v59, %v5972_v48  ;;  %v2476_v61 = vadd.f32 %v2460_v35, %v2342_v23 }
 0x4b2   :  { %2010 = vperm.xlu1 %4039, %v7569_v47   ;;  %v2596_v7 = vmul.f32 %v6309_v43, %v2579_v17  ;;  %v1929_v48 = vmul.f32 %v6194_v19, %v1912_v13  ;;  %v2178_v23 = vand.u32 2147483647, %v2162_v6 }
 0x4b3   :  { %v2507_v58 = vpop.permute.xlu0 %2506  ;;  %v2845_v46 = vand.u32 2147483647, %v2829_v44  ;;  %v2728_v35 = vmul.f32 %v6313_v41, %v2711_v2  ;;  %v2847_v62 = vand.u32 2147483647, %v2831_v0  ;;  %v2063_v2 = vmul.f32 %v6216_v32, %v2046_v26 }
 0x4b4   :  { %v2561_v8 = vadd.f32 %v6259_v50, %v2507_v58  ;;  %v2612_v44 = vadd.f32 %v2596_v7, %v2478_v31  ;;  %v2730_v31 = vmul.f32 %v6313_v41, %v2713_v25  ;;  %v2195_v7 = vmul.f32 %v6233_v34, %v2178_v23 }
 0x4b5   :  { %v2862_v38 = vmul.f32 %v6287_v45, %v2845_v46  ;;  %v2312_v46 = vand.u32 2147483647, %v2296_v36  ;;  %v2430_v25 = vadd.f32 %v6231_v24, %v6008_v54 }
 0x4b6   :  { %v2577_v33 = vand.u32 2147483647, %v2561_v8  ;;  %4041 = vset.pattern.permute.xlu1 %v7606_v20  ;;  %v1927_v8 = vmul.f32 %v6194_v19, %v1910_v53  ;;  %v7645_v53 = vld [vmem:[#allocation104_spill] sm:$0xff] }
 0x4b7   :  { %v2527_v58 = vpop.permute.xlu0 %2526  ;;  %2490 = vperm.xlu1 %4041, %v7566_v22   ;;  %v7646_v27 = vunpack.c.h.bf16 %v7645_v53  ;;  %v2746_v53 = vadd.f32 %v2730_v31, %v2612_v44  ;;  %v2329_v54 = vmul.f32 %v6262_v55, %v2312_v46 }
 0x4b8   :  { %v2594_v16 = vmul.f32 %v6309_v43, %v2577_v33  ;;  %v2061_v33 = vmul.f32 %v6216_v32, %v2044_v30 }
 0x4b9   :  { %v1811_v13 = vadd.f32 %v7646_v27, %v6199_v1 }
 0x4ba   :  { %v2610_v17 = vadd.f32 %v2594_v16, %v2476_v61  ;;  %v6331_v51 = vpop.xlane.xlu1 %1662  ;;  %v1943_v61 = vadd.f32 %v1927_v8, %v1809_v4  ;;  %v2298_v16 = vadd.f32 %v6222_v42, %v6062_v11  ;;  %v2864_v4 = vmul.f32 %v6287_v45, %v2847_v62 }
 0x4bb   :  { %7644 = vst [vmem:[#allocation72_spill] sm:$0xff] %v6331_v51  ;;  %v6339_v6 = vpop.permute.xlu0 %2534  ;;  %2538 = vperm.xlu1 %4041, %v7572_v37   ;;  %v1945_v30 = vadd.f32 %v1929_v48, %v1811_v13  ;;  %v2197_v48 = vmul.f32 %v6233_v34, %v2180_v15  ;;  %v2564_v62 = vadd.f32 %v6259_v50, %v6026_v49 }
 0x4bc   :  { %v2744_v0 = vadd.f32 %v2728_v35, %v2610_v17  ;;  %v2077_v20 = vadd.f32 %v2061_v33, %v1943_v61  ;;  %v2314_v23 = vand.u32 2147483647, %v2298_v16  ;;  %v2432_v35 = vadd.f32 %v6231_v24, %v6101_v9 }
 0x4bd   :  { %v2079_v8 = vadd.f32 %v2063_v2, %v1945_v30  ;;  %v6364_v44 = vadd.f32 %v2864_v4, %v2746_v53  ;;  %v2446_v17 = vand.u32 2147483647, %v2430_v25  ;;  %v2566_v33 = vadd.f32 %v6259_v50, %v2527_v58 }
 0x4be   :  { %v6348_v27 = vpop.permute.xlu1 %2262  ;;  %v6350_v51 = vadd.f32 %v2862_v38, %v2744_v0  ;;  %v2211_v11 = vadd.f32 %v2195_v7, %v2077_v20  ;;  %v2331_v53 = vmul.f32 %v6262_v55, %v2314_v23  ;;  %v2448_v13 = vand.u32 2147483647, %v2432_v35 }
 0x4bf   :  { %v6354_v26 = vpop.permute.xlu0 %2494  ;;  %2542 = vperm.xlu1 %4041, %v7567_v60   ;;  %7648 = vst [vmem:[#allocation77_spill] sm:$0xff] %v6364_v44  ;;  %v2213_v20 = vadd.f32 %v2197_v48, %v2079_v8  ;;  %v2463_v31 = vmul.f32 %v6277_v10, %v2446_v17  ;;  %v2580_v2 = vand.u32 2147483647, %v2564_v62  ;;  %v2832_v49 = vadd.f32 %v6285_v59, %v6071_v29 }
 0x4c0   :  { %7647 = vst [vmem:[#allocation96_spill] sm:$0xff] %v6350_v51  ;;  %2898 = vmax.xlane.f32.xlu0 %v6350_v51  ;;  %v2345_v9 = vadd.f32 %v2329_v54, %v2211_v11  ;;  %v2582_v58 = vand.u32 2147483647, %v2566_v33  ;;  %v2465_v16 = vmul.f32 %v6277_v10, %v2448_v13  ;;  %v1898_v17 = vadd.f32 %v6168_v14, %v5991_v21 }
 0x4c1   :  { %v2347_v0 = vadd.f32 %v2331_v53, %v2213_v20  ;;  %v2597_v46 = vmul.f32 %v6309_v43, %v2580_v2  ;;  %v2848_v25 = vand.u32 2147483647, %v2832_v49  ;;  %v2032_v53 = vadd.f32 %v6180_v3, %v6113_v5 }
 0x4c2   :  { %v6362_v56 = vpop.permute.xlu1 %2790  ;;  %v2479_v7 = vadd.f32 %v2463_v31, %v2345_v9  ;;  %v2599_v29 = vmul.f32 %v6309_v43, %v2582_v58  ;;  %v1914_v49 = vand.u32 2147483647, %v1898_v17  ;;  %v2166_v21 = vadd.f32 %v6189_v63, %v6151_v52 }
 0x4c3   :  { %v6370_v36 = vpop.permute.xlu0 %2502  ;;  %4042 = vset.pattern.permute.xlu1 %v7550_v40  ;;  %v2700_v40 = vadd.f32 %v6272_v39, %v6315_v28  ;;  %v2481_v11 = vadd.f32 %v2465_v16, %v2347_v0  ;;  %v2865_v62 = vmul.f32 %v6287_v45, %v2848_v25  ;;  %v2048_v0 = vand.u32 2147483647, %v2032_v53  ;;  %v7652_v16 = vld [vmem:[#allocation89_spill] sm:$0xff] }
 0x4c4   :  { %7649 = vst [vmem:[#allocation99_spill] sm:$0xff] %v6370_v36  ;;  %2100 = vperm.xlu1 %4042, %v7594_v18   ;;  %2902 = vmax.xlane.f32.xlu0 %v6364_v44  ;;  %v2613_v35 = vadd.f32 %v2597_v46, %v2479_v7  ;;  %v2300_v5 = vadd.f32 %v6222_v42, %v6143_v12  ;;  %v7653_v46 = vld [vmem:[#allocation103_spill] sm:$0xff]  ;;  %v7690_v36 = vld [vmem:[#allocation92_spill] sm:$0xff] }
 0x4c5   :  { %v2716_v28 = vand.u32 2147483647, %v2700_v40  ;;  %v2615_v33 = vadd.f32 %v2599_v29, %v2481_v11  ;;  %v1931_v7 = vmul.f32 %v6194_v19, %v1914_v49  ;;  %v2434_v52 = vadd.f32 %v6231_v24, %v7652_v16 }
 0x4c6   :  { %v2795_v38 = vpop.permute.xlu1 %2794  ;;  %v7654_v25 = vunpack.c.h.bf16 %v7653_v46  ;;  %v2065_v29 = vmul.f32 %v6216_v32, %v2048_v0  ;;  %v2568_v11 = vadd.f32 %v6259_v50, %v6339_v6 }
 0x4c7   :  { %v2834_v30 = vadd.f32 %v6285_v59, %v2795_v38  ;;  %v2733_v38 = vmul.f32 %v6313_v41, %v2716_v28 }
 0x4c8   :  { %v2653_v61 = vpop.permute.xlu0 %2652  ;;  %2144 = vperm.xlu1 %4042, %v7569_v47   ;;  %v1813_v12 = vadd.f32 %v7654_v25, %v6199_v1  ;;  %v7658_v25 = vmov 31  }
 0x4c9   :  { %v2698_v15 = vadd.f32 %v6272_v39, %v2653_v61  ;;  %v2850_v23 = vand.u32 2147483647, %v2834_v30  ;;  %v2749_v58 = vadd.f32 %v2733_v38, %v2615_v33  ;;  %v2584_v38 = vand.u32 2147483647, %v2568_v11 }
 0x4cb   :  { %v2714_v4 = vand.u32 2147483647, %v2698_v15  ;;  %v6387_v8 = vpop.permute.xlu1 %1824  ;;  %v2867_v31 = vmul.f32 %v6287_v45, %v2850_v23  ;;  %v2182_v15 = vand.u32 2147483647, %v2166_v21  ;;  %v7656_v23 = vmov 27  }
 0x4cc   :  { %v6389_v48 = vpop.permute.xlu0 %2656  ;;  %4044 = vset.pattern.permute.xlu1 %v7596_v57 }
 0x4cd   :  { %v2731_v54 = vmul.f32 %v6313_v41, %v2714_v4  ;;  %2624 = vperm.xlu1 %4044, %v7566_v22   ;;  %v6416_v30 = vadd.f32 %v2867_v31, %v2749_v58  ;;  %v2316_v4 = vand.u32 2147483647, %v2300_v5  ;;  %v2199_v17 = vmul.f32 %v6233_v34, %v2182_v15 }
 0x4ce   :  { %v2601_v5 = vmul.f32 %v6309_v43, %v2584_v38 }
 0x4cf   :  { %v2747_v20 = vadd.f32 %v2731_v54, %v2613_v35  ;;  %v6397_v9 = vpop.permute.xlu1 %1868  ;;  %7651 = vst [vmem:[#allocation33_spill] sm:$0xff] %v6416_v30  ;;  %v1947_v54 = vadd.f32 %v1931_v7, %v1813_v12  ;;  %v2333_v53 = vmul.f32 %v6262_v55, %v2316_v4 }
 0x4d0   :  { %v2669_v13 = vpop.permute.xlu0 %2668 }
 0x4d1   :  { %2672 = vperm.xlu1 %4044, %v7572_v37   ;;  %v6404_v2 = vadd.f32 %v2865_v62, %v2747_v20  ;;  %v2450_v62 = vand.u32 2147483647, %v2434_v52  ;;  %v2702_v33 = vadd.f32 %v6272_v39, %v2669_v13  ;;  %v2081_v20 = vadd.f32 %v2065_v29, %v1947_v54 }
 0x4d3   :  { %7650 = vst [vmem:[#allocation100_spill] sm:$0xff] %v6404_v2  ;;  %2904 = vmax.xlane.f32.xlu0 %v6404_v2  ;;  %v2215_v49 = vadd.f32 %v2199_v17, %v2081_v20  ;;  %v2467_v21 = vmul.f32 %v6277_v10, %v2450_v62  ;;  %v2718_v58 = vand.u32 2147483647, %v2702_v33  ;;  %v7660_v62 = vmov 28  }
 0x4d4   :  { %v6411_v61 = vpop.permute.xlu0 %2628  ;;  %v6413_v40 = vpop.permute.xlu1 %2396 }
 0x4d5   :  { %2676 = vperm.xlu1 %4044, %v7567_v60   ;;  %v2349_v0 = vadd.f32 %v2333_v53, %v2215_v49  ;;  %v2735_v16 = vmul.f32 %v6313_v41, %v2718_v58  ;;  %v7661_v53 = vmov 29  }
 0x4d7   :  { %2908 = vmax.xlane.f32.xlu0 %v6416_v30  ;;  %v2483_v15 = vadd.f32 %v2467_v21, %v2349_v0 }
 0x4d8   :  { %v6428_v28 = vpop.permute.xlu0 %2632 }
 0x4d9   :  { %7655 = vst [vmem:[#allocation30_spill] sm:$0xff] %v6428_v28  ;;  %4045 = vset.pattern.permute.xlu1 %v7656_v23  ;;  %v6431_v35 = vpop.permute.xlu1 %1954  ;;  %v2617_v12 = vadd.f32 %v2601_v5, %v2483_v15  ;;  %v7664_v15 = vld [vmem:[#allocation106_spill] sm:$0xff] }
 0x4da   :  { %2234 = vperm.xlu1 %4045, %v7594_v18  }
 0x4db   :  { %v2751_v4 = vadd.f32 %v2735_v16, %v2617_v12  ;;  %v7665_v16 = vunpack.c.h.bf16 %v7664_v15 }
 0x4dc   :  { %v6437_v31 = vpop.permute.xlu0 %2684 }
 0x4dd   :  { %7657 = vst [vmem:[#allocation32_spill] sm:$0xff] %v6437_v31  ;;  %v1959_v6 = vpop.permute.xlu1 %1958 }
 0x4de   :  { %2278 = vperm.xlu1 %4045, %v7569_v47   ;;  %v2022_v20 = vadd.f32 %v6180_v3, %v1959_v6 }
 0x4e0   :  { %v2038_v58 = vand.u32 2147483647, %v2022_v20 }
 0x4e1   :  { %v2803_v7 = vpop.permute.xlu0 %2802  ;;  %v6442_v13 = vpop.permute.xlu1 %2006 }
 0x4e2   :  { %v2836_v52 = vadd.f32 %v6285_v59, %v2803_v7  ;;  %4047 = vset.pattern.permute.xlu1 %v7658_v25  ;;  %v2055_v12 = vmul.f32 %v6216_v32, %v2038_v58 }
 0x4e3   :  { %2758 = vperm.xlu1 %4047, %v7566_v22  }
 0x4e4   :  { %v2852_v29 = vand.u32 2147483647, %v2836_v52  ;;  %v1803_v52 = vadd.f32 %v7665_v16, %v6199_v1 }
 0x4e5   :  { %v2763_v20 = vpop.permute.xlu0 %2762 }
 0x4e6   :  { %v2869_v11 = vmul.f32 %v6287_v45, %v2852_v29  ;;  %v6449_v23 = vpop.permute.xlu1 %2530  ;;  %v7666_v29 = vld [vmem:[#allocation24_spill] sm:$0xff] }
 0x4e7   :  { %2806 = vperm.xlu1 %4047, %v7572_v37   ;;  %v1888_v37 = vadd.f32 %v6168_v14, %v6387_v8  ;;  %v7663_v8 = vld [vmem:[#allocation60_spill] sm:$0xff] }
 0x4e8   :  { %v6452_v54 = vadd.f32 %v2869_v11, %v2751_v4  ;;  %v2424_v6 = vadd.f32 %v6231_v24, %v7663_v8  ;;  %v2558_v11 = vadd.f32 %v6259_v50, %v6354_v26 }
 0x4e9   :  { %v1904_v49 = vand.u32 2147483647, %v1888_v37 }
 0x4ea   :  { %7659 = vst [vmem:[#allocation31_spill] sm:$0xff] %v6452_v54  ;;  %2912 = vmax.xlane.f32.xlu0 %v6452_v54  ;;  %v2574_v16 = vand.u32 2147483647, %v2558_v11  ;;  %v2826_v54 = vadd.f32 %v6285_v59, %v2763_v20 }
 0x4eb   :  { %2810 = vperm.xlu1 %4047, %v7567_v60   ;;  %v6456_v17 = vpop.permute.xlu1 %2088  ;;  %v7662_v60 = vld [vmem:[#allocation18_spill] sm:$0xff]  ;;  %v1921_v5 = vmul.f32 %v6194_v19, %v1904_v49  ;;  %v2692_v49 = vadd.f32 %v6272_v39, %v6411_v61 }
 0x4ec   :  { %v2591_v61 = vmul.f32 %v6309_v43, %v2574_v16 }
 0x4ef   :  { %4048 = vset.pattern.permute.xlu1 %v7660_v62  ;;  %v2093_v22 = vpop.permute.xlu1 %2092  ;;  %v1937_v62 = vadd.f32 %v1921_v5, %v1803_v52 }
 0x4f0   :  { %2368 = vperm.xlu1 %4048, %v7594_v18   ;;  %v2156_v21 = vadd.f32 %v6189_v63, %v2093_v22 }
 0x4f2   :  { %v2172_v7 = vand.u32 2147483647, %v2156_v21  ;;  %v2071_v21 = vadd.f32 %v2055_v12, %v1937_v62  ;;  %v2842_v12 = vand.u32 2147483647, %v2826_v54  ;;  %v7668_v54 = vld [vmem:[#allocation48_spill] sm:$0xff] }
 0x4f3   :  { %v6460_v33 = vpop.permute.xlu1 %2140 }
 0x4f4   :  { %2412 = vperm.xlu1 %4048, %v7569_v47   ;;  %v2189_v22 = vmul.f32 %v6233_v34, %v2172_v7 }
 0x4f6   :  { %v2205_v26 = vadd.f32 %v2189_v22, %v2071_v21  ;;  %v7667_v22 = vld [vmem:[#allocation46_spill] sm:$0xff] }
 0x4f8   :  { %4050 = vset.pattern.permute.xlu1 %v7661_v53  ;;  %v6467_v38 = vpop.permute.xlu1 %2664  ;;  %v2440_v53 = vand.u32 2147483647, %v2424_v6  ;;  %v2708_v6 = vand.u32 2147483647, %v2692_v49  ;;  %v2157_v49 = vadd.f32 %v6189_v63, %v7668_v54  ;;  %v7677_v54 = vld [vmem:[#allocation54_spill] sm:$0xff] }
 0x4f9   :  { %2498 = vperm.xlu1 %4050, %v7662_v60  }
 0x4fa   :  { %v2457_v7 = vmul.f32 %v6277_v10, %v2440_v53  ;;  %v2725_v11 = vmul.f32 %v6313_v41, %v2708_v6  ;;  %v7672_v6 = vld [vmem:[#allocation91_spill] sm:$0xff] }
 0x4fd   :  { %2546 = vperm.xlu1 %4050, %v7569_v47   ;;  %v6472_v0 = vpop.permute.xlu1 %2222 }
 0x501   :  { %2550 = vperm.xlu1 %4050, %v7666_v29   ;;  %v2227_v4 = vpop.permute.xlu1 %2226 }
 0x502   :  { %v2290_v37 = vadd.f32 %v6222_v42, %v2227_v4 }
 0x504   :  { %v2306_v8 = vand.u32 2147483647, %v2290_v37  ;;  %v2023_v37 = vadd.f32 %v6180_v3, %v7667_v22 }
 0x505   :  { %4052 = vset.pattern.permute.xlu1 %v7596_v57  ;;  %v6489_v58 = vpop.permute.xlu1 %2274 }
 0x506   :  { %v2323_v5 = vmul.f32 %v6262_v55, %v2306_v8  ;;  %2636 = vperm.xlu1 %4052, %v7594_v18   ;;  %v2859_v18 = vmul.f32 %v6287_v45, %v2842_v12  ;;  %v2039_v16 = vand.u32 2147483647, %v2023_v37  ;;  %v7676_v37 = vld [vmem:[#allocation74_spill] sm:$0xff] }
 0x508   :  { %v2339_v52 = vadd.f32 %v2323_v5, %v2205_v26  ;;  %v7670_v26 = vld [vmem:[#allocation93_spill] sm:$0xff] }
 0x509   :  { %v2291_v5 = vadd.f32 %v6222_v42, %v7670_v26 }
 0x50a   :  { %v2473_v4 = vadd.f32 %v2457_v7, %v2339_v52  ;;  %2680 = vperm.xlu1 %4052, %v7569_v47   ;;  %v6497_v57 = vpop.permute.xlu1 %2798  ;;  %v2425_v52 = vadd.f32 %v6231_v24, %v7672_v6 }
 0x50c   :  { %v2607_v62 = vadd.f32 %v2591_v61, %v2473_v4  ;;  %v7673_v61 = vld [vmem:[#allocation110_spill] sm:$0xff]  ;;  %v2441_v6 = vand.u32 2147483647, %v2425_v52 }
 0x50d   :  { %v7674_v12 = vunpack.c.l.bf16 %v7673_v61 }
 0x50e   :  { %4054 = vset.pattern.permute.xlu1 %v7658_v25  ;;  %v2741_v20 = vadd.f32 %v2725_v11, %v2607_v62  ;;  %v7675_v62 = vld [vmem:[#allocation34_spill] sm:$0xff] }
 0x50f   :  { %2766 = vperm.xlu1 %4054, %v7662_v60   ;;  %v1829_v53 = vpop.permute.xlu1 %1828  ;;  %v2173_v60 = vand.u32 2147483647, %v2157_v49  ;;  %v1804_v4 = vadd.f32 %v7674_v12, %v6199_v1  ;;  %v1892_v22 = vadd.f32 %v6168_v14, %v7675_v62  ;;  %v2170_v49 = vadd.f32 %v6189_v63, %v7677_v54 }
 0x510   :  { %v1889_v21 = vadd.f32 %v6168_v14, %v1829_v53  ;;  %v6508_v8 = vadd.f32 %v2859_v18, %v2741_v20  ;;  %v2036_v18 = vadd.f32 %v6180_v3, %v7676_v37  ;;  %v2307_v20 = vand.u32 2147483647, %v2291_v5  ;;  %v7679_v5 = vld [vmem:[#allocation94_spill] sm:$0xff] }
 0x511   :  { %v2190_v26 = vmul.f32 %v6233_v34, %v2173_v60  ;;  %v1908_v62 = vand.u32 2147483647, %v1892_v22  ;;  %v7681_v60 = vld [vmem:[#allocation57_spill] sm:$0xff] }
 0x512   :  { %7669 = vst [vmem:[#allocation26_spill] sm:$0xff] %v6508_v8  ;;  %v1905_v7 = vand.u32 2147483647, %v1889_v21  ;;  %2892 = vmax.xlane.f32.xlu0 %v6508_v8  ;;  %v7678_v8 = vld [vmem:[#allocation47_spill] sm:$0xff]  ;;  %v2052_v30 = vand.u32 2147483647, %v2036_v18  ;;  %v1895_v52 = vadd.f32 %v6168_v14, %v7681_v60 }
 0x513   :  { %2814 = vperm.xlu1 %4054, %v7569_v47   ;;  %v6514_v25 = vpop.permute.xlu1 %1832  ;;  %v2056_v47 = vmul.f32 %v6216_v32, %v2039_v16  ;;  %v2026_v37 = vadd.f32 %v6180_v3, %v7678_v8  ;;  %v2324_v16 = vmul.f32 %v6262_v55, %v2307_v20  ;;  %v7682_v22 = vld [vmem:[#allocation105_spill] sm:$0xff]  ;;  %v2458_v8 = vmul.f32 %v6277_v10, %v2441_v6 }
 0x514   :  { %7671 = vst [vmem:[#allocation28_spill] sm:$0xff] %v6514_v25  ;;  %v1922_v11 = vmul.f32 %v6194_v19, %v1905_v7  ;;  %v7684_v18 = vld [vmem:[#allocation61_spill] sm:$0xff]  ;;  %v2069_v6 = vmul.f32 %v6216_v32, %v2052_v30 }
 0x515   :  { %v2438_v20 = vadd.f32 %v6231_v24, %v7684_v18  ;;  %v2042_v60 = vand.u32 2147483647, %v2026_v37 }
 0x516   :  { %v1938_v53 = vadd.f32 %v1922_v11, %v1804_v4  ;;  %v2304_v4 = vadd.f32 %v6222_v42, %v7679_v5 }
 0x517   :  { %2818 = vperm.xlu1 %4054, %v7666_v29   ;;  %v1881_v21 = vpop.permute.xlu1 %1880  ;;  %v7680_v29 = vld [vmem:[#allocation40_spill] sm:$0xff]  ;;  %v2454_v61 = vand.u32 2147483647, %v2438_v20  ;;  %v2059_v30 = vmul.f32 %v6216_v32, %v2042_v60 }
 0x518   :  { %v2072_v7 = vadd.f32 %v2056_v47, %v1938_v53  ;;  %v1902_v12 = vadd.f32 %v6168_v14, %v1881_v21  ;;  %v2160_v2 = vadd.f32 %v6189_v63, %v7680_v29  ;;  %v2186_v47 = vand.u32 2147483647, %v2170_v49  ;;  %v7687_v49 = vld [vmem:[#allocation53_spill] sm:$0xff] }
 0x519   :  { %v7683_v53 = vunpack.c.h.bf16 %v7682_v22  ;;  %v2294_v51 = vadd.f32 %v6222_v42, %v7687_v49  ;;  %v7688_v22 = vld [vmem:[#allocation80_spill] sm:$0xff]  ;;  %v2320_v31 = vand.u32 2147483647, %v2304_v4 }
 0x51a   :  { %v2206_v11 = vadd.f32 %v2190_v26, %v2072_v7  ;;  %v1918_v54 = vand.u32 2147483647, %v1902_v12  ;;  %v7685_v12 = vld [vmem:[#allocation111_spill] sm:$0xff]  ;;  %v2203_v37 = vmul.f32 %v6233_v34, %v2186_v47 }
 0x51b   :  { %v1817_v21 = vadd.f32 %v7683_v53, %v6199_v1  ;;  %v7686_v29 = vunpack.c.h.bf16 %v7685_v12  ;;  %v2029_v53 = vadd.f32 %v6180_v3, %v7688_v22  ;;  %v2163_v12 = vadd.f32 %v6189_v63, %v7690_v36 }
 0x51c   :  { %v1935_v5 = vmul.f32 %v6194_v19, %v1918_v54  ;;  %v6548_v26 = vpop.permute.xlu1 %2356  ;;  %v2340_v7 = vadd.f32 %v2324_v16, %v2206_v11  ;;  %v1925_v54 = vmul.f32 %v6194_v19, %v1908_v62  ;;  %v2176_v16 = vand.u32 2147483647, %v2160_v2 }
 0x51d   :  { %v1807_v44 = vadd.f32 %v7686_v29, %v6199_v1  ;;  %v1911_v11 = vand.u32 2147483647, %v1895_v52  ;;  %v7691_v29 = vld [vmem:[#allocation87_spill] sm:$0xff]  ;;  %v2045_v4 = vand.u32 2147483647, %v2029_v53  ;;  %v2337_v62 = vmul.f32 %v6262_v55, %v2320_v31 }
 0x51e   :  { %v1951_v18 = vadd.f32 %v1935_v5, %v1817_v21  ;;  %v6558_v28 = vadd.f32 %v2458_v8, %v2340_v7  ;;  %v2428_v49 = vadd.f32 %v6231_v24, %v7691_v29  ;;  %v2310_v21 = vand.u32 2147483647, %v2294_v51  ;;  %v7692_v5 = vld [vmem:[#allocation83_spill] sm:$0xff]  ;;  %v7694_v51 = vld [vmem:[#allocation104_spill] sm:$0xff] }
 0x51f   :  { %v1941_v52 = vadd.f32 %v1925_v54, %v1807_v44  ;;  %v2193_v8 = vmul.f32 %v6233_v34, %v2176_v16  ;;  %v1928_v36 = vmul.f32 %v6194_v19, %v1911_v11  ;;  %v2179_v47 = vand.u32 2147483647, %v2163_v12  ;;  %v7696_v54 = vld [vmem:[#allocation66_spill] sm:$0xff]  ;;  %v7697_v12 = vld [vmem:[#allocation45_spill] sm:$0xff] }
 0x520   :  { %7689 = vst [vmem:[#allocation29_spill] sm:$0xff] %v6558_v28  ;;  %v2085_v22 = vadd.f32 %v2069_v6, %v1951_v18  ;;  %v6566_v25 = vpop.permute.xlu1 %2404  ;;  %v1897_v7 = vadd.f32 %v6168_v14, %v7692_v5  ;;  %v2444_v20 = vand.u32 2147483647, %v2428_v49  ;;  %v2471_v6 = vmul.f32 %v6277_v10, %v2454_v61  ;;  %v7698_v49 = vld [vmem:[#allocation73_spill] sm:$0xff] }
 0x521   :  { %v2075_v53 = vadd.f32 %v2059_v30, %v1941_v52  ;;  %v7695_v31 = vunpack.c.l.bf16 %v7694_v51  ;;  %v2062_v44 = vmul.f32 %v6216_v32, %v2045_v4  ;;  %v2297_v16 = vadd.f32 %v6222_v42, %v7696_v54 }
 0x522   :  { %v2219_v2 = vadd.f32 %v2203_v37, %v2085_v22  ;;  %v2327_v11 = vmul.f32 %v6262_v55, %v2310_v21  ;;  %v2562_v29 = vadd.f32 %v6259_v50, %v7697_v12  ;;  %v2031_v61 = vadd.f32 %v6180_v3, %v7698_v49 }
 0x523   :  { %v1810_v37 = vadd.f32 %v7695_v31, %v6199_v1  ;;  %v1913_v52 = vand.u32 2147483647, %v1897_v7  ;;  %v2461_v4 = vmul.f32 %v6277_v10, %v2444_v20  ;;  %v2313_v51 = vand.u32 2147483647, %v2297_v16  ;;  %v7699_v31 = vld [vmem:[#allocation67_spill] sm:$0xff]  ;;  %v7702_v20 = vld [vmem:[#allocation76_spill] sm:$0xff] }
 0x524   :  { %v6575_v18 = vpop.permute.xlu1 %2408  ;;  %v2353_v60 = vadd.f32 %v2337_v62, %v2219_v2  ;;  %v2196_v62 = vmul.f32 %v6233_v34, %v2179_v47  ;;  %v2209_v2 = vadd.f32 %v2193_v8, %v2075_v53  ;;  %v2431_v21 = vadd.f32 %v6231_v24, %v7699_v31 }
 0x525   :  { %7693 = vst [vmem:[#allocation25_spill] sm:$0xff] %v6575_v18  ;;  %v1944_v30 = vadd.f32 %v1928_v36, %v1810_v37  ;;  %v2578_v28 = vand.u32 2147483647, %v2562_v29  ;;  %v7700_v18 = vld [vmem:[#allocation69_spill] sm:$0xff]  ;;  %v7701_v36 = vunpack.c.l.bf16 %v7653_v46  ;;  %v1930_v7 = vmul.f32 %v6194_v19, %v1913_v52  ;;  %v7703_v37 = vld [vmem:[#allocation56_spill] sm:$0xff] }
 0x526   :  { %v6588_v22 = vadd.f32 %v2471_v6, %v2353_v60  ;;  %v2343_v12 = vadd.f32 %v2327_v11, %v2209_v2  ;;  %v2696_v6 = vadd.f32 %v6272_v39, %v7700_v18  ;;  %v2047_v60 = vand.u32 2147483647, %v2031_v61  ;;  %v7704_v61 = vld [vmem:[#allocation43_spill] sm:$0xff] }
 0x527   :  { %v2078_v5 = vadd.f32 %v2062_v44, %v1944_v30  ;;  %v1812_v8 = vadd.f32 %v7701_v36, %v6199_v1  ;;  %v2565_v53 = vadd.f32 %v6259_v50, %v7702_v20  ;;  %v2165_v44 = vadd.f32 %v6189_v63, %v7703_v37 }
 0x528   :  { %v2477_v16 = vadd.f32 %v2461_v4, %v2343_v12  ;;  %v2330_v11 = vmul.f32 %v6262_v55, %v2313_v51  ;;  %v2447_v29 = vand.u32 2147483647, %v2431_v21  ;;  %v2299_v18 = vadd.f32 %v6222_v42, %v6348_v27 }
 0x529   :  { %v6594_v54 = vpop.permute.xlu1 %1966  ;;  %v2212_v47 = vadd.f32 %v2196_v62, %v2078_v5  ;;  %v2699_v46 = vadd.f32 %v6272_v39, %v6389_v48  ;;  %v2830_v30 = vadd.f32 %v6285_v59, %v7704_v61  ;;  %v2595_v62 = vmul.f32 %v6309_v43, %v2578_v28 }
 0x52a   :  { %v2712_v2 = vand.u32 2147483647, %v2696_v6  ;;  %v2064_v52 = vmul.f32 %v6216_v32, %v2047_v60  ;;  %v2433_v5 = vadd.f32 %v6231_v24, %v6413_v40  ;;  %v1946_v51 = vadd.f32 %v1930_v7, %v1812_v8 }
 0x52b   :  { %v2346_v4 = vadd.f32 %v2330_v11, %v2212_v47  ;;  %v2581_v31 = vand.u32 2147483647, %v2565_v53  ;;  %v2181_v27 = vand.u32 2147483647, %v2165_v44  ;;  %v2611_v21 = vadd.f32 %v2595_v62, %v2477_v16 }
 0x52c   :  { %v2464_v48 = vmul.f32 %v6277_v10, %v2447_v29  ;;  %v2315_v12 = vand.u32 2147483647, %v2299_v18  ;;  %v2715_v36 = vand.u32 2147483647, %v2699_v46  ;;  %v2567_v20 = vadd.f32 %v6259_v50, %v6449_v23 }
 0x52d   :  { %v6611_v49 = vpop.permute.xlu1 %2010  ;;  %v2846_v37 = vand.u32 2147483647, %v2830_v30  ;;  %v2729_v28 = vmul.f32 %v6313_v41, %v2712_v2  ;;  %v2080_v6 = vadd.f32 %v2064_v52, %v1946_v51  ;;  %v2833_v40 = vadd.f32 %v6285_v59, %v6362_v56 }
 0x52e   :  { %v2480_v8 = vadd.f32 %v2464_v48, %v2346_v4  ;;  %v2449_v47 = vand.u32 2147483647, %v2433_v5  ;;  %v2701_v7 = vadd.f32 %v6272_v39, %v6467_v38  ;;  %v2598_v53 = vmul.f32 %v6309_v43, %v2581_v31 }
 0x52f   :  { %v2198_v44 = vmul.f32 %v6233_v34, %v2181_v27  ;;  %v2745_v16 = vadd.f32 %v2729_v28, %v2611_v21  ;;  %v2332_v23 = vmul.f32 %v6262_v55, %v2315_v12  ;;  %v2732_v11 = vmul.f32 %v6313_v41, %v2715_v36 }
 0x530   :  { %v2583_v29 = vand.u32 2147483647, %v2567_v20  ;;  %v2835_v18 = vadd.f32 %v6285_v59, %v6497_v57  ;;  %v2863_v56 = vmul.f32 %v6287_v45, %v2846_v37  ;;  %v2849_v30 = vand.u32 2147483647, %v2833_v40 }
 0x531   :  { %v2214_v46 = vadd.f32 %v2198_v44, %v2080_v6  ;;  %v2614_v38 = vadd.f32 %v2598_v53, %v2480_v8  ;;  %v2466_v62 = vmul.f32 %v6277_v10, %v2449_v47  ;;  %v2717_v2 = vand.u32 2147483647, %v2701_v7  ;;  %v7705_v47 = vld [vmem:[#allocation52_spill] sm:$0xff] }
 0x532   :  { %v6623_v60 = vpop.permute.xlu1 %2490  ;;  %v6639_v52 = vadd.f32 %v2863_v56, %v2745_v16  ;;  %v2600_v51 = vmul.f32 %v6309_v43, %v2583_v29  ;;  %v2851_v31 = vand.u32 2147483647, %v2835_v18  ;;  %v2866_v57 = vmul.f32 %v6287_v45, %v2849_v30  ;;  %v7706_v29 = vld [vmem:[#allocation59_spill] sm:$0xff] }
 0x533   :  { %v2348_v4 = vadd.f32 %v2332_v23, %v2214_v46  ;;  %v2748_v5 = vadd.f32 %v2732_v11, %v2614_v38  ;;  %v2734_v48 = vmul.f32 %v6313_v41, %v2717_v2  ;;  %v1899_v8 = vadd.f32 %v6168_v14, %v6397_v9  ;;  %v7707_v46 = vld [vmem:[#allocation112_spill] sm:$0xff]  ;;  %v7708_v2 = vld [vmem:[#allocation107_spill] sm:$0xff] }
 0x534   :  { %v2868_v36 = vmul.f32 %v6287_v45, %v2851_v31  ;;  %v1887_v7 = vadd.f32 %v6168_v14, %v7705_v47  ;;  %v2021_v16 = vadd.f32 %v6180_v3, %v6431_v35  ;;  %v2033_v18 = vadd.f32 %v6180_v3, %v7706_v29  ;;  %v7712_v47 = vld [vmem:[#allocation78_spill] sm:$0xff] }
 0x535   :  { %v2482_v21 = vadd.f32 %v2466_v62, %v2348_v4  ;;  %v6648_v20 = vadd.f32 %v2866_v57, %v2748_v5  ;;  %v1915_v44 = vand.u32 2147483647, %v1899_v8  ;;  %v2155_v56 = vadd.f32 %v6189_v63, %v6456_v17  ;;  %v7710_v57 = vld [vmem:[#allocation75_spill] sm:$0xff] }
 0x536   :  { %v6636_v61 = vpop.permute.xlu1 %2538  ;;  %v1903_v23 = vand.u32 2147483647, %v1887_v7  ;;  %v1900_v30 = vadd.f32 %v6168_v14, %v7707_v46  ;;  %v2037_v38 = vand.u32 2147483647, %v2021_v16  ;;  %v7709_v4 = vunpack.c.l.bf16 %v7708_v2 }
 0x537   :  { %v2616_v12 = vadd.f32 %v2600_v51, %v2482_v21  ;;  %v1932_v9 = vmul.f32 %v6194_v19, %v1915_v44  ;;  %v2289_v5 = vadd.f32 %v6222_v42, %v6472_v0  ;;  %v2049_v31 = vand.u32 2147483647, %v2033_v18 }
 0x538   :  { %v1920_v62 = vmul.f32 %v6194_v19, %v1903_v23  ;;  %v1814_v35 = vadd.f32 %v7709_v4, %v6199_v1  ;;  %v2167_v17 = vadd.f32 %v6189_v63, %v7710_v57  ;;  %v2034_v21 = vadd.f32 %v6180_v3, %v6442_v13 }
 0x539   :  { %v2750_v28 = vadd.f32 %v2734_v48, %v2616_v12  ;;  %v2171_v48 = vand.u32 2147483647, %v2155_v56  ;;  %v7711_v12 = vunpack.c.l.bf16 %v7664_v15  ;;  %v1916_v8 = vand.u32 2147483647, %v1900_v30 }
 0x53a   :  { %v6642_v27 = vpop.permute.xlu1 %2542  ;;  %v2301_v0 = vadd.f32 %v6222_v42, %v7712_v47  ;;  %v1948_v7 = vadd.f32 %v1932_v9, %v1814_v35  ;;  %v2054_v44 = vmul.f32 %v6216_v32, %v2037_v38  ;;  %v2168_v23 = vadd.f32 %v6189_v63, %v6460_v33 }
 0x53b   :  { %2900 = vmax.xlane.f32.xlu1 %v6639_v52  ;;  %v6653_v6 = vadd.f32 %v2868_v36, %v2750_v28  ;;  %v1802_v36 = vadd.f32 %v7711_v12, %v6199_v1  ;;  %v2423_v28 = vadd.f32 %v6231_v24, %v6548_v26  ;;  %v2305_v13 = vand.u32 2147483647, %v2289_v5 }
 0x53c   :  { %v2557_v29 = vadd.f32 %v6259_v50, %v6623_v60  ;;  %v2066_v15 = vmul.f32 %v6216_v32, %v2049_v31  ;;  %v2183_v18 = vand.u32 2147483647, %v2167_v17  ;;  %v2050_v56 = vand.u32 2147483647, %v2034_v21 }
 0x53d   :  { %v1936_v16 = vadd.f32 %v1920_v62, %v1802_v36  ;;  %v2188_v26 = vmul.f32 %v6233_v34, %v2171_v48  ;;  %v7713_v30 = vunpack.c.h.bf16 %v7708_v2  ;;  %v2439_v38 = vand.u32 2147483647, %v2423_v28 }
 0x53e   :  { %v2435_v62 = vadd.f32 %v6231_v24, %v6566_v25  ;;  %v1933_v4 = vmul.f32 %v6194_v19, %v1916_v8  ;;  %v2317_v60 = vand.u32 2147483647, %v2301_v0  ;;  %v2082_v35 = vadd.f32 %v2066_v15, %v1948_v7  ;;  %v7714_v8 = vld [vmem:[#allocation25_spill] sm:$0xff] }
 0x53f   :  { %2906 = vmax.xlane.f32.xlu1 %v6648_v20  ;;  %v6651_v37 = vpop.permute.xlu1 %2100  ;;  %v1815_v9 = vadd.f32 %v7713_v30, %v6199_v1  ;;  %v2070_v5 = vadd.f32 %v2054_v44, %v1936_v16  ;;  %v2184_v31 = vand.u32 2147483647, %v2168_v23  ;;  %v2322_v57 = vmul.f32 %v6262_v55, %v2305_v13 }
 0x540   :  { %v2302_v17 = vadd.f32 %v6222_v42, %v6489_v58  ;;  %v2573_v21 = vand.u32 2147483647, %v2557_v29  ;;  %v2200_v2 = vmul.f32 %v6233_v34, %v2183_v18  ;;  %v2067_v48 = vmul.f32 %v6216_v32, %v2050_v56  ;;  %v7715_v18 = vld [vmem:[#allocation28_spill] sm:$0xff] }
 0x541   :  { %v2204_v12 = vadd.f32 %v2188_v26, %v2070_v5  ;;  %v2569_v25 = vadd.f32 %v6259_v50, %v6636_v61  ;;  %v2456_v36 = vmul.f32 %v6277_v10, %v2439_v38  ;;  %v2451_v28 = vand.u32 2147483647, %v2435_v62 }
 0x542   :  { %v2436_v47 = vadd.f32 %v6231_v24, %v7714_v8  ;;  %v1949_v7 = vadd.f32 %v1933_v4, %v1815_v9  ;;  %v2334_v58 = vmul.f32 %v6262_v55, %v2317_v60  ;;  %v2216_v44 = vadd.f32 %v2200_v2, %v2082_v35 }
 0x543   :  { %2910 = vmax.xlane.f32.xlu1 %v6653_v6  ;;  %v6656_v40 = vpop.permute.xlu1 %2144  ;;  %v2201_v23 = vmul.f32 %v6233_v34, %v2184_v31  ;;  %v2338_v13 = vadd.f32 %v2322_v57, %v2204_v12  ;;  %v2318_v29 = vand.u32 2147483647, %v2302_v17  ;;  %v2590_v61 = vmul.f32 %v6309_v43, %v2573_v21 }
 0x544   :  { %v2083_v15 = vadd.f32 %v2067_v48, %v1949_v7  ;;  %v1890_v56 = vadd.f32 %v6168_v14, %v7715_v18  ;;  %v2585_v26 = vand.u32 2147483647, %v2569_v25  ;;  %v2570_v30 = vadd.f32 %v6259_v50, %v6642_v27 }
 0x545   :  { %v2472_v9 = vadd.f32 %v2456_v36, %v2338_v13  ;;  %v2468_v38 = vmul.f32 %v6277_v10, %v2451_v28  ;;  %v2452_v62 = vand.u32 2147483647, %v2436_v47  ;;  %v2350_v4 = vadd.f32 %v2334_v58, %v2216_v44 }
 0x546   :  { %v2217_v31 = vadd.f32 %v2201_v23, %v2083_v15  ;;  %v2335_v57 = vmul.f32 %v6262_v55, %v2318_v29  ;;  %v2024_v17 = vadd.f32 %v6180_v3, %v6594_v54  ;;  %v1906_v21 = vand.u32 2147483647, %v1890_v56 }
 0x547   :  { %v2606_v27 = vadd.f32 %v2590_v61, %v2472_v9  ;;  %v2602_v2 = vmul.f32 %v6309_v43, %v2585_v26  ;;  %v2586_v48 = vand.u32 2147483647, %v2570_v30  ;;  %v2484_v25 = vadd.f32 %v2468_v38, %v2350_v4 }
 0x548   :  { %v2625_v53 = vpop.permute.xlu1 %2624  ;;  %v2469_v36 = vmul.f32 %v6277_v10, %v2452_v62  ;;  %v2351_v58 = vadd.f32 %v2335_v57, %v2217_v31  ;;  %v2040_v44 = vand.u32 2147483647, %v2024_v17  ;;  %v7718_v31 = vld [vmem:[#allocation99_spill] sm:$0xff] }
 0x549   :  { %v2691_v33 = vadd.f32 %v6272_v39, %v2625_v53  ;;  %v2618_v23 = vadd.f32 %v2602_v2, %v2484_v25  ;;  %v2603_v13 = vmul.f32 %v6309_v43, %v2586_v48  ;;  %v2560_v57 = vadd.f32 %v6259_v50, %v7718_v31 }
 0x54a   :  { %v2485_v15 = vadd.f32 %v2469_v36, %v2351_v58 }
 0x54b   :  { %v2707_v0 = vand.u32 2147483647, %v2691_v33 }
 0x54c   :  { %v2673_v11 = vpop.permute.xlu1 %2672 }
 0x54d   :  { %v2703_v16 = vadd.f32 %v6272_v39, %v2673_v11  ;;  %v2724_v11 = vmul.f32 %v6313_v41, %v2707_v0 }
 0x54f   :  { %v2719_v60 = vand.u32 2147483647, %v2703_v16  ;;  %v2740_v28 = vadd.f32 %v2724_v11, %v2606_v27 }
 0x550   :  { %v2677_v51 = vpop.permute.xlu1 %2676 }
 0x551   :  { %v2704_v35 = vadd.f32 %v6272_v39, %v2677_v51  ;;  %v2158_v51 = vadd.f32 %v6189_v63, %v6651_v37  ;;  %v2736_v47 = vmul.f32 %v6313_v41, %v2719_v60  ;;  %v1923_v37 = vmul.f32 %v6194_v19, %v1906_v21 }
 0x552   :  { %v2619_v60 = vadd.f32 %v2603_v13, %v2485_v15 }
 0x553   :  { %v2720_v0 = vand.u32 2147483647, %v2704_v35  ;;  %v2174_v18 = vand.u32 2147483647, %v2158_v51  ;;  %v2752_v26 = vadd.f32 %v2736_v47, %v2618_v23 }
 0x555   :  { %v2235_v46 = vpop.permute.xlu1 %2234  ;;  %v2737_v30 = vmul.f32 %v6313_v41, %v2720_v0  ;;  %v2191_v27 = vmul.f32 %v6233_v34, %v2174_v18 }
 0x556   :  { %v2292_v16 = vadd.f32 %v6222_v42, %v2235_v46  ;;  %v7716_v46 = vld [vmem:[#allocation110_spill] sm:$0xff] }
 0x557   :  { %v7717_v62 = vunpack.c.h.bf16 %v7716_v46  ;;  %v2753_v21 = vadd.f32 %v2737_v30, %v2619_v60  ;;  %v7720_v30 = vld [vmem:[#allocation82_spill] sm:$0xff]  ;;  %v7721_v46 = vld [vmem:[#allocation32_spill] sm:$0xff] }
 0x558   :  { %v2308_v4 = vand.u32 2147483647, %v2292_v16  ;;  %v7719_v16 = vld [vmem:[#allocation30_spill] sm:$0xff] }
 0x559   :  { %v6709_v53 = vpop.permute.xlu1 %2278  ;;  %v1805_v11 = vadd.f32 %v7717_v62, %v6199_v1  ;;  %v2693_v23 = vadd.f32 %v6272_v39, %v7719_v16  ;;  %v2706_v62 = vadd.f32 %v6272_v39, %v7721_v46 }
 0x55a   :  { %v2325_v25 = vmul.f32 %v6262_v55, %v2308_v4  ;;  %v2771_v4 = vpop.permute.xlu0 %2770 }
 0x55b   :  { %v1939_v17 = vadd.f32 %v1923_v37, %v1805_v11  ;;  %v2709_v15 = vand.u32 2147483647, %v2693_v23  ;;  %v7722_v11 = vld [vmem:[#allocation29_spill] sm:$0xff] }
 0x55e   :  { %v2759_v33 = vpop.permute.xlu1 %2758 }
 0x55f   :  { %v2825_v5 = vadd.f32 %v6285_v59, %v2759_v33  ;;  %v2057_v33 = vmul.f32 %v6216_v32, %v2040_v44 }
 0x561   :  { %v2841_v12 = vand.u32 2147483647, %v2825_v5 }
 0x562   :  { %v2807_v8 = vpop.permute.xlu1 %2806 }
 0x563   :  { %v2858_v7 = vmul.f32 %v6287_v45, %v2841_v12  ;;  %v2837_v54 = vadd.f32 %v6285_v59, %v2807_v8  ;;  %v2073_v12 = vadd.f32 %v2057_v33, %v1939_v17 }
 0x565   :  { %v2853_v29 = vand.u32 2147483647, %v2837_v54  ;;  %v6738_v61 = vadd.f32 %v2858_v7, %v2740_v28  ;;  %v2576_v28 = vand.u32 2147483647, %v2560_v57  ;;  %v2207_v8 = vadd.f32 %v2191_v27, %v2073_v12 }
 0x566   :  { %v2811_v56 = vpop.permute.xlu1 %2810  ;;  %v2722_v27 = vand.u32 2147483647, %v2706_v62 }
 0x567   :  { %v2870_v9 = vmul.f32 %v6287_v45, %v2853_v29  ;;  %v2838_v38 = vadd.f32 %v6285_v59, %v2811_v56  ;;  %2890 = vmax.xlane.f32.xlu1 %v6738_v61  ;;  %v2341_v7 = vadd.f32 %v2325_v25, %v2207_v8  ;;  %v2593_v58 = vmul.f32 %v6309_v43, %v2576_v28 }
 0x568   :  { %v2303_v25 = vadd.f32 %v6222_v42, %v6709_v53  ;;  %v2739_v8 = vmul.f32 %v6313_v41, %v2722_v27  ;;  %v7725_v42 = vld [vmem:[#allocation96_spill] sm:$0xff] }
 0x569   :  { %v2854_v35 = vand.u32 2147483647, %v2838_v38  ;;  %v6749_v5 = vadd.f32 %v2870_v9, %v2752_v26  ;;  %v1901_v9 = vadd.f32 %v6168_v14, %v7720_v30  ;;  %v2726_v38 = vmul.f32 %v6313_v41, %v2709_v15 }
 0x56a   :  { %v2169_v14 = vadd.f32 %v6189_v63, %v6656_v40 }
 0x56b   :  { %v2871_v2 = vmul.f32 %v6287_v45, %v2854_v35  ;;  %2914 = vmax.xlane.f32.xlu1 %v6749_v5  ;;  %v2369_v48 = vpop.permute.xlu1 %2368  ;;  %v2035_v35 = vadd.f32 %v6180_v3, %v6611_v49  ;;  %v1917_v17 = vand.u32 2147483647, %v1901_v9 }
 0x56c   :  { %v2426_v36 = vadd.f32 %v6231_v24, %v2369_v48  ;;  %v2899_v48 = vpop.xlane.xlu0 %2898 }
 0x56d   :  { %v6758_v51 = vadd.f32 %v2871_v2, %v2753_v21  ;;  %v2828_v2 = vadd.f32 %v6285_v59, %v2771_v4  ;;  %v2051_v12 = vand.u32 2147483647, %v2035_v35  ;;  %v1934_v3 = vmul.f32 %v6194_v19, %v1917_v17 }
 0x56e   :  { %v2442_v47 = vand.u32 2147483647, %v2426_v36  ;;  %v2926_v53 = vsub.f32 %v7725_v42, %v2899_v48  ;;  %v2319_v19 = vand.u32 2147483647, %v2303_v25  ;;  %v7728_v42 = vld [vmem:[#allocation33_spill] sm:$0xff] }
 0x56f   :  { %2916 = vmax.xlane.f32.xlu0 %v6758_v51  ;;  %v2413_v0 = vpop.permute.xlu1 %2412  ;;  %v2068_v23 = vmul.f32 %v6216_v32, %v2051_v12  ;;  %v7726_v32 = vld [vmem:[#allocation77_spill] sm:$0xff] }
 0x570   :  { %v2459_v54 = vmul.f32 %v6277_v10, %v2442_v47  ;;  %v2185_v47 = vand.u32 2147483647, %v2169_v14  ;;  %v2437_v63 = vadd.f32 %v6231_v24, %v2413_v0  ;;  %v2946_v9 = vmul.f32 1.442695, %v2926_v53 }
 0x572   :  { %v2475_v44 = vadd.f32 %v2459_v54, %v2341_v7  ;;  %v7723_v7 = vld [vmem:[#allocation105_spill] sm:$0xff]  ;;  %4091 = vpow2.f32 %v2946_v9 }
 0x573   :  { %v7724_v54 = vunpack.c.l.bf16 %v7723_v7 }
 0x574   :  { %v2499_v13 = vpop.permute.xlu1 %2498  ;;  %v2609_v29 = vadd.f32 %v2593_v58, %v2475_v44  ;;  %v2844_v44 = vand.u32 2147483647, %v2828_v2 }
 0x575   :  { %v2559_v37 = vadd.f32 %v6259_v50, %v2499_v13  ;;  %v1816_v58 = vadd.f32 %v7724_v54, %v6199_v1 }
 0x576   :  { %v2861_v30 = vmul.f32 %v6287_v45, %v2844_v44 }
 0x577   :  { %v2575_v18 = vand.u32 2147483647, %v2559_v37  ;;  %v1950_v0 = vadd.f32 %v1934_v3, %v1816_v58 }
 0x578   :  { %v2547_v56 = vpop.permute.xlu1 %2546 }
 0x579   :  { %v2592_v26 = vmul.f32 %v6309_v43, %v2575_v18  ;;  %v2571_v13 = vadd.f32 %v6259_v50, %v2547_v56  ;;  %v2903_v18 = vpop.xlane.xlu0 %2902  ;;  %v2084_v46 = vadd.f32 %v2068_v23, %v1950_v0 }
 0x57a   :  { %v2928_v62 = vsub.f32 %v7726_v32, %v2903_v18  ;;  %v7729_v18 = vld [vmem:[#allocation31_spill] sm:$0xff] }
 0x57b   :  { %v2608_v33 = vadd.f32 %v2592_v26, %v7722_v11  ;;  %v2453_v26 = vand.u32 2147483647, %v2437_v63  ;;  %v2587_v56 = vand.u32 2147483647, %v2571_v13  ;;  %v7727_v63 = vld [vmem:[#allocation100_spill] sm:$0xff] }
 0x57c   :  { %v2551_v60 = vpop.permute.xlu1 %2550 }
 0x57d   :  { %v2572_v31 = vadd.f32 %v6259_v50, %v2551_v60  ;;  %v2742_v57 = vadd.f32 %v2726_v38, %v2608_v33  ;;  %v2336_v50 = vmul.f32 %v6262_v55, %v2319_v19  ;;  %v2470_v60 = vmul.f32 %v6277_v10, %v2453_v26 }
 0x57f   :  { %v2588_v21 = vand.u32 2147483647, %v2572_v31  ;;  %v2604_v31 = vmul.f32 %v6309_v43, %v2587_v56 }
 0x581   :  { %v2605_v36 = vmul.f32 %v6309_v43, %v2588_v21  ;;  %v2637_v28 = vpop.permute.xlu1 %2636 }
 0x582   :  { %v2694_v49 = vadd.f32 %v6272_v39, %v2637_v28 }
 0x583   :  { %v2621_v40 = vadd.f32 %v2605_v36, %v6588_v22  ;;  %v2202_v22 = vmul.f32 %v6233_v34, %v2185_v47 }
 0x584   :  { %v2710_v16 = vand.u32 2147483647, %v2694_v49 }
 0x585   :  { %v2681_v37 = vpop.permute.xlu1 %2680  ;;  %v2755_v15 = vadd.f32 %v2739_v8, %v2621_v40  ;;  %v2218_v4 = vadd.f32 %v2202_v22, %v2084_v46  ;;  %v6817_v8 = vpop.eup %4091 }
 0x586   :  { %v2727_v24 = vmul.f32 %v6313_v41, %v2710_v16  ;;  %v2705_v1 = vadd.f32 %v6272_v39, %v2681_v37  ;;  %v2950_v39 = vmul.f32 1.442695, %v2928_v62 }
 0x588   :  { %v2743_v38 = vadd.f32 %v2727_v24, %v2609_v29  ;;  %v2721_v34 = vand.u32 2147483647, %v2705_v1  ;;  %v2352_v29 = vadd.f32 %v2336_v50, %v2218_v4  ;;  %4093 = vpow2.f32 %v2950_v39  ;;  %v7730_v1 = vld [vmem:[#allocation26_spill] sm:$0xff] }
 0x58a   :  { %v2767_v11 = vpop.permute.xlu1 %2766  ;;  %v6799_v33 = vadd.f32 %v2861_v30, %v2743_v38  ;;  %v2486_v55 = vadd.f32 %v2470_v60, %v2352_v29  ;;  %v2738_v14 = vmul.f32 %v6313_v41, %v2721_v34 }
 0x58b   :  { %v2827_v35 = vadd.f32 %v6285_v59, %v2767_v11 }
 0x58c   :  { %2896 = vmax.xlane.f32.xlu0 %v6799_v33  ;;  %v2620_v10 = vadd.f32 %v2604_v31, %v2486_v55 }
 0x58d   :  { %v2843_v17 = vand.u32 2147483647, %v2827_v35 }
 0x58e   :  { %v2815_v27 = vpop.permute.xlu1 %2814  ;;  %v2754_v36 = vadd.f32 %v2738_v14, %v2620_v10  ;;  %v7731_v10 = vld [vmem:[#allocation108_spill] sm:$0xff] }
 0x58f   :  { %v2860_v21 = vmul.f32 %v6287_v45, %v2843_v17  ;;  %v2839_v2 = vadd.f32 %v6285_v59, %v2815_v27 }
 0x591   :  { %v2855_v48 = vand.u32 2147483647, %v2839_v2  ;;  %v6808_v12 = vadd.f32 %v2860_v21, %v2742_v57 }
 0x592   :  { %v2819_v25 = vpop.permute.xlu1 %2818 }
 0x593   :  { %v2872_v28 = vmul.f32 %v6287_v45, %v2855_v48  ;;  %v2840_v43 = vadd.f32 %v6285_v59, %v2819_v25  ;;  %2894 = vmax.xlane.f32.xlu1 %v6808_v12  ;;  %v2905_v59 = vpop.xlane.xlu0 %2904  ;;  %v7732_v48 = vld [vmem:[#allocation81_spill] sm:$0xff] }
 0x594   :  { %v2929_v40 = vsub.f32 %v7727_v63, %v2905_v59  ;;  %v1602_v25 = vsub.f32 %v7732_v48, %v7731_v10  ;;  %v7733_v59 = vld [vmem:[#allocation51_spill] sm:$0xff]  ;;  %v7734_v63 = vld [vmem:[#allocation113_spill] sm:$0xff] }
 0x595   :  { %v2856_v3 = vand.u32 2147483647, %v2840_v43  ;;  %v6813_v49 = vadd.f32 %v2872_v28, %v2754_v36  ;;  %v6823_v57 = vpop.eup %4093  ;;  %v7743_v48 = vld [vmem:[#allocation63_spill] sm:$0xff] }
 0x596   :  { %v2952_v44 = vmul.f32 1.442695, %v2929_v40  ;;  %v1603_v40 = vsub.f32 %v7734_v63, %v7733_v59 }
 0x597   :  { %v2873_v41 = vmul.f32 %v6287_v45, %v2856_v3  ;;  %2918 = vmax.xlane.f32.xlu1 %v6813_v49  ;;  %v2909_v54 = vpop.xlane.xlu0 %2908  ;;  %v1632_v3 = vmul.f32 1.442695, %v1602_v25  ;;  %v7744_v25 = vld [vmem:[#allocation55_spill] sm:$0xff] }
 0x598   :  { %v2931_v53 = vsub.f32 %v7728_v42, %v2909_v54  ;;  %v1634_v54 = vmul.f32 1.442695, %v1603_v40 }
 0x599   :  { %v6819_v47 = vadd.f32 %v2873_v41, %v2755_v15 }
 0x59a   :  { %v2956_v37 = vmul.f32 1.442695, %v2931_v53  ;;  %v7735_v53 = vld [vmem:[#allocation62_spill] sm:$0xff] }
 0x59b   :  { %2978 = vadd.xlane.f32.xlu1 %v6817_v8  ;;  %2920 = vmax.xlane.f32.xlu0 %v6819_v47  ;;  %v2913_v19 = vpop.xlane.xlu0 %2912 }
 0x59c   :  { %v2933_v24 = vsub.f32 %v7729_v18, %v2913_v19  ;;  %v7738_v18 = vld [vmem:[#allocation64_spill] sm:$0xff] }
 0x59e   :  { %v2960_v26 = vmul.f32 1.442695, %v2933_v24 }
 0x59f   :  { %2982 = vadd.xlane.f32.xlu1 %v6823_v57  ;;  %v2893_v22 = vpop.xlane.xlu0 %2892 }
 0x5a0   :  { %v2923_v30 = vsub.f32 %v7730_v1, %v2893_v22 }
 0x5a2   :  { %v2940_v9 = vmul.f32 1.442695, %v2923_v30  ;;  %v7739_v30 = vld [vmem:[#allocation98_spill] sm:$0xff] }
 0x5c4   :  { %v2901_v7 = vpop.xlane.xlu1 %2900 }
 0x5c5   :  { %v2927_v45 = vsub.f32 %v6639_v52, %v2901_v7 }
 0x5c7   :  { %v2948_v58 = vmul.f32 1.442695, %v2927_v45 }
 0x5c8   :  { %v2907_v16 = vpop.xlane.xlu1 %2906 }
 0x5c9   :  { %4095 = vpow2.f32 %v2948_v58  ;;  %v2930_v23 = vsub.f32 %v6648_v20, %v2907_v16  ;;  %v7736_v16 = vld [vmem:[#allocation50_spill] sm:$0xff] }
 0x5ca   :  { %4097 = vpow2.f32 %v2952_v44 }
 0x5cb   :  { %v2954_v13 = vmul.f32 1.442695, %v2930_v23 }
 0x5cc   :  { %v2911_v15 = vpop.xlane.xlu1 %2910 }
 0x5cd   :  { %4099 = vpow2.f32 %v2954_v13  ;;  %v2932_v0 = vsub.f32 %v6653_v6, %v2911_v15  ;;  %v7737_v15 = vld [vmem:[#allocation97_spill] sm:$0xff] }
 0x5ce   :  { %4101 = vpow2.f32 %v2956_v37 }
 0x5cf   :  { %v2958_v52 = vmul.f32 1.442695, %v2932_v0 }
 0x5d1   :  { %4103 = vpow2.f32 %v2958_v52 }
 0x5d2   :  { %4105 = vpow2.f32 %v2960_v26 }
 0x5d3   :  { %4107 = vpow2.f32 %v2940_v9 }
 0x5d6   :  { %v6833_v20 = vpop.eup %4095 }
 0x5d7   :  { %2980 = vadd.xlane.f32.xlu0 %v6833_v20  ;;  %v6836_v38 = vpop.eup %4097 }
 0x5da   :  { %v6838_v46 = vpop.eup %4099 }
 0x5db   :  { %2984 = vadd.xlane.f32.xlu0 %v6836_v38  ;;  %2986 = vadd.xlane.f32.xlu1 %v6838_v46  ;;  %v6842_v6 = vpop.eup %4101 }
 0x5de   :  { %v6844_v32 = vpop.eup %4103 }
 0x5df   :  { %2988 = vadd.xlane.f32.xlu0 %v6842_v6  ;;  %2990 = vadd.xlane.f32.xlu1 %v6844_v32  ;;  %v6848_v62 = vpop.eup %4105 }
 0x5e0   :  { %v6851_v50 = vpop.eup %4107 }
 0x5e3   :  { %2992 = vadd.xlane.f32.xlu0 %v6848_v62 }
 0x5e7   :  { %2972 = vadd.xlane.f32.xlu0 %v6851_v50 }
 0x5f0   :  { %v2891_v56 = vpop.xlane.xlu1 %2890 }
 0x5f1   :  { %v2922_v11 = vsub.f32 %v6738_v61, %v2891_v56  ;;  %v7740_v56 = vld [vmem:[#allocation41_spill] sm:$0xff] }
 0x5f3   :  { %v2938_v4 = vmul.f32 1.442695, %v2922_v11 }
 0x5f4   :  { %v2915_v60 = vpop.xlane.xlu1 %2914 }
 0x5f5   :  { %4109 = vpow2.f32 %v2938_v4  ;;  %v2934_v34 = vsub.f32 %v6749_v5, %v2915_v60 }
 0x5f7   :  { %v2962_v35 = vmul.f32 1.442695, %v2934_v34 }
 0x5f8   :  { %v2917_v39 = vpop.xlane.xlu0 %2916 }
 0x5f9   :  { %4111 = vpow2.f32 %v2962_v35  ;;  %v2935_v29 = vsub.f32 %v6758_v51, %v2917_v39  ;;  %v7741_v35 = vld [vmem:[#allocation71_spill] sm:$0xff]  ;;  %v7742_v39 = vld [vmem:[#allocation109_spill] sm:$0xff] }
 0x5fb   :  { %v2964_v31 = vmul.f32 1.442695, %v2935_v29 }
 0x5fd   :  { %4113 = vpow2.f32 %v2964_v31 }
 0x602   :  { %v6857_v17 = vpop.eup %4109 }
 0x603   :  { %2970 = vadd.xlane.f32.xlu1 %v6857_v17 }
 0x606   :  { %v6860_v27 = vpop.eup %4111 }
 0x607   :  { %2994 = vadd.xlane.f32.xlu1 %v6860_v27 }
 0x60a   :  { %v6863_v61 = vpop.eup %4113 }
 0x60b   :  { %2996 = vadd.xlane.f32.xlu0 %v6863_v61 }
 0x615   :  { %v2897_v5 = vpop.xlane.xlu0 %2896 }
 0x616   :  { %v2925_v55 = vsub.f32 %v6799_v33, %v2897_v5 }
 0x618   :  { %v2944_v14 = vmul.f32 1.442695, %v2925_v55 }
 0x61a   :  { %4115 = vpow2.f32 %v2944_v14 }
 0x61c   :  { %v2895_v51 = vpop.xlane.xlu1 %2894 }
 0x61d   :  { %v2924_v21 = vsub.f32 %v6808_v12, %v2895_v51 }
 0x61f   :  { %v2942_v2 = vmul.f32 1.442695, %v2924_v21 }
 0x620   :  { %v2919_v36 = vpop.xlane.xlu1 %2918 }
 0x621   :  { %4117 = vpow2.f32 %v2942_v2  ;;  %v2936_v28 = vsub.f32 %v6813_v49, %v2919_v36 }
 0x623   :  { %v2966_v43 = vmul.f32 1.442695, %v2936_v28 }
 0x624   :  { %v2921_v41 = vpop.xlane.xlu0 %2920  ;;  %v2979_v42 = vpop.xlane.xlu1 %2978 }
 0x625   :  { %4119 = vpow2.f32 %v2966_v43  ;;  %v2937_v33 = vsub.f32 %v6819_v47, %v2921_v41  ;;  %v7745_v43 = vld [vmem:[#allocation58_spill] sm:$0xff] }
 0x626   :  { %4121 = vpow2.f32 %v1632_v3  ;;  %v7746_v3 = vld [vmem:[#allocation36_spill] sm:$0xff] }
 0x627   :  { %v6874_v7 = vpop.eup %4115  ;;  %v2968_v12 = vmul.f32 1.442695, %v2937_v33 }
 0x628   :  { %2976 = vadd.xlane.f32.xlu0 %v6874_v7  ;;  %v2983_v23 = vpop.xlane.xlu1 %2982 }
 0x629   :  { %4123 = vpow2.f32 %v2968_v12 }
 0x62a   :  { %4125 = vpow2.f32 %v1634_v54  ;;  %v7747_v54 = vld [vmem:[#allocation68_spill] sm:$0xff] }
 0x62b   :  { %4127 = vrcp.f32 %v7735_v53 }
 0x62c   :  { %4129 = vrcp.f32 %v2979_v42 }
 0x62d   :  { %4131 = vrcp.f32 %v7736_v16  ;;  %v7748_v16 = vld [vmem:[#allocation39_spill] sm:$0xff] }
 0x62e   :  { %v6877_v45 = vpop.eup %4117 }
 0x62f   :  { %2974 = vadd.xlane.f32.xlu1 %v6877_v45 }
 0x632   :  { %v6880_v49 = vpop.eup %4119 }
 0x633   :  { %2998 = vadd.xlane.f32.xlu1 %v6880_v49  ;;  %v6883_v58 = vpop.eup %4121 }
 0x636   :  { %v6885_v47 = vpop.eup %4123 }
 0x637   :  { %3000 = vadd.xlane.f32.xlu0 %v6885_v47  ;;  %1664 = vadd.xlane.f32.xlu1 %v6883_v58  ;;  %v6889_v44 = vpop.eup %4125 }
 0x638   :  { %v4128_v0 = vpop.eup %4127 }
 0x639   :  { %v4130_v22 = vpop.eup %4129  ;;  %v1689_v11 = vmul.f32 %v4128_v0, %v7740_v56  ;;  %v7750_v0 = vld [vmem:[#allocation49_spill] sm:$0xff] }
 0x63a   :  { %v4132_v26 = vpop.eup %4131  ;;  %v3022_v4 = vmul.f32 %v4130_v22, %v6817_v8 }
 0x63b   :  { %1666 = vadd.xlane.f32.xlu0 %v6889_v44  ;;  %v1688_v29 = vmul.f32 %v4132_v26, %v7742_v39 }
 0x63d   :  { %v1702_v55 = vpack.c.bf16 %v1689_v11, %v1688_v29 }
 0x660   :  { %v2981_v19 = vpop.xlane.xlu0 %2980 }
 0x661   :  { %4133 = vrcp.f32 %v2981_v19 }
 0x662   :  { %4135 = vrcp.f32 %v2983_v23 }
 0x664   :  { %v2985_v13 = vpop.xlane.xlu0 %2984  ;;  %v2987_v37 = vpop.xlane.xlu1 %2986 }
 0x665   :  { %4137 = vrcp.f32 %v2985_v13 }
 0x666   :  { %4139 = vrcp.f32 %v7737_v15  ;;  %v7749_v15 = vld [vmem:[#allocation44_spill] sm:$0xff] }
 0x667   :  { %4141 = vrcp.f32 %v7738_v18 }
 0x668   :  { %4143 = vrcp.f32 %v2987_v37  ;;  %v2989_v24 = vpop.xlane.xlu0 %2988  ;;  %v2991_v9 = vpop.xlane.xlu1 %2990 }
 0x669   :  { %4145 = vrcp.f32 %v2989_v24 }
 0x66a   :  { %4147 = vrcp.f32 %v7739_v30  ;;  %v7753_v30 = vld [vmem:[#allocation72_spill] sm:$0xff] }
 0x66c   :  { %v2993_v52 = vpop.xlane.xlu0 %2992 }
 0x66d   :  { %4149 = vrcp.f32 %v2993_v52  ;;  %v7751_v52 = vld [vmem:[#allocation85_spill] sm:$0xff] }
 0x66e   :  { %v4134_v1 = vpop.eup %4133  ;;  %4151 = vrcp.f32 %v7741_v35  ;;  %v7755_v35 = vld [vmem:[#allocation88_spill] sm:$0xff] }
 0x66f   :  { %v3023_v60 = vmul.f32 %v4134_v1, %v6833_v20  ;;  %v4136_v34 = vpop.eup %4135  ;;  %4153 = vrcp.f32 %v2991_v9  ;;  %v7754_v9 = vld [vmem:[#allocation65_spill] sm:$0xff] }
 0x670   :  { %v3024_v51 = vmul.f32 %v4136_v34, %v6823_v57  ;;  %4155 = vrcp.f32 %v7743_v48  ;;  %v2973_v24 = vpop.xlane.xlu0 %2972 }
 0x671   :  { %v3036_v31 = vpack.c.bf16 %v3023_v60, %v3022_v4  ;;  %4157 = vrcp.f32 %v7745_v43 }
 0x672   :  { %v4138_v5 = vpop.eup %4137  ;;  %4159 = vrcp.f32 %v7751_v52 }
 0x673   :  { %v4140_v14 = vpop.eup %4139  ;;  %3126 = vmatprep.mubr.bf16.mxu1 %v3036_v31  ;;  %v3025_v21 = vmul.f32 %v4138_v5, %v6836_v38  ;;  %4161 = vrcp.f32 %v2973_v24  ;;  %v7756_v5 = vld [vmem:[#allocation84_spill] sm:$0xff] }
 0x674   :  { %v4142_v2 = vpop.eup %4141  ;;  %3127 = vmatmul.mubr.bf16.vlgmr.msra.gmra.mxu1 %v1702_v55  ;;  %v1691_v36 = vmul.f32 %v4140_v14, %v7744_v25 }
 0x675   :  { %v4144_v8 = vpop.eup %4143  ;;  %v3037_v10 = vpack.c.bf16 %v3025_v21, %v3024_v51  ;;  %v1690_v41 = vmul.f32 %v4142_v2, %v7746_v3 }
 0x676   :  { %v4146_v20 = vpop.eup %4145  ;;  %v3026_v57 = vmul.f32 %v4144_v8, %v6838_v46 }
 0x677   :  { %3134 = vmatprep.mubr.bf16.mxu1 %v3037_v10  ;;  %v3027_v28 = vmul.f32 %v4146_v20, %v6842_v6  ;;  %v1703_v59 = vpack.c.bf16 %v1691_v36, %v1690_v41  ;;  %v4148_v38 = vpop.eup %4147  ;;  %v7757_v20 = vld [vmem:[#allocation70_spill] sm:$0xff]  ;;  %v7759_v41 = vld [vmem:[#allocation95_spill] sm:$0xff] }
 0x678   :  { %v1693_v42 = vmul.f32 %v4148_v38, %v7747_v54 }
 0x679   :  { %v3038_v63 = vpack.c.bf16 %v3027_v28, %v3026_v57  ;;  %v7758_v28 = vld [vmem:[#allocation38_spill] sm:$0xff]  ;;  %v7760_v57 = vld [vmem:[#allocation79_spill] sm:$0xff] }
 0x67a   :  { %v4150_v40 = vpop.eup %4149 }
 0x67b   :  { %v4152_v33 = vpop.eup %4151  ;;  %v3029_v53 = vmul.f32 %v4150_v40, %v6848_v62  ;;  %v7752_v62 = vld [vmem:[#allocation90_spill] sm:$0xff] }
 0x67c   :  { %3135 = vmatmul.mubr.bf16.gmra.mxu1 %v1703_v59  ;;  %v4154_v12 = vpop.eup %4153  ;;  %v1692_v6 = vmul.f32 %v4152_v33, %v7748_v16  ;;  %4163 = vrcp.f32 %v7752_v62 }
 0x67d   :  { %3142 = vmatprep.mubr.bf16.mxu1 %v3038_v63  ;;  %v3028_v23 = vmul.f32 %v4154_v12, %v6844_v32  ;;  %v4156_v13 = vpop.eup %4155 }
 0x67e   :  { %v1704_v19 = vpack.c.bf16 %v1693_v42, %v1692_v6  ;;  %v4158_v46 = vpop.eup %4157  ;;  %v1695_v18 = vmul.f32 %v4156_v13, %v7749_v15  ;;  %v7761_v42 = vld [vmem:[#allocation42_spill] sm:$0xff] }
 0x67f   :  { %v3039_v37 = vpack.c.bf16 %v3029_v53, %v3028_v23  ;;  %v1694_v22 = vmul.f32 %v4158_v46, %v7750_v0  ;;  %v4160_v11 = vpop.eup %4159  ;;  %v7762_v23 = vld [vmem:[#allocation37_spill] sm:$0xff] }
 0x680   :  { %v4162_v4 = vpop.eup %4161  ;;  %v1685_v39 = vmul.f32 %v4160_v11, %v7755_v35 }
 0x681   :  { %v1705_v26 = vpack.c.bf16 %v1695_v18, %v1694_v22  ;;  %v3019_v31 = vmul.f32 %v4162_v4, %v6851_v50 }
 0x684   :  { %3143 = vmatmul.mubr.bf16.gmra.mxu1 %v1704_v19 }
 0x685   :  { %3150 = vmatprep.mubr.bf16.mxu1 %v3039_v37 }
 0x689   :  { %v4164_v60 = vpop.eup %4163 }
 0x68a   :  { %v1684_v55 = vmul.f32 %v4164_v60, %v7756_v5  ;;  %v6941_v60 = vld [vmem:[%s7204_s4] ss:$0 sm:$0xff] }
 0x68c   :  { %v2971_v1 = vpop.xlane.xlu1 %2970  ;;  %3151 = vmatmul.mubr.bf16.gmra.mxu1 %v1705_v26  ;;  %v1700_v51 = vpack.c.bf16 %v1685_v39, %v1684_v55 }
 0x68d   :  { %4165 = vrcp.f32 %v2971_v1 }
 0x68e   :  { %4167 = vrcp.f32 %v7753_v30 }
 0x690   :  { %v2995_v32 = vpop.xlane.xlu1 %2994 }
 0x691   :  { %4169 = vrcp.f32 %v2995_v32 }
 0x692   :  { %4171 = vrcp.f32 %v7754_v9 }
 0x694   :  { %v2997_v56 = vpop.xlane.xlu0 %2996 }
 0x695   :  { %4173 = vrcp.f32 %v2997_v56 }
 0x696   :  { %4175 = vrcp.f32 %v7759_v41 }
 0x69a   :  { %v4166_v34 = vpop.eup %4165 }
 0x69b   :  { %v3018_v29 = vmul.f32 %v4166_v34, %v6857_v17  ;;  %v4168_v21 = vpop.eup %4167 }
 0x69c   :  { %v1697_v48 = vmul.f32 %v4168_v21, %v7757_v20 }
 0x69d   :  { %v3034_v14 = vpack.c.bf16 %v3019_v31, %v3018_v29 }
 0x69e   :  { %v4170_v2 = vpop.eup %4169 }
 0x69f   :  { %3110 = vmatprep.mubr.bf16.mxu0 %v3034_v14  ;;  %v4172_v8 = vpop.eup %4171  ;;  %v3030_v25 = vmul.f32 %v4170_v2, %v6860_v27 }
 0x6a0   :  { %3111 = vmatmul.mubr.bf16.vlgmr.msra.gmra.mxu0 %v1700_v51  ;;  %v1696_v17 = vmul.f32 %v4172_v8, %v7758_v28 }
 0x6a2   :  { %v4174_v10 = vpop.eup %4173  ;;  %v1706_v50 = vpack.c.bf16 %v1697_v48, %v1696_v17 }
 0x6a3   :  { %v3031_v36 = vmul.f32 %v4174_v10, %v6863_v61  ;;  %v4176_v61 = vpop.eup %4175 }
 0x6a4   :  { %v1687_v53 = vmul.f32 %v4176_v61, %v7761_v42 }
 0x6a5   :  { %v3040_v43 = vpack.c.bf16 %v3031_v36, %v3030_v25 }
 0x6a7   :  { %3158 = vmatprep.mubr.bf16.mxu1 %v3040_v43 }
 0x6a8   :  { %3159 = vmatmul.mubr.bf16.gmra.mxu1 %v1706_v50 }
 0x6b1   :  { %v2977_v3 = vpop.xlane.xlu0 %2976 }
 0x6b2   :  { %4177 = vrcp.f32 %v2977_v3 }
 0x6b3   :  { %4179 = vrcp.f32 %v7760_v57 }
 0x6b8   :  { %v2975_v59 = vpop.xlane.xlu1 %2974 }
 0x6b9   :  { %4181 = vrcp.f32 %v2975_v59 }
 0x6bc   :  { %v2999_v38 = vpop.xlane.xlu1 %2998 }
 0x6bd   :  { %4183 = vrcp.f32 %v2999_v38 }
 0x6bf   :  { %v4178_v40 = vpop.eup %4177 }
 0x6c0   :  { %v3001_v63 = vpop.xlane.xlu0 %3000  ;;  %v1665_v27 = vpop.xlane.xlu1 %1664  ;;  %v3021_v6 = vmul.f32 %v4178_v40, %v6874_v7 }
 0x6c1   :  { %4185 = vrcp.f32 %v3001_v63  ;;  %v4180_v12 = vpop.eup %4179 }
 0x6c2   :  { %4187 = vrcp.f32 %v1665_v27  ;;  %v1686_v19 = vmul.f32 %v4180_v12, %v7762_v23 }
 0x6c4   :  { %v1667_v33 = vpop.xlane.xlu0 %1666  ;;  %v1701_v37 = vpack.c.bf16 %v1687_v53, %v1686_v19 }
 0x6c5   :  { %4189 = vrcp.f32 %v1667_v33 }
 0x6c6   :  { %v4182_v54 = vpop.eup %4181 }
 0x6c7   :  { %v3020_v16 = vmul.f32 %v4182_v54, %v6877_v45 }
 0x6c9   :  { %v3035_v13 = vpack.c.bf16 %v3021_v6, %v3020_v16 }
 0x6ca   :  { %v4184_v46 = vpop.eup %4183 }
 0x6cb   :  { %3118 = vmatprep.mubr.bf16.mxu0 %v3035_v13  ;;  %v3032_v18 = vmul.f32 %v4184_v46, %v6880_v49 }
 0x6cc   :  { %3119 = vmatmul.mubr.bf16.gmra.mxu0 %v1701_v37 }
 0x6ce   :  { %v4186_v15 = vpop.eup %4185 }
 0x6cf   :  { %v3033_v24 = vmul.f32 %v4186_v15, %v6885_v47  ;;  %v4188_v0 = vpop.eup %4187 }
 0x6d0   :  { %v1698_v45 = vmul.f32 %v4188_v0, %v6883_v58 }
 0x6d1   :  { %v3041_v22 = vpack.c.bf16 %v3033_v24, %v3032_v18 }
 0x6d2   :  { %v4190_v52 = vpop.eup %4189 }
 0x6d3   :  { %3166 = vmatprep.mubr.bf16.mxu1 %v3041_v22  ;;  %v1699_v7 = vmul.f32 %v4190_v52, %v6889_v44 }
 0x6d5   :  { %v1707_v26 = vpack.c.bf16 %v1699_v7, %v1698_v45 }
 0x6d7   :  { %3167 = vmatmul.mubr.bf16.gmra.mxu1 %v1707_v26 }
 0x734   :  { %v3785_v62 = vpop.f32.mrf.mxu1 }
 0x736   :  { %v3786_v1 = vpop.f32.mrf.mxu1 }
 0x737   :  { %v3787_v34 = vadd.f32 %v3786_v1, %v3785_v62  ;;  %v7010_v1 = vstv %s7210_s10 }
 0x738   :  { %v3788_v32 = vpop.f32.mrf.mxu1 }
 0x739   :  { %v6948_v31 = vadd.f32 %v3787_v34, %v6941_v60 }
 0x73a   :  { %v3789_v30 = vpop.f32.mrf.mxu1 }
 0x73b   :  { %v3790_v5 = vadd.f32 %v3789_v30, %v3788_v32 }
 0x73c   :  { %v3791_v9 = vpop.f32.mrf.mxu1 }
 0x73d   :  { %v6956_v51 = vadd.f32 %v3790_v5, %v6941_v60 }
 0x73e   :  { %v3792_v56 = vpop.f32.mrf.mxu1 }
 0x73f   :  { %v3793_v41 = vadd.f32 %v3792_v56, %v3791_v9 }
 0x740   :  { %v3794_v4 = vpop.f32.mrf.mxu1 }
 0x741   :  { %v6964_v27 = vadd.f32 %v3793_v41, %v6941_v60  ;;  %v7022_v41 = vld [vmem:[%s7208_s8] ss:$0 sm:$0xff] }
 0x742   :  { %v3795_v39 = vpop.f32.mrf.mxu1 }
 0x743   :  { %v3796_v61 = vadd.f32 %v3795_v39, %v3794_v4 }
 0x744   :  { %v3797_v14 = vpop.f32.mrf.mxu1 }
 0x745   :  { %v6972_v42 = vadd.f32 %v3796_v61, %v6941_v60 }
 0x746   :  { %v3798_v21 = vpop.f32.mrf.mxu1 }
 0x747   :  { %v3799_v40 = vadd.f32 %v3798_v21, %v3797_v14  ;;  %v3175_v21 = vld [vmem:[%s7209_s9] sm:$0x1] }
 0x748   :  { %v3800_v2 = vpop.f32.mrf.mxu1 }
 0x749   :  { %v6975_v53 = vadd.f32 %v3799_v40, %v6941_v60 }
 0x74a   :  { %v3801_v8 = vpop.f32.mrf.mxu1 }
 0x74b   :  { %v3802_v16 = vadd.f32 %v3801_v8, %v3800_v2  ;;  %v3176_v2 = vadd.f32 1e-05, %v3175_v21 }
 0x74c   :  { %v3803_v10 = vpop.f32.mrf.mxu1 }
 0x74d   :  { %v6980_v19 = vadd.f32 %v3802_v16, %v6941_v60  ;;  %v7032_v16 = vld [vmem:[%s7206_s6] ss:$0 sm:$0xff]  ;;  %s4415_s6 = smov [#allocation12]  }
 0x74e   :  { %v3804_v20 = vpop.f32.mrf.mxu1 }
 0x74f   :  { %v3805_v6 = vadd.f32 %v3804_v20, %v3803_v10 }
 0x750   :  { %v3806_v48 = vpop.f32.mrf.mxu1 }
 0x751   :  { %v6983_v13 = vadd.f32 %v3805_v6, %v6941_v60 }
 0x752   :  { %v3807_v25 = vpop.f32.mrf.mxu1 }
 0x753   :  { %v3808_v37 = vadd.f32 %v3807_v25, %v3806_v48 }
 0x755   :  { %v6988_v18 = vadd.f32 %v3808_v37, %v6941_v60 }
 0x760   :  { %v3773_v11 = vpop.f32.mrf.mxu0 }
 0x762   :  { %v3774_v49 = vpop.f32.mrf.mxu0 }
 0x763   :  { %v3775_v47 = vadd.f32 %v3774_v49, %v3773_v11 }
 0x764   :  { %v3776_v58 = vpop.f32.mrf.mxu0 }
 0x765   :  { %v6944_v44 = vadd.f32 %v3775_v47, %v6941_v60 }
 0x766   :  { %v3777_v35 = vpop.f32.mrf.mxu0 }
 0x767   :  { %v3778_v29 = vadd.f32 %v3777_v35, %v3776_v58  ;;  %3178 = vadd.xlane.f32.xlu1 %v6944_v44 }
 0x768   :  { %v3809_v36 = vpop.f32.mrf.mxu1 }
 0x769   :  { %v6951_v55 = vadd.f32 %v3778_v29, %v6941_v60 }
 0x76a   :  { %v3810_v17 = vpop.f32.mrf.mxu1 }
 0x76b   :  { %3180 = vadd.xlane.f32.xlu0 %v6951_v55  ;;  %3186 = vadd.xlane.f32.xlu1 %v6948_v31  ;;  %v3811_v46 = vadd.f32 %v3810_v17, %v3809_v36 }
 0x76c   :  { %v3812_v57 = vpop.f32.mrf.mxu1 }
 0x76d   :  { %v6991_v24 = vadd.f32 %v3811_v46, %v6941_v60 }
 0x76e   :  { %v3813_v33 = vpop.f32.mrf.mxu1 }
 0x76f   :  { %3188 = vadd.xlane.f32.xlu0 %v6956_v51  ;;  %v3814_v0 = vadd.f32 %v3813_v33, %v3812_v57  ;;  %v7763_v57 = vld [vmem:[#allocation102_spill] sm:$0xff] }
 0x771   :  { %v6996_v45 = vadd.f32 %v3814_v0, %v6941_v60 }
 0x78c   :  { %v3779_v28 = vpop.f32.mrf.mxu0 }
 0x78e   :  { %v3780_v43 = vpop.f32.mrf.mxu0 }
 0x78f   :  { %v3781_v50 = vadd.f32 %v3780_v43, %v3779_v28 }
 0x790   :  { %v3782_v3 = vpop.f32.mrf.mxu0 }
 0x791   :  { %v6960_v59 = vadd.f32 %v3781_v50, %v6941_v60 }
 0x792   :  { %v3783_v38 = vpop.f32.mrf.mxu0 }
 0x793   :  { %v3784_v63 = vadd.f32 %v3783_v38, %v3782_v3  ;;  %3182 = vadd.xlane.f32.xlu1 %v6960_v59 }
 0x795   :  { %v6967_v12 = vadd.f32 %v3784_v63, %v6941_v60 }
 0x797   :  { %v3815_v54 = vpop.f32.mrf.mxu1  ;;  %3184 = vadd.xlane.f32.xlu0 %v6967_v12  ;;  %3190 = vadd.xlane.f32.xlu1 %v6964_v27 }
 0x799   :  { %v3816_v23 = vpop.f32.mrf.mxu1 }
 0x79a   :  { %v3817_v22 = vadd.f32 %v3816_v23, %v3815_v54 }
 0x79b   :  { %3192 = vadd.xlane.f32.xlu0 %v6972_v42  ;;  %3194 = vadd.xlane.f32.xlu1 %v6975_v53  ;;  %v3818_v15 = vpop.f32.mrf.mxu1 }
 0x79c   :  { %v6999_v7 = vadd.f32 %v3817_v22, %v6941_v60 }
 0x79d   :  { %v3819_v52 = vpop.f32.mrf.mxu1 }
 0x79e   :  { %v3820_v26 = vadd.f32 %v3819_v52, %v3818_v15 }
 0x79f   :  { %3196 = vadd.xlane.f32.xlu0 %v6980_v19  ;;  %3198 = vadd.xlane.f32.xlu1 %v6983_v13 }
 0x7a0   :  { %v7004_v62 = vadd.f32 %v3820_v26, %v6941_v60 }
 0x7a3   :  { %3200 = vadd.xlane.f32.xlu0 %v6988_v18  ;;  %3202 = vadd.xlane.f32.xlu1 %v6991_v24 }
 0x7a7   :  { %3204 = vadd.xlane.f32.xlu0 %v6996_v45  ;;  %3206 = vadd.xlane.f32.xlu1 %v6999_v7 }
 0x7ab   :  { %3208 = vadd.xlane.f32.xlu0 %v7004_v62 }
 0x7f0   :  { %v3179_v32 = vpop.xlane.xlu1 %3178 }
 0x7f1   :  { %v3210_v30 = vmul.f32 0.0625, %v3179_v32 }
 0x7f3   :  { %v3228_v9 = vmul.f32 %v7010_v1, %v3210_v30 }
 0x7f4   :  { %v3181_v56 = vpop.xlane.xlu0 %3180  ;;  %v3187_v11 = vpop.xlane.xlu1 %3186 }
 0x7f5   :  { %v3667_v49 = vmul.f32 -1.442695, %v3228_v9  ;;  %v3211_v4 = vmul.f32 0.0625, %v3181_v56  ;;  %v3214_v47 = vmul.f32 0.0625, %v3187_v11 }
 0x7f7   :  { %4191 = vpow2.f32 %v3667_v49  ;;  %v3229_v60 = vmul.f32 %v7010_v1, %v3211_v4  ;;  %v3232_v58 = vmul.f32 %v7010_v1, %v3214_v47 }
 0x7f8   :  { %v3189_v34 = vpop.xlane.xlu0 %3188 }
 0x7f9   :  { %v3668_v35 = vmul.f32 -1.442695, %v3229_v60  ;;  %v3671_v39 = vmul.f32 -1.442695, %v3232_v58  ;;  %v3215_v29 = vmul.f32 0.0625, %v3189_v34 }
 0x7fb   :  { %4193 = vpow2.f32 %v3668_v35  ;;  %v3233_v5 = vmul.f32 %v7010_v1, %v3215_v29 }
 0x7fc   :  { %4195 = vpow2.f32 %v3671_v39 }
 0x7fd   :  { %v3672_v14 = vmul.f32 -1.442695, %v3233_v5 }
 0x7ff   :  { %4197 = vpow2.f32 %v3672_v14 }
 0x800   :  { %4199 = vrsqrt.f32 %v3176_v2 }
 0x804   :  { %v4192_v8 = vpop.eup %4191 }
 0x805   :  { %v3292_v10 = vadd.f32 1.0, %v4192_v8 }
 0x807   :  { %4201 = vrcp.f32 %v3292_v10 }
 0x808   :  { %v4194_v20 = vpop.eup %4193 }
 0x809   :  { %v4196_v48 = vpop.eup %4195  ;;  %v3293_v25 = vadd.f32 1.0, %v4194_v20 }
 0x80a   :  { %v3296_v36 = vadd.f32 1.0, %v4196_v48 }
 0x80b   :  { %4203 = vrcp.f32 %v3293_v25 }
 0x80c   :  { %v4198_v28 = vpop.eup %4197  ;;  %4205 = vrcp.f32 %v3296_v36 }
 0x80d   :  { %v3297_v17 = vadd.f32 1.0, %v4198_v28  ;;  %v4200_v43 = vpop.eup %4199 }
 0x80e   :  { %v7025_v38 = vrot.slane %v4200_v43, %v7763_v57 }
 0x80f   :  { %4207 = vrcp.f32 %v3297_v17 }
 0x814   :  { %v4202_v50 = vpop.eup %4201 }
 0x815   :  { %v3340_v3 = vadd.f32 1.0, %v4202_v50 }
 0x817   :  { %v3356_v63 = vmul.f32 %v3340_v3, %v6944_v44  ;;  %v7039_v44 = vld [vmem:[%s7207_s7] ss:$0 sm:$0xff]  ;;  %s3580_s7 = sshll.u32 %s4415_s6, 4  ;;  %s3581_s7 = int_to_ptr.vmem [resolvable:$true] %s3580_s7 }
 0x818   :  { %v4204_v61 = vpop.eup %4203  ;;  %s4361_s13 = scalar_lea.vmem %s3581_s7, 2048  ;;  %p4366_p7 = scmp.lt.s32.totalorder %s3581_s7, %s3581_s7 }
 0x819   :  { %v4206_v40 = vpop.eup %4205  ;;  %v3379_v33 = vsub.f32 %v3356_v63, %v7022_v41  ;;  %v3341_v54 = vadd.f32 1.0, %v4204_v61  ;;  %p4362_p6 = scmp.ne.s32.totalorder %s3581_s7, %s4361_s13  ;;  %p4367_p8 = scmp.lt.s32.totalorder %s4361_s13, %s4361_s13 }
 0x81a   :  { %v3344_v6 = vadd.f32 1.0, %v4206_v40 }
 0x81b   :  { %v3401_v23 = vmul.f32 %v7025_v38, %v3379_v33  ;;  %v3357_v37 = vmul.f32 %v3341_v54, %v6951_v55  ;;  %p4368_p9 = por %p4367_p8, %p4366_p7 }
 0x81c   :  { %v4208_v46 = vpop.eup %4207  ;;  %v3360_v15 = vmul.f32 %v3344_v6, %v6948_v31  ;;  %v3183_v0 = vpop.xlane.xlu1 %3182 }
 0x81d   :  { %v3424_v22 = vmul.f32 %v7032_v16, %v3401_v23  ;;  %v3380_v52 = vsub.f32 %v3357_v37, %v7022_v41  ;;  %v3345_v26 = vadd.f32 1.0, %v4208_v46  ;;  %v3212_v32 = vmul.f32 0.0625, %v3183_v0  ;;  %p4369_p10 = pnand %p4368_p9, %p4362_p6 }
 0x81e   :  { %v3383_v30 = vsub.f32 %v3360_v15, %v7022_v41 }
 0x81f   :  { %v7046_v9 = vadd.f32 %v7039_v44, %v3424_v22  ;;  %v3402_v55 = vmul.f32 %v7025_v38, %v3380_v52  ;;  %v3361_v56 = vmul.f32 %v3345_v26, %v6956_v51  ;;  %v3230_v11 = vmul.f32 %v7010_v1, %v3212_v32 }
 0x820   :  { %v3405_v31 = vmul.f32 %v7025_v38, %v3383_v30  ;;  %v3185_v49 = vpop.xlane.xlu0 %3184  ;;  %v3191_v4 = vpop.xlane.xlu1 %3190 }
 0x821   :  { %v3479_v47 = vmin.f32 %v7046_v9, 0.0  ;;  %v3425_v60 = vmul.f32 %v7032_v16, %v3402_v55  ;;  %v3384_v58 = vsub.f32 %v3361_v56, %v7022_v41  ;;  %v3669_v35 = vmul.f32 -1.442695, %v3230_v11 }
 0x822   :  { %v3428_v34 = vmul.f32 %v7032_v16, %v3405_v31  ;;  %v3213_v39 = vmul.f32 0.0625, %v3185_v49  ;;  %v3216_v29 = vmul.f32 0.0625, %v3191_v4  ;;  %vm3463_vm6 = vcmp.gt.f32.partialorder %v7046_v9, 0.0 }
 0x823   :  { %v3495_v5 = vmul.f32 1.442695, %v3479_v47  ;;  %v7057_v51 = vadd.f32 %v7039_v44, %v3425_v60  ;;  %v3406_v14 = vmul.f32 %v7025_v38, %v3384_v58  ;;  %4209 = vpow2.f32 %v3669_v35 }
 0x824   :  { %v7061_v21 = vadd.f32 %v7039_v44, %v3428_v34  ;;  %v3231_v2 = vmul.f32 %v7010_v1, %v3213_v39  ;;  %v3234_v8 = vmul.f32 %v7010_v1, %v3216_v29  ;;  %v3193_v10 = vpop.xlane.xlu0 %3192  ;;  %v3195_v20 = vpop.xlane.xlu1 %3194 }
 0x825   :  { %4211 = vpow2.f32 %v3495_v5  ;;  %v3480_v48 = vmin.f32 %v7057_v51, 0.0  ;;  %v3429_v25 = vmul.f32 %v7032_v16, %v3406_v14  ;;  %v3217_v3 = vmul.f32 0.0625, %v3193_v10 }
 0x826   :  { %v3483_v36 = vmin.f32 %v7061_v21, 0.0  ;;  %v3670_v28 = vmul.f32 -1.442695, %v3231_v2  ;;  %v3673_v17 = vmul.f32 -1.442695, %v3234_v8  ;;  %v3218_v57 = vmul.f32 0.0625, %v3195_v20 }
 0x827   :  { %v3497_v43 = vmul.f32 1.442695, %v3480_v48  ;;  %v7069_v50 = vadd.f32 %v7039_v44, %v3429_v25  ;;  %v3235_v54 = vmul.f32 %v7010_v1, %v3217_v3  ;;  %vm3464_vm7 = vcmp.gt.f32.partialorder %v7057_v51, 0.0 }
 0x828   :  { %v3503_v63 = vmul.f32 1.442695, %v3483_v36  ;;  %4213 = vpow2.f32 %v3670_v28  ;;  %v3197_v61 = vpop.xlane.xlu0 %3196  ;;  %v3199_v40 = vpop.xlane.xlu1 %3198  ;;  %v3236_v6 = vmul.f32 %v7010_v1, %v3218_v57  ;;  %vm3467_vm8 = vcmp.gt.f32.partialorder %v7061_v21, 0.0 }
 0x829   :  { %4215 = vpow2.f32 %v3497_v43  ;;  %v3484_v33 = vmin.f32 %v7069_v50, 0.0  ;;  %v3219_v23 = vmul.f32 0.0625, %v3197_v61  ;;  %v3220_v37 = vmul.f32 0.0625, %v3199_v40 }
 0x82a   :  { %4217 = vpow2.f32 %v3503_v63  ;;  %v3674_v15 = vmul.f32 -1.442695, %v3235_v54  ;;  %v3675_v0 = vmul.f32 -1.442695, %v3236_v6  ;;  %vm3468_vm9 = vcmp.gt.f32.partialorder %v7069_v50, 0.0 }
 0x82b   :  { %v3505_v46 = vmul.f32 1.442695, %v3484_v33  ;;  %4219 = vpow2.f32 %v3673_v17  ;;  %v3237_v22 = vmul.f32 %v7010_v1, %v3219_v23  ;;  %v3238_v52 = vmul.f32 %v7010_v1, %v3220_v37 }
 0x82c   :  { %v3201_v26 = vpop.xlane.xlu0 %3200  ;;  %v3203_v32 = vpop.xlane.xlu1 %3202 }
 0x82d   :  { %4221 = vpow2.f32 %v3505_v46  ;;  %v3221_v30 = vmul.f32 0.0625, %v3201_v26  ;;  %v3222_v55 = vmul.f32 0.0625, %v3203_v32  ;;  %v3676_v56 = vmul.f32 -1.442695, %v3237_v22 }
 0x82e   :  { %4223 = vpow2.f32 %v3674_v15  ;;  %v3677_v11 = vmul.f32 -1.442695, %v3238_v52 }
 0x82f   :  { %4225 = vpow2.f32 %v3675_v0  ;;  %v3239_v31 = vmul.f32 %v7010_v1, %v3221_v30  ;;  %v3240_v49 = vmul.f32 %v7010_v1, %v3222_v55 }
 0x830   :  { %4227 = vpow2.f32 %v3676_v56  ;;  %v3205_v4 = vpop.xlane.xlu0 %3204  ;;  %v3207_v47 = vpop.xlane.xlu1 %3206 }
 0x831   :  { %v4210_v60 = vpop.eup %4209  ;;  %4229 = vpow2.f32 %v3677_v11  ;;  %v3678_v58 = vmul.f32 -1.442695, %v3239_v31  ;;  %v3679_v34 = vmul.f32 -1.442695, %v3240_v49  ;;  %v3223_v35 = vmul.f32 0.0625, %v3205_v4 }
 0x832   :  { %v4212_v39 = vpop.eup %4211  ;;  %v3294_v29 = vadd.f32 1.0, %v4210_v60  ;;  %v3224_v5 = vmul.f32 0.0625, %v3207_v47 }
 0x833   :  { %v3686_v14 = vadd.f32 -1.0, %v4212_v39  ;;  %4231 = vpow2.f32 %v3678_v58  ;;  %v3241_v2 = vmul.f32 %v7010_v1, %v3223_v35 }
 0x834   :  { %4233 = vrcp.f32 %v3294_v29  ;;  %v3242_v8 = vmul.f32 %v7010_v1, %v3224_v5  ;;  %v3209_v10 = vpop.xlane.xlu0 %3208 }
 0x835   :  { %v4214_v20 = vpop.eup %4213  ;;  %v3543_v48 = vsel %vm3463_vm6, %v7046_v9, %v3686_v14  ;;  %4235 = vpow2.f32 %v3679_v34  ;;  %v3680_v25 = vmul.f32 -1.442695, %v3241_v2  ;;  %v3225_v36 = vmul.f32 0.0625, %v3209_v10 }
 0x836   :  { %v4216_v28 = vpop.eup %4215  ;;  %3559 = vst [vmem:[#allocation12] sm:$0xff] %v3543_v48  ;;  %v3295_v17 = vadd.f32 1.0, %v4214_v20  ;;  %v3681_v43 = vmul.f32 -1.442695, %v3242_v8 }
 0x837   :  { %v4218_v3 = vpop.eup %4217  ;;  %v3687_v57 = vadd.f32 -1.0, %v4216_v28  ;;  %4237 = vpow2.f32 %v3680_v25  ;;  %v3243_v63 = vmul.f32 %v7010_v1, %v3225_v36 }
 0x838   :  { %v4220_v61 = vpop.eup %4219  ;;  %v3690_v40 = vadd.f32 -1.0, %v4218_v3  ;;  %4239 = vrcp.f32 %v3295_v17 }
 0x839   :  { %v3544_v9 = vsel %vm3464_vm7, %v7057_v51, %v3687_v57  ;;  %v3298_v33 = vadd.f32 1.0, %v4220_v61  ;;  %4241 = vpow2.f32 %v3681_v43  ;;  %v3682_v54 = vmul.f32 -1.442695, %v3243_v63 }
 0x83a   :  { %v4222_v6 = vpop.eup %4221  ;;  %3560 = vst [vmem:[#allocation12 + $0x8] sm:$0xff] %v3544_v9  ;;  %v3547_v23 = vsel %vm3467_vm8, %v7061_v21, %v3690_v40 }
 0x83b   :  { %v4224_v37 = vpop.eup %4223  ;;  %3563 = vst [vmem:[#allocation12 + $0x20] sm:$0xff] %v3547_v23  ;;  %v3691_v46 = vadd.f32 -1.0, %v4222_v6  ;;  %4243 = vrcp.f32 %v3298_v33 }
 0x83c   :  { %v4226_v1 = vpop.eup %4225  ;;  %v3299_v15 = vadd.f32 1.0, %v4224_v37  ;;  %4245 = vpow2.f32 %v3682_v54 }
 0x83d   :  { %v4228_v0 = vpop.eup %4227  ;;  %v3548_v22 = vsel %vm3468_vm9, %v7069_v50, %v3691_v46  ;;  %v3300_v51 = vadd.f32 1.0, %v4226_v1 }
 0x83e   :  { %v4230_v52 = vpop.eup %4229  ;;  %3564 = vst [vmem:[#allocation12 + $0x28] sm:$0xff] %v3548_v22  ;;  %4247 = vrcp.f32 %v3299_v15  ;;  %v3301_v26 = vadd.f32 1.0, %v4228_v0 }
 0x83f   :  { %4249 = vrcp.f32 %v3300_v51  ;;  %v3302_v32 = vadd.f32 1.0, %v4230_v52 }
 0x840   :  { %v4232_v21 = vpop.eup %4231  ;;  %4251 = vrcp.f32 %v3301_v26 }
 0x841   :  { %v4234_v30 = vpop.eup %4233  ;;  %4253 = vrcp.f32 %v3302_v32  ;;  %v3303_v55 = vadd.f32 1.0, %v4232_v21 }
 0x842   :  { %v4236_v56 = vpop.eup %4235  ;;  %v3342_v11 = vadd.f32 1.0, %v4234_v30 }
 0x843   :  { %v3304_v31 = vadd.f32 1.0, %v4236_v56  ;;  %4255 = vrcp.f32 %v3303_v55 }
 0x844   :  { %v4238_v49 = vpop.eup %4237  ;;  %v3358_v4 = vmul.f32 %v3342_v11, %v6960_v59 }
 0x845   :  { %v4240_v50 = vpop.eup %4239  ;;  %4257 = vrcp.f32 %v3304_v31  ;;  %v3305_v34 = vadd.f32 1.0, %v4238_v49 }
 0x846   :  { %v4242_v47 = vpop.eup %4241  ;;  %v3381_v60 = vsub.f32 %v3358_v4, %v7022_v41  ;;  %v3343_v58 = vadd.f32 1.0, %v4240_v50 }
 0x847   :  { %v3306_v2 = vadd.f32 1.0, %v4242_v47  ;;  %4259 = vrcp.f32 %v3305_v34 }
 0x848   :  { %v4244_v35 = vpop.eup %4243  ;;  %v3403_v39 = vmul.f32 %v7025_v38, %v3381_v60  ;;  %v3359_v29 = vmul.f32 %v3343_v58, %v6967_v12 }
 0x849   :  { %v4246_v5 = vpop.eup %4245  ;;  %v3346_v14 = vadd.f32 1.0, %v4244_v35  ;;  %4261 = vrcp.f32 %v3306_v2 }
 0x84a   :  { %v3426_v8 = vmul.f32 %v7032_v16, %v3403_v39  ;;  %v3382_v59 = vsub.f32 %v3359_v29, %v7022_v41  ;;  %v3307_v10 = vadd.f32 1.0, %v4246_v5 }
 0x84b   :  { %v4248_v20 = vpop.eup %4247  ;;  %v3362_v48 = vmul.f32 %v3346_v14, %v6964_v27 }
 0x84c   :  { %v4250_v25 = vpop.eup %4249  ;;  %v7097_v36 = vadd.f32 %v7039_v44, %v3426_v8  ;;  %v3404_v28 = vmul.f32 %v7025_v38, %v3382_v59  ;;  %v3347_v17 = vadd.f32 1.0, %v4248_v20  ;;  %4263 = vrcp.f32 %v3307_v10 }
 0x84d   :  { %v4252_v12 = vpop.eup %4251  ;;  %v3385_v43 = vsub.f32 %v3362_v48, %v7022_v41  ;;  %v3348_v3 = vadd.f32 1.0, %v4250_v25 }
 0x84e   :  { %v4254_v57 = vpop.eup %4253  ;;  %v3481_v63 = vmin.f32 %v7097_v36, 0.0  ;;  %v3427_v61 = vmul.f32 %v7032_v16, %v3404_v28  ;;  %v3363_v27 = vmul.f32 %v3347_v17, %v6972_v42  ;;  %v3349_v33 = vadd.f32 1.0, %v4252_v12 }
 0x84f   :  { %v3407_v40 = vmul.f32 %v7025_v38, %v3385_v43  ;;  %v3364_v9 = vmul.f32 %v3348_v3, %v6975_v53  ;;  %v3350_v54 = vadd.f32 1.0, %v4254_v57  ;;  %vm3465_vm10 = vcmp.gt.f32.partialorder %v7097_v36, 0.0 }
 0x850   :  { %v3499_v6 = vmul.f32 1.442695, %v3481_v63  ;;  %v7107_v23 = vadd.f32 %v7039_v44, %v3427_v61  ;;  %v3386_v37 = vsub.f32 %v3363_v27, %v7022_v41  ;;  %v4256_v46 = vpop.eup %4255  ;;  %v3365_v42 = vmul.f32 %v3349_v33, %v6980_v19 }
 0x851   :  { %v3430_v1 = vmul.f32 %v7032_v16, %v3407_v40  ;;  %v3387_v15 = vsub.f32 %v3364_v9, %v7022_v41  ;;  %v3366_v0 = vmul.f32 %v3350_v54, %v6983_v13  ;;  %v3351_v55 = vadd.f32 1.0, %v4256_v46 }
 0x852   :  { %v4258_v22 = vpop.eup %4257  ;;  %4265 = vpow2.f32 %v3499_v6  ;;  %v3482_v53 = vmin.f32 %v7107_v23, 0.0  ;;  %v3408_v51 = vmul.f32 %v7025_v38, %v3386_v37  ;;  %v3388_v32 = vsub.f32 %v3365_v42, %v7022_v41 }
 0x853   :  { %v7117_v52 = vadd.f32 %v7039_v44, %v3430_v1  ;;  %v3409_v26 = vmul.f32 %v7025_v38, %v3387_v15  ;;  %v3389_v21 = vsub.f32 %v3366_v0, %v7022_v41  ;;  %v3352_v13 = vadd.f32 1.0, %v4258_v22 }
 0x854   :  { %v3501_v30 = vmul.f32 1.442695, %v3482_v53  ;;  %v3431_v19 = vmul.f32 %v7032_v16, %v3408_v51  ;;  %v3410_v31 = vmul.f32 %v7025_v38, %v3388_v32  ;;  %v3367_v50 = vmul.f32 %v3351_v55, %v6988_v18  ;;  %v4260_v35 = vpop.eup %4259 }
 0x855   :  { %v3485_v56 = vmin.f32 %v7117_v52, 0.0  ;;  %v3432_v11 = vmul.f32 %v7032_v16, %v3409_v26  ;;  %v3411_v4 = vmul.f32 %v7025_v38, %v3389_v21  ;;  %v3368_v34 = vmul.f32 %v3352_v13, %v6991_v24 }
 0x856   :  { %4267 = vpow2.f32 %v3501_v30  ;;  %v7127_v49 = vadd.f32 %v7039_v44, %v3431_v19  ;;  %v3433_v58 = vmul.f32 %v7032_v16, %v3410_v31  ;;  %v3390_v5 = vsub.f32 %v3367_v50, %v7022_v41  ;;  %v4262_v2 = vpop.eup %4261 }
 0x857   :  { %v3507_v47 = vmul.f32 1.442695, %v3485_v56  ;;  %v7132_v60 = vadd.f32 %v7039_v44, %v3432_v11  ;;  %v3434_v29 = vmul.f32 %v7032_v16, %v3411_v4  ;;  %v3391_v10 = vsub.f32 %v3368_v34, %v7022_v41 }
 0x858   :  { %v3486_v39 = vmin.f32 %v7127_v49, 0.0  ;;  %v7141_v18 = vadd.f32 %v7039_v44, %v3433_v58  ;;  %v3412_v24 = vmul.f32 %v7025_v38, %v3390_v5  ;;  %v3353_v28 = vadd.f32 1.0, %v4260_v35 }
 0x859   :  { %4269 = vpow2.f32 %v3507_v47  ;;  %v3487_v14 = vmin.f32 %v7132_v60, 0.0  ;;  %v7144_v59 = vadd.f32 %v7039_v44, %v3434_v29  ;;  %v4264_v20 = vpop.eup %4263  ;;  %v3413_v3 = vmul.f32 %v7025_v38, %v3391_v10 }
 0x85a   :  { %v3509_v8 = vmul.f32 1.442695, %v3486_v39  ;;  %v3488_v25 = vmin.f32 %v7141_v18, 0.0  ;;  %v3435_v12 = vmul.f32 %v7032_v16, %v3412_v24  ;;  %v3369_v57 = vmul.f32 %v3353_v28, %v6996_v45 }
 0x85b   :  { %v3511_v48 = vmul.f32 1.442695, %v3487_v14  ;;  %v3489_v17 = vmin.f32 %v7144_v59, 0.0  ;;  %v3354_v27 = vadd.f32 1.0, %v4262_v2  ;;  %v3355_v40 = vadd.f32 1.0, %v4264_v20 }
 0x85c   :  { %4271 = vpow2.f32 %v3509_v8  ;;  %v3513_v43 = vmul.f32 1.442695, %v3488_v25  ;;  %v7154_v61 = vadd.f32 %v7039_v44, %v3435_v12  ;;  %v3436_v33 = vmul.f32 %v7032_v16, %v3413_v3 }
 0x85d   :  { %4273 = vpow2.f32 %v3511_v48  ;;  %v3515_v63 = vmul.f32 1.442695, %v3489_v17  ;;  %v3392_v54 = vsub.f32 %v3369_v57, %v7022_v41  ;;  %v3370_v1 = vmul.f32 %v3354_v27, %v6999_v7 }
 0x85e   :  { %4275 = vpow2.f32 %v3513_v43  ;;  %v3490_v37 = vmin.f32 %v7154_v61, 0.0  ;;  %v7161_v45 = vadd.f32 %v7039_v44, %v3436_v33  ;;  %v3371_v15 = vmul.f32 %v3355_v40, %v7004_v62 }
 0x85f   :  { %v4266_v9 = vpop.eup %4265  ;;  %4277 = vpow2.f32 %v3515_v63  ;;  %v3414_v46 = vmul.f32 %v7025_v38, %v3392_v54  ;;  %v3393_v26 = vsub.f32 %v3370_v1, %v7022_v41  ;;  %vm3466_vm11 = vcmp.gt.f32.partialorder %v7107_v23, 0.0 }
 0x860   :  { %v3688_v6 = vadd.f32 -1.0, %v4266_v9  ;;  %v3517_v0 = vmul.f32 1.442695, %v3490_v37  ;;  %v3491_v53 = vmin.f32 %v7161_v45, 0.0  ;;  %v3394_v21 = vsub.f32 %v3371_v15, %v7022_v41 }
 0x861   :  { %v3437_v51 = vmul.f32 %v7032_v16, %v3414_v46  ;;  %vm3469_vm12 = vcmp.gt.f32.partialorder %v7117_v52, 0.0  ;;  %vm3470_vm13 = vcmp.gt.f32.partialorder %v7127_v49, 0.0  ;;  %vm3471_vm14 = vcmp.gt.f32.partialorder %v7132_v60, 0.0 }
 0x862   :  { %v3545_v42 = vsel %vm3465_vm10, %v7097_v36, %v3688_v6  ;;  %4279 = vpow2.f32 %v3517_v0  ;;  %v3519_v7 = vmul.f32 1.442695, %v3491_v53  ;;  %v3415_v36 = vmul.f32 %v7025_v38, %v3393_v26 }
 0x863   :  { %v4268_v22 = vpop.eup %4267  ;;  %3561 = vst [vmem:[#allocation12 + $0x10] sm:$0xff] %v3545_v42  ;;  %v3460_v62 = vadd.f32 %v7039_v44, %v3437_v51  ;;  %v3416_v55 = vmul.f32 %v7025_v38, %v3394_v21  ;;  %vm3472_vm15 = vcmp.gt.f32.partialorder %v7141_v18, 0.0  ;;  %vm3473_vm0 = vcmp.gt.f32.partialorder %v7144_v59, 0.0 }
 0x864   :  { %v3689_v32 = vadd.f32 -1.0, %v4268_v22  ;;  %4281 = vpow2.f32 %v3519_v7  ;;  %v3438_v41 = vmul.f32 %v7032_v16, %v3415_v36  ;;  %vm3474_vm1 = vcmp.gt.f32.partialorder %v7154_v61, 0.0 }
 0x865   :  { %v3492_v56 = vmin.f32 %v3460_v62, 0.0  ;;  %v3439_v11 = vmul.f32 %v7032_v16, %v3416_v55  ;;  %vm3475_vm2 = vcmp.gt.f32.partialorder %v7161_v45, 0.0  ;;  %vm3476_vm3 = vcmp.gt.f32.partialorder %v3460_v62, 0.0 }
 0x866   :  { %v4270_v30 = vpop.eup %4269  ;;  %v3546_v19 = vsel %vm3466_vm11, %v7107_v23, %v3689_v32  ;;  %v3461_v23 = vadd.f32 %v7039_v44, %v3438_v41 }
 0x867   :  { %3562 = vst [vmem:[#allocation12 + $0x18] sm:$0xff] %v3546_v19  ;;  %v3692_v13 = vadd.f32 -1.0, %v4270_v30  ;;  %v3521_v50 = vmul.f32 1.442695, %v3492_v56  ;;  %v3462_v38 = vadd.f32 %v7039_v44, %v3439_v11 }
 0x868   :  { %v3493_v16 = vmin.f32 %v3461_v23, 0.0  ;;  %vm3477_vm4 = vcmp.gt.f32.partialorder %v3461_v23, 0.0 }
 0x869   :  { %v4272_v31 = vpop.eup %4271  ;;  %v3549_v4 = vsel %vm3469_vm12, %v7117_v52, %v3692_v13  ;;  %4283 = vpow2.f32 %v3521_v50  ;;  %v3494_v14 = vmin.f32 %v3462_v38, 0.0  ;;  %vm3478_vm5 = vcmp.gt.f32.partialorder %v3462_v38, 0.0 }
 0x86a   :  { %v4274_v47 = vpop.eup %4273  ;;  %3565 = vst [vmem:[#allocation12 + $0x30] sm:$0xff] %v3549_v4  ;;  %v3693_v58 = vadd.f32 -1.0, %v4272_v31  ;;  %v3523_v2 = vmul.f32 1.442695, %v3493_v16 }
 0x86b   :  { %v3694_v34 = vadd.f32 -1.0, %v4274_v47  ;;  %v4276_v35 = vpop.eup %4275  ;;  %v3525_v24 = vmul.f32 1.442695, %v3494_v14 }
 0x86c   :  { %v3550_v39 = vsel %vm3470_vm13, %v7127_v49, %v3693_v58  ;;  %v4278_v29 = vpop.eup %4277  ;;  %v3695_v5 = vadd.f32 -1.0, %v4276_v35  ;;  %4285 = vpow2.f32 %v3523_v2 }
 0x86d   :  { %3566 = vst [vmem:[#allocation12 + $0x38] sm:$0xff] %v3550_v39  ;;  %v3551_v52 = vsel %vm3471_vm14, %v7132_v60, %v3694_v34  ;;  %v3696_v44 = vadd.f32 -1.0, %v4278_v29  ;;  %4287 = vpow2.f32 %v3525_v24 }
 0x86e   :  { %3567 = vst [vmem:[#allocation12 + $0x40] sm:$0xff] %v3551_v52  ;;  %v3552_v8 = vsel %vm3472_vm15, %v7141_v18, %v3695_v5 }
 0x86f   :  { %3568 = vst [vmem:[#allocation12 + $0x48] sm:$0xff] %v3552_v8  ;;  %v3553_v49 = vsel %vm3473_vm0, %v7144_v59, %v3696_v44  ;;  %v4280_v10 = vpop.eup %4279 }
 0x870   :  { %3569 = vst [vmem:[#allocation12 + $0x50] sm:$0xff] %v3553_v49  ;;  %v3697_v60 = vadd.f32 -1.0, %v4280_v10 }
 0x871   :  { %v4282_v20 = vpop.eup %4281 }
 0x872   :  { %v3554_v48 = vsel %vm3474_vm1, %v7154_v61, %v3697_v60  ;;  %v3698_v25 = vadd.f32 -1.0, %v4282_v20 }
 0x873   :  { %3570 = vst [vmem:[#allocation12 + $0x58] sm:$0xff] %v3554_v48 }
 0x874   :  { %v3555_v18 = vsel %vm3475_vm2, %v7161_v45, %v3698_v25 }
 0x875   :  { %3571 = vst [vmem:[#allocation12 + $0x60] sm:$0xff] %v3555_v18 }
 0x876   :  { %v4284_v28 = vpop.eup %4283 }
 0x877   :  { %v3699_v17 = vadd.f32 -1.0, %v4284_v28 }
 0x879   :  { %v3556_v59 = vsel %vm3476_vm3, %v3460_v62, %v3699_v17  ;;  %v4286_v12 = vpop.eup %4285 }
 0x87a   :  { %3572 = vst [vmem:[#allocation12 + $0x68] sm:$0xff] %v3556_v59  ;;  %v4288_v43 = vpop.eup %4287  ;;  %v3700_v3 = vadd.f32 -1.0, %v4286_v12 }
 0x87b   :  { %v3701_v57 = vadd.f32 -1.0, %v4288_v43 }
 0x87c   :  { %v3557_v63 = vsel %vm3477_vm4, %v3461_v23, %v3700_v3 }
 0x87d   :  { %3573 = vst [vmem:[#allocation12 + $0x70] sm:$0xff] %v3557_v63  ;;  %v3558_v61 = vsel %vm3478_vm5, %v3462_v38, %v3701_v57 }
 0x87e   :  { %3574 = vst [vmem:[#allocation12 + $0x78] sm:$0xff] %v3558_v61 }
 0x87f   :  { %4372 = shalt.err (!%p4369_p10)
}
 0x880   :  { %3586 = dma.vmem_to_hbm [thread:$0]  %s3581_s7, 2048, %s7211_s11, [#allocation6], %s4395_s27, %s4395_s27, %s4396_s28  }
 0x881   :  { %4389 = dma.done.wait [#allocation6], 2048  }
 0x882   :  { %4390 = vsyncadd [#allocation6], 4294965248 }
 0x883   :  { %3590 = vsyncpa [#allocation5], 1 }
 0x884   :  { %3591 = vsyncpa [#allocation9], 1 }
 0x885   :  { %3592 = vsyncpa [#allocation6], 1 }
 0x886   :  { %3593 = vsyncpa [#allocation7], 1 }

</bundles_post_ra>
